<compile_context>
chip_gen: v7x
topology: tpu7x:2x2x1
jax: 0.10.0
libtpu: 0.0.40
codegen_flags: <defaults>
</compile_context>

<pallas_src>
import functools

import numpy as np
import jax
import jax.numpy as jnp
from jax.experimental import pallas as pl
from jax.experimental.pallas import tpu as pltpu


# ----------------------------- Pallas kernel -------------------------------

def _fused_attention_kernel(x_ref, w_qkv_ref, bias_ref, w_out_ref, b_out_ref,
                            o_ref, acc_ref, *, heads, dim_head, scale):
    """Fused attention for a tile of Bt batch elements.

    x_ref:     (Bt, N, inp)          native dtype (cast to bf16 in VMEM)
    w_qkv_ref: (inp, 3*inner)        bf16, resident across the grid
    bias_ref:  (heads, N, N)         bf16 relative-position bias, resident
    w_out_ref: (heads, dim_head, oup) bf16, resident (leading-axis view/head)
    b_out_ref: (1, oup)              f32
    o_ref:     (Bt, N, oup)          output block
    acc_ref:   (Bt*N, oup)           f32 VMEM accumulator scratch
    """
    Bt, N, inp = x_ref.shape
    inner = heads * dim_head
    oup = o_ref.shape[2]
    rows = Bt * N

    # Cast the activation tile to bf16 inside VMEM (no wrapper-side cast).
    x_flat = x_ref[...].reshape(rows, inp).astype(jnp.bfloat16)

    # Row-batched, lane-dense QKV projection for the whole batch tile:
    # [Bt*N, inp] @ [inp, 3*inner]  (>=128 rows per MXU pass).
    qkv = jnp.dot(x_flat, w_qkv_ref[...],
                  preferred_element_type=jnp.float32)        # [rows, 3*inner] f32

    # Scale q and cast q/k/v to bf16 ONCE (not per head).
    q_all = (qkv[:, :inner] * scale).astype(jnp.bfloat16).reshape(Bt, N, inner)
    k_all = qkv[:, inner:2 * inner].astype(jnp.bfloat16).reshape(Bt, N, inner)
    v_all = qkv[:, 2 * inner:].astype(jnp.bfloat16).reshape(Bt, N, inner)

    acc_ref[...] = jnp.zeros_like(acc_ref)

    for h in range(heads):                                   # static unroll
        lo = h * dim_head
        hi = lo + dim_head
        q = q_all[:, :, lo:hi]                               # [Bt, N, D] bf16
        k = k_all[:, :, lo:hi]
        v = v_all[:, :, lo:hi]

        # Batched q @ k^T over the Bt tile (contract last dims, no transpose).
        dots = jnp.einsum('bqd,bkd->bqk', q, k,
                          preferred_element_type=jnp.float32)        # [Bt,N,N]
        dots = dots + bias_ref[h].astype(jnp.float32)[None, :, :]

        # Numerically stable softmax; keep VPU/EUP math in f32 (v5e has no
        # bf16 VPU/EUP).  Approx reciprocal uses the EUP slot (nearly free).
        m = jnp.max(dots, axis=-1, keepdims=True)
        e = jnp.exp(dots - m)
        p = e * pl.reciprocal(jnp.sum(e, axis=-1, keepdims=True), approx=True)

        out_h = jnp.einsum('bqk,bkd->bqd', p.astype(jnp.bfloat16), v,
                           preferred_element_type=jnp.float32)       # [Bt,N,D]

        # Fold this head's slice of the output projection directly into the
        # VMEM accumulator; w_out_ref[h] is a zero-cost leading-axis view of
        # the pre-reshaped [H, D, oup] weight (no row-slice relayout).
        acc_ref[...] += jnp.dot(
            out_h.reshape(rows, dim_head).astype(jnp.bfloat16),
            w_out_ref[h],
            preferred_element_type=jnp.float32)                      # [rows,oup]

    out = acc_ref[...] + b_out_ref[...]
    o_ref[...] = out.reshape(Bt, N, oup).astype(o_ref.dtype)


# ------------------------------ JAX wrapper --------------------------------

def _relative_index(ih, iw):
    """Static replication of the PyTorch relative_index buffer (numpy)."""
    coords = np.stack(np.meshgrid(np.arange(ih), np.arange(iw), indexing="ij"))
    coords = coords.reshape(2, -1)                           # [2, N]
    rel = coords[:, :, None] - coords[:, None, :]            # [2, N, N]
    rel[0] += ih - 1
    rel[1] += iw - 1
    rel[0] *= 2 * iw - 1
    rel = rel.transpose(1, 2, 0)                             # [N, N, 2]
    return rel.sum(-1).reshape(-1)                           # [N*N]


def build_relative_bias(rel_table, image_size, heads):
    """Precompute the [H, N, N] relative bias ONCE (outside the hot path)."""
    ih, iw = image_size
    n = ih * iw
    rel_idx = _relative_index(ih, iw)                        # static numpy
    bias = rel_table[rel_idx]                                # [N*N, H] gather
    return bias.reshape(n, n, heads).transpose(2, 0, 1)      # [H, N, N]


def prepare_params(params, *, image_size, heads, dim_head):
    """One-time parameter prep (amortized to init, never per-forward)."""
    inner = heads * dim_head
    oup = params["w_out"].shape[1]
    w_qkv_bf = params["w_qkv"].astype(jnp.bfloat16)                    # [inp, 3*inner]
    rel_bias = build_relative_bias(params["rel_table"], image_size,
                                   heads).astype(jnp.bfloat16)         # [H, N, N]
    w_out_bf = params["w_out"].reshape(heads, dim_head,
                                       oup).astype(jnp.bfloat16)       # [H, D, oup]
    b_out = params["b_out"].reshape(1, oup).astype(jnp.float32)        # [1, oup]
    return w_qkv_bf, rel_bias, w_out_bf, b_out


def _pick_batch_tile(B, N, target_rows):
    """Largest divisor of B whose tile gives ~target_rows MXU rows."""
    bt = max(1, min(B, max(1, target_rows // max(N, 1))))
    while B % bt:
        bt -= 1
    return bt


@functools.partial(jax.jit, static_argnames=("target_rows",))
def attention_forward(x, w_qkv, rel_bias, w_out, b_out, *, target_rows=128):
    """x: [B, N, inp] -> [B, N, oup].  target_rows: 128 (v5e) / 256 (v6e,v7x)."""
    B, N, inp = x.shape
    heads, dim_head, oup = w_out.shape
    inner = heads * dim_head
    assert w_qkv.shape == (inp, 3 * inner)
    assert rel_bias.shape == (heads, N, N)
    scale = float(dim_head) ** (-0.5)

    Bt = _pick_batch_tile(B, N, target_rows)
    grid = (B // Bt,)

    # Scheduling hint so XLA overlaps surrounding ops with this custom call.
    cost = pl.CostEstimate(
        flops=2 * B * (N * inp * 3 * inner
                       + heads * 2 * N * N * dim_head
                       + N * inner * oup),
        transcendentals=B * heads * N * N,
        bytes_accessed=(x.size * x.dtype.itemsize
                        + w_qkv.size * 2 + rel_bias.size * 2 + w_out.size * 2
                        + b_out.size * 4
                        + B * N * oup * x.dtype.itemsize),
    )

    kernel = functools.partial(_fused_attention_kernel, heads=heads,
                               dim_head=dim_head, scale=scale)

    return pl.pallas_call(
        kernel,
        out_shape=jax.ShapeDtypeStruct((B, N, oup), x.dtype),
        grid_spec=pltpu.PrefetchScalarGridSpec(
            num_scalar_prefetch=0,
            grid=grid,
            in_specs=[
                pl.BlockSpec((Bt, N, inp), lambda b: (b, 0, 0)),        # x tile
                pl.BlockSpec((inp, 3 * inner), lambda b: (0, 0)),       # resident
                pl.BlockSpec((heads, N, N), lambda b: (0, 0, 0)),       # resident bf16
                pl.BlockSpec((heads, dim_head, oup), lambda b: (0, 0, 0)),  # resident
                pl.BlockSpec((1, oup), lambda b: (0, 0)),               # resident
            ],
            out_specs=pl.BlockSpec((Bt, N, oup), lambda b: (b, 0, 0)),
            scratch_shapes=[pltpu.VMEM((Bt * N, oup), jnp.float32)],
        ),
        compiler_params=pltpu.CompilerParams(
            dimension_semantics=("parallel",)),   # grid depth shared across TCs
        cost_estimate=cost,
    )(x, w_qkv, rel_bias, w_out, b_out)


# Pure-JAX f32 reference for sanity checking.
def attention_reference(x, params, *, image_size, heads, dim_head):
    B, N, inp = x.shape
    D = dim_head
    inner = heads * dim_head
    scale = dim_head ** (-0.5)
    qkv = x @ params["w_qkv"]
    q, k, v = jnp.split(qkv, 3, axis=-1)

    def to_heads(t):
        return t.reshape(B, N, heads, D).transpose(0, 2, 1, 3)

    q, k, v = map(to_heads, (q, k, v))
    dots = jnp.einsum("bhnd,bhmd->bhnm", q, k) * scale
    rel_bias = build_relative_bias(params["rel_table"], image_size, heads)
    dots = dots + rel_bias[None]
    attn = jax.nn.softmax(dots, axis=-1)
    out = jnp.einsum("bhnm,bhmd->bhnd", attn, v)
    out = out.transpose(0, 2, 1, 3).reshape(B, N, inner)
    return out @ params["w_out"] + params["b_out"]


if __name__ == "__main__":
    # Small, module-consistent shapes (B//Bt = 4 grid steps, Bt*N = 128 rows).
    B = 8
    ih, iw = 8, 8
    N = ih * iw           # 64 tokens
    inp = 32
    oup = 32
    heads = 4
    dim_head = 8
    inner = heads * dim_head

    key = jax.random.PRNGKey(0)
    k1, k2, k3, k4, k5 = jax.random.split(key, 5)

    x = jax.random.normal(k1, (B, N, inp), dtype=jnp.float32)
    params = {
        # to_qkv: nn.Linear(inp, inner*3, bias=False); stored pre-transposed [inp, 3*inner]
        "w_qkv": jax.random.normal(k2, (inp, 3 * inner), dtype=jnp.float32) * 0.05,
        # relative_bias_table: torch init is zeros; random here so the bias path is exercised
        "rel_table": jax.random.normal(
            k3, ((2 * ih - 1) * (2 * iw - 1), heads), dtype=jnp.float32) * 0.1,
        # to_out: nn.Linear(inner, oup) (+ Dropout(0.0), identity at eval)
        "w_out": jax.random.normal(k4, (inner, oup), dtype=jnp.float32) * 0.05,
        "b_out": jax.random.normal(k5, (oup,), dtype=jnp.float32) * 0.05,
    }

    # One-time prep: bf16 weights, bf16 [H,N,N] bias, [H,D,oup] w_out layout.
    w_qkv_bf, rel_bias_bf, w_out_bf, b_out2 = prepare_params(
        params, image_size=(ih, iw), heads=heads, dim_head=dim_head)

    out = attention_forward(x, w_qkv_bf, rel_bias_bf, w_out_bf, b_out2,
                            target_rows=128)
    out = jax.block_until_ready(out)

    ref = attention_reference(x, params, image_size=(ih, iw),
                              heads=heads, dim_head=dim_head)
    assert out.shape == (B, N, oup)
    # bf16 MXU operands / bf16 bias + approx reciprocal -> intentionally
    # relaxed tolerance vs the f32 reference.
    assert jnp.allclose(out, ref, atol=2e-2, rtol=2e-2), "mismatch vs reference"

    print("KERNEL_OK")
</pallas_src>

<mosaic_0001>
module attributes {stable_mosaic.version = 11 : i64} {
  func.func @_fused_attention_kernel(%arg0: i32, %arg1: memref<2x64x32xf32, #tpu.memory_space<vmem>>, %arg2: memref<32x96xbf16, #tpu.memory_space<vmem>>, %arg3: memref<4x64x64xbf16, #tpu.memory_space<vmem>>, %arg4: memref<4x8x32xbf16, #tpu.memory_space<vmem>>, %arg5: memref<1x32xf32, #tpu.memory_space<vmem>>, %arg6: memref<2x64x32xf32, #tpu.memory_space<vmem>>, %arg7: memref<128x32xf32, #tpu.memory_space<vmem>>) attributes {dimension_semantics = [#tpu.dimension_semantics<parallel>], iteration_bounds = array<i64: 4>, scalar_prefetch = 0 : i64, scratch_operands = 1 : i64, tpu.core_type = #tpu.core_type<tc>, window_params = [{transform_indices = @transform_0, window_bounds = array<i64: 2, 64, 32>}, {pipeline_mode = #tpu.pipeline_mode<synchronous>, transform_indices = @transform_1, window_bounds = array<i64: 32, 96>}, {pipeline_mode = #tpu.pipeline_mode<synchronous>, transform_indices = @transform_2, window_bounds = array<i64: 4, 64, 64>}, {pipeline_mode = #tpu.pipeline_mode<synchronous>, transform_indices = @transform_3, window_bounds = array<i64: 4, 8, 32>}, {pipeline_mode = #tpu.pipeline_mode<synchronous>, transform_indices = @transform_4, window_bounds = array<i64: 1, 32>}, {transform_indices = @transform_5, window_bounds = array<i64: 2, 64, 32>}]} {
    %c0 = arith.constant 0 : index
    %c0_0 = arith.constant 0 : index
    %c0_1 = arith.constant 0 : index
    %0 = vector.load %arg1[%c0, %c0_0, %c0_1] : memref<2x64x32xf32, #tpu.memory_space<vmem>>, vector<2x64x32xf32>
    %1 = vector.shape_cast %0 : vector<2x64x32xf32> to vector<128x32xf32>
    %2 = arith.truncf %1 : vector<128x32xf32> to vector<128x32xbf16>
    %c0_2 = arith.constant 0 : index
    %c0_3 = arith.constant 0 : index
    %3 = vector.load %arg2[%c0_2, %c0_3] : memref<32x96xbf16, #tpu.memory_space<vmem>>, vector<32x96xbf16>
    %cst = arith.constant dense<0.000000e+00> : vector<128x96xf32>
    %4 = tpu.matmul %2, %3, %cst {dimension_numbers = #tpu.dot_dimension_numbers<[1], [0], [0], [1], [0, 0, 1, 1], [], []>} : vector<128x32xbf16>, vector<32x96xbf16>, vector<128x96xf32> -> vector<128x96xf32>
    %5 = vector.extract_strided_slice %4 {offsets = [0, 0], sizes = [128, 32], strides = [1, 1]} : vector<128x96xf32> to vector<128x32xf32>
    %cst_4 = arith.constant 0.353553385 : f32
    %6 = vector.broadcast %cst_4 : f32 to vector<128x32xf32>
    %7 = arith.mulf %5, %6 : vector<128x32xf32>
    %8 = arith.truncf %7 : vector<128x32xf32> to vector<128x32xbf16>
    %9 = vector.shape_cast %8 : vector<128x32xbf16> to vector<2x64x32xbf16>
    %10 = vector.extract_strided_slice %4 {offsets = [0, 32], sizes = [128, 32], strides = [1, 1]} : vector<128x96xf32> to vector<128x32xf32>
    %11 = arith.truncf %10 : vector<128x32xf32> to vector<128x32xbf16>
    %12 = vector.shape_cast %11 : vector<128x32xbf16> to vector<2x64x32xbf16>
    %13 = vector.extract_strided_slice %4 {offsets = [0, 64], sizes = [128, 32], strides = [1, 1]} : vector<128x96xf32> to vector<128x32xf32>
    %14 = arith.truncf %13 : vector<128x32xf32> to vector<128x32xbf16>
    %15 = vector.shape_cast %14 : vector<128x32xbf16> to vector<2x64x32xbf16>
    %cst_5 = arith.constant 0.000000e+00 : f32
    %16 = vector.broadcast %cst_5 : f32 to vector<128x32xf32>
    %c0_6 = arith.constant 0 : index
    %c0_7 = arith.constant 0 : index
    %17 = vector.load %arg7[%c0_6, %c0_7] : memref<128x32xf32, #tpu.memory_space<vmem>>, vector<128x32xf32>
    tpu.vector_store %arg7[%c0_6, %c0_7], %16 {strides = array<i32>} : memref<128x32xf32, #tpu.memory_space<vmem>>, vector<128x32xf32>,
    %18 = vector.extract_strided_slice %9 {offsets = [0, 0, 0], sizes = [2, 64, 8], strides = [1, 1, 1]} : vector<2x64x32xbf16> to vector<2x64x8xbf16>
    %19 = vector.extract_strided_slice %12 {offsets = [0, 0, 0], sizes = [2, 64, 8], strides = [1, 1, 1]} : vector<2x64x32xbf16> to vector<2x64x8xbf16>
    %20 = vector.extract_strided_slice %15 {offsets = [0, 0, 0], sizes = [2, 64, 8], strides = [1, 1, 1]} : vector<2x64x32xbf16> to vector<2x64x8xbf16>
    "tpu.trace_start"() <{level = 10 : i32, message = "bqd,bkd->bqk"}> : () -> ()
    %cst_8 = arith.constant dense<0.000000e+00> : vector<2x64x64xf32>
    %21 = tpu.matmul %18, %19, %cst_8 {dimension_numbers = #tpu.dot_dimension_numbers<[2], [2], [1], [1], [0, 0, 0, 1, 1, 1], [0], [0]>} : vector<2x64x8xbf16>, vector<2x64x8xbf16>, vector<2x64x64xf32> -> vector<2x64x64xf32>
    "tpu.trace_stop"() : () -> ()
    %c0_9 = arith.constant 0 : index
    %c0_10 = arith.constant 0 : index
    %c0_11 = arith.constant 0 : index
    %22 = vector.load %arg3[%c0_9, %c0_10, %c0_11] : memref<4x64x64xbf16, #tpu.memory_space<vmem>>, vector<1x64x64xbf16>
    %23 = vector.shape_cast %22 : vector<1x64x64xbf16> to vector<64x64xbf16>
    %24 = arith.extf %23 : vector<64x64xbf16> to vector<64x64xf32>
    %25 = vector.shape_cast %24 : vector<64x64xf32> to vector<1x64x64xf32>
    %26 = vector.broadcast %25 : vector<1x64x64xf32> to vector<2x64x64xf32>
    %27 = arith.addf %21, %26 : vector<2x64x64xf32>
    %cst_12 = arith.constant dense<0xFF800000> : vector<2x64xf32>
    %28 = vector.multi_reduction <maximumf>, %27, %cst_12 [2] : vector<2x64x64xf32> to vector<2x64xf32>
    %29 = vector.shape_cast %28 : vector<2x64xf32> to vector<2x64x1xf32>
    %30 = vector.broadcast %29 : vector<2x64x1xf32> to vector<2x64x64xf32>
    %31 = arith.subf %27, %30 : vector<2x64x64xf32>
    %32 = math.exp %31 : vector<2x64x64xf32>
    %cst_13 = arith.constant dense<0.000000e+00> : vector<2x64xf32>
    %33 = vector.multi_reduction <add>, %32, %cst_13 [2] : vector<2x64x64xf32> to vector<2x64xf32>
    %34 = vector.shape_cast %33 : vector<2x64xf32> to vector<2x64x1xf32>
    %35 = tpu.reciprocal %34 {approx = true} : vector<2x64x1xf32> -> vector<2x64x1xf32>
    %36 = vector.broadcast %35 : vector<2x64x1xf32> to vector<2x64x64xf32>
    %37 = arith.mulf %32, %36 : vector<2x64x64xf32>
    %38 = arith.truncf %37 : vector<2x64x64xf32> to vector<2x64x64xbf16>
    "tpu.trace_start"() <{level = 10 : i32, message = "bqk,bkd->bqd"}> : () -> ()
    %cst_14 = arith.constant dense<0.000000e+00> : vector<2x64x8xf32>
    %39 = tpu.matmul %38, %20, %cst_14 {dimension_numbers = #tpu.dot_dimension_numbers<[2], [1], [1], [2], [0, 0, 0, 1, 1, 2], [0], [0]>} : vector<2x64x64xbf16>, vector<2x64x8xbf16>, vector<2x64x8xf32> -> vector<2x64x8xf32>
    "tpu.trace_stop"() : () -> ()
    %c0_15 = arith.constant 0 : index
    %c0_16 = arith.constant 0 : index
    %40 = vector.load %arg7[%c0_15, %c0_16] : memref<128x32xf32, #tpu.memory_space<vmem>>, vector<128x32xf32>
    %41 = vector.shape_cast %39 : vector<2x64x8xf32> to vector<128x8xf32>
    %42 = arith.truncf %41 : vector<128x8xf32> to vector<128x8xbf16>
    %c0_17 = arith.constant 0 : index
    %c0_18 = arith.constant 0 : index
    %c0_19 = arith.constant 0 : index
    %43 = vector.load %arg4[%c0_17, %c0_18, %c0_19] : memref<4x8x32xbf16, #tpu.memory_space<vmem>>, vector<1x8x32xbf16>
    %44 = vector.shape_cast %43 : vector<1x8x32xbf16> to vector<8x32xbf16>
    %cst_20 = arith.constant dense<0.000000e+00> : vector<128x32xf32>
    %45 = tpu.matmul %42, %44, %cst_20 {dimension_numbers = #tpu.dot_dimension_numbers<[1], [0], [0], [1], [0, 0, 1, 1], [], []>} : vector<128x8xbf16>, vector<8x32xbf16>, vector<128x32xf32> -> vector<128x32xf32>
    %46 = arith.addf %40, %45 : vector<128x32xf32>
    %c0_21 = arith.constant 0 : index
    %c0_22 = arith.constant 0 : index
    %47 = vector.load %arg7[%c0_21, %c0_22] : memref<128x32xf32, #tpu.memory_space<vmem>>, vector<128x32xf32>
    tpu.vector_store %arg7[%c0_21, %c0_22], %46 {strides = array<i32>} : memref<128x32xf32, #tpu.memory_space<vmem>>, vector<128x32xf32>,
    %48 = vector.extract_strided_slice %9 {offsets = [0, 0, 8], sizes = [2, 64, 8], strides = [1, 1, 1]} : vector<2x64x32xbf16> to vector<2x64x8xbf16>
    %49 = vector.extract_strided_slice %12 {offsets = [0, 0, 8], sizes = [2, 64, 8], strides = [1, 1, 1]} : vector<2x64x32xbf16> to vector<2x64x8xbf16>
    %50 = vector.extract_strided_slice %15 {offsets = [0, 0, 8], sizes = [2, 64, 8], strides = [1, 1, 1]} : vector<2x64x32xbf16> to vector<2x64x8xbf16>
    "tpu.trace_start"() <{level = 10 : i32, message = "bqd,bkd->bqk"}> : () -> ()
    %cst_23 = arith.constant dense<0.000000e+00> : vector<2x64x64xf32>
    %51 = tpu.matmul %48, %49, %cst_23 {dimension_numbers = #tpu.dot_dimension_numbers<[2], [2], [1], [1], [0, 0, 0, 1, 1, 1], [0], [0]>} : vector<2x64x8xbf16>, vector<2x64x8xbf16>, vector<2x64x64xf32> -> vector<2x64x64xf32>
    "tpu.trace_stop"() : () -> ()
    %c1 = arith.constant 1 : index
    %c0_24 = arith.constant 0 : index
    %c0_25 = arith.constant 0 : index
    %52 = vector.load %arg3[%c1, %c0_24, %c0_25] : memref<4x64x64xbf16, #tpu.memory_space<vmem>>, vector<1x64x64xbf16>
    %53 = vector.shape_cast %52 : vector<1x64x64xbf16> to vector<64x64xbf16>
    %54 = arith.extf %53 : vector<64x64xbf16> to vector<64x64xf32>
    %55 = vector.shape_cast %54 : vector<64x64xf32> to vector<1x64x64xf32>
    %56 = vector.broadcast %55 : vector<1x64x64xf32> to vector<2x64x64xf32>
    %57 = arith.addf %51, %56 : vector<2x64x64xf32>
    %cst_26 = arith.constant dense<0xFF800000> : vector<2x64xf32>
    %58 = vector.multi_reduction <maximumf>, %57, %cst_26 [2] : vector<2x64x64xf32> to vector<2x64xf32>
    %59 = vector.shape_cast %58 : vector<2x64xf32> to vector<2x64x1xf32>
    %60 = vector.broadcast %59 : vector<2x64x1xf32> to vector<2x64x64xf32>
    %61 = arith.subf %57, %60 : vector<2x64x64xf32>
    %62 = math.exp %61 : vector<2x64x64xf32>
    %cst_27 = arith.constant dense<0.000000e+00> : vector<2x64xf32>
    %63 = vector.multi_reduction <add>, %62, %cst_27 [2] : vector<2x64x64xf32> to vector<2x64xf32>
    %64 = vector.shape_cast %63 : vector<2x64xf32> to vector<2x64x1xf32>
    %65 = tpu.reciprocal %64 {approx = true} : vector<2x64x1xf32> -> vector<2x64x1xf32>
    %66 = vector.broadcast %65 : vector<2x64x1xf32> to vector<2x64x64xf32>
    %67 = arith.mulf %62, %66 : vector<2x64x64xf32>
    %68 = arith.truncf %67 : vector<2x64x64xf32> to vector<2x64x64xbf16>
    "tpu.trace_start"() <{level = 10 : i32, message = "bqk,bkd->bqd"}> : () -> ()
    %cst_28 = arith.constant dense<0.000000e+00> : vector<2x64x8xf32>
    %69 = tpu.matmul %68, %50, %cst_28 {dimension_numbers = #tpu.dot_dimension_numbers<[2], [1], [1], [2], [0, 0, 0, 1, 1, 2], [0], [0]>} : vector<2x64x64xbf16>, vector<2x64x8xbf16>, vector<2x64x8xf32> -> vector<2x64x8xf32>
    "tpu.trace_stop"() : () -> ()
    %c0_29 = arith.constant 0 : index
    %c0_30 = arith.constant 0 : index
    %70 = vector.load %arg7[%c0_29, %c0_30] : memref<128x32xf32, #tpu.memory_space<vmem>>, vector<128x32xf32>
    %71 = vector.shape_cast %69 : vector<2x64x8xf32> to vector<128x8xf32>
    %72 = arith.truncf %71 : vector<128x8xf32> to vector<128x8xbf16>
    %c1_31 = arith.constant 1 : index
    %c0_32 = arith.constant 0 : index
    %c0_33 = arith.constant 0 : index
    %73 = vector.load %arg4[%c1_31, %c0_32, %c0_33] : memref<4x8x32xbf16, #tpu.memory_space<vmem>>, vector<1x8x32xbf16>
    %74 = vector.shape_cast %73 : vector<1x8x32xbf16> to vector<8x32xbf16>
    %cst_34 = arith.constant dense<0.000000e+00> : vector<128x32xf32>
    %75 = tpu.matmul %72, %74, %cst_34 {dimension_numbers = #tpu.dot_dimension_numbers<[1], [0], [0], [1], [0, 0, 1, 1], [], []>} : vector<128x8xbf16>, vector<8x32xbf16>, vector<128x32xf32> -> vector<128x32xf32>
    %76 = arith.addf %70, %75 : vector<128x32xf32>
    %c0_35 = arith.constant 0 : index
    %c0_36 = arith.constant 0 : index
    %77 = vector.load %arg7[%c0_35, %c0_36] : memref<128x32xf32, #tpu.memory_space<vmem>>, vector<128x32xf32>
    tpu.vector_store %arg7[%c0_35, %c0_36], %76 {strides = array<i32>} : memref<128x32xf32, #tpu.memory_space<vmem>>, vector<128x32xf32>,
    %78 = vector.extract_strided_slice %9 {offsets = [0, 0, 16], sizes = [2, 64, 8], strides = [1, 1, 1]} : vector<2x64x32xbf16> to vector<2x64x8xbf16>
    %79 = vector.extract_strided_slice %12 {offsets = [0, 0, 16], sizes = [2, 64, 8], strides = [1, 1, 1]} : vector<2x64x32xbf16> to vector<2x64x8xbf16>
    %80 = vector.extract_strided_slice %15 {offsets = [0, 0, 16], sizes = [2, 64, 8], strides = [1, 1, 1]} : vector<2x64x32xbf16> to vector<2x64x8xbf16>
    "tpu.trace_start"() <{level = 10 : i32, message = "bqd,bkd->bqk"}> : () -> ()
    %cst_37 = arith.constant dense<0.000000e+00> : vector<2x64x64xf32>
    %81 = tpu.matmul %78, %79, %cst_37 {dimension_numbers = #tpu.dot_dimension_numbers<[2], [2], [1], [1], [0, 0, 0, 1, 1, 1], [0], [0]>} : vector<2x64x8xbf16>, vector<2x64x8xbf16>, vector<2x64x64xf32> -> vector<2x64x64xf32>
    "tpu.trace_stop"() : () -> ()
    %c2 = arith.constant 2 : index
    %c0_38 = arith.constant 0 : index
    %c0_39 = arith.constant 0 : index
    %82 = vector.load %arg3[%c2, %c0_38, %c0_39] : memref<4x64x64xbf16, #tpu.memory_space<vmem>>, vector<1x64x64xbf16>
    %83 = vector.shape_cast %82 : vector<1x64x64xbf16> to vector<64x64xbf16>
    %84 = arith.extf %83 : vector<64x64xbf16> to vector<64x64xf32>
    %85 = vector.shape_cast %84 : vector<64x64xf32> to vector<1x64x64xf32>
    %86 = vector.broadcast %85 : vector<1x64x64xf32> to vector<2x64x64xf32>
    %87 = arith.addf %81, %86 : vector<2x64x64xf32>
    %cst_40 = arith.constant dense<0xFF800000> : vector<2x64xf32>
    %88 = vector.multi_reduction <maximumf>, %87, %cst_40 [2] : vector<2x64x64xf32> to vector<2x64xf32>
    %89 = vector.shape_cast %88 : vector<2x64xf32> to vector<2x64x1xf32>
    %90 = vector.broadcast %89 : vector<2x64x1xf32> to vector<2x64x64xf32>
    %91 = arith.subf %87, %90 : vector<2x64x64xf32>
    %92 = math.exp %91 : vector<2x64x64xf32>
    %cst_41 = arith.constant dense<0.000000e+00> : vector<2x64xf32>
    %93 = vector.multi_reduction <add>, %92, %cst_41 [2] : vector<2x64x64xf32> to vector<2x64xf32>
    %94 = vector.shape_cast %93 : vector<2x64xf32> to vector<2x64x1xf32>
    %95 = tpu.reciprocal %94 {approx = true} : vector<2x64x1xf32> -> vector<2x64x1xf32>
    %96 = vector.broadcast %95 : vector<2x64x1xf32> to vector<2x64x64xf32>
    %97 = arith.mulf %92, %96 : vector<2x64x64xf32>
    %98 = arith.truncf %97 : vector<2x64x64xf32> to vector<2x64x64xbf16>
    "tpu.trace_start"() <{level = 10 : i32, message = "bqk,bkd->bqd"}> : () -> ()
    %cst_42 = arith.constant dense<0.000000e+00> : vector<2x64x8xf32>
    %99 = tpu.matmul %98, %80, %cst_42 {dimension_numbers = #tpu.dot_dimension_numbers<[2], [1], [1], [2], [0, 0, 0, 1, 1, 2], [0], [0]>} : vector<2x64x64xbf16>, vector<2x64x8xbf16>, vector<2x64x8xf32> -> vector<2x64x8xf32>
    "tpu.trace_stop"() : () -> ()
    %c0_43 = arith.constant 0 : index
    %c0_44 = arith.constant 0 : index
    %100 = vector.load %arg7[%c0_43, %c0_44] : memref<128x32xf32, #tpu.memory_space<vmem>>, vector<128x32xf32>
    %101 = vector.shape_cast %99 : vector<2x64x8xf32> to vector<128x8xf32>
    %102 = arith.truncf %101 : vector<128x8xf32> to vector<128x8xbf16>
    %c2_45 = arith.constant 2 : index
    %c0_46 = arith.constant 0 : index
    %c0_47 = arith.constant 0 : index
    %103 = vector.load %arg4[%c2_45, %c0_46, %c0_47] : memref<4x8x32xbf16, #tpu.memory_space<vmem>>, vector<1x8x32xbf16>
    %104 = vector.shape_cast %103 : vector<1x8x32xbf16> to vector<8x32xbf16>
    %cst_48 = arith.constant dense<0.000000e+00> : vector<128x32xf32>
    %105 = tpu.matmul %102, %104, %cst_48 {dimension_numbers = #tpu.dot_dimension_numbers<[1], [0], [0], [1], [0, 0, 1, 1], [], []>} : vector<128x8xbf16>, vector<8x32xbf16>, vector<128x32xf32> -> vector<128x32xf32>
    %106 = arith.addf %100, %105 : vector<128x32xf32>
    %c0_49 = arith.constant 0 : index
    %c0_50 = arith.constant 0 : index
    %107 = vector.load %arg7[%c0_49, %c0_50] : memref<128x32xf32, #tpu.memory_space<vmem>>, vector<128x32xf32>
    tpu.vector_store %arg7[%c0_49, %c0_50], %106 {strides = array<i32>} : memref<128x32xf32, #tpu.memory_space<vmem>>, vector<128x32xf32>,
    %108 = vector.extract_strided_slice %9 {offsets = [0, 0, 24], sizes = [2, 64, 8], strides = [1, 1, 1]} : vector<2x64x32xbf16> to vector<2x64x8xbf16>
    %109 = vector.extract_strided_slice %12 {offsets = [0, 0, 24], sizes = [2, 64, 8], strides = [1, 1, 1]} : vector<2x64x32xbf16> to vector<2x64x8xbf16>
    %110 = vector.extract_strided_slice %15 {offsets = [0, 0, 24], sizes = [2, 64, 8], strides = [1, 1, 1]} : vector<2x64x32xbf16> to vector<2x64x8xbf16>
    "tpu.trace_start"() <{level = 10 : i32, message = "bqd,bkd->bqk"}> : () -> ()
    %cst_51 = arith.constant dense<0.000000e+00> : vector<2x64x64xf32>
    %111 = tpu.matmul %108, %109, %cst_51 {dimension_numbers = #tpu.dot_dimension_numbers<[2], [2], [1], [1], [0, 0, 0, 1, 1, 1], [0], [0]>} : vector<2x64x8xbf16>, vector<2x64x8xbf16>, vector<2x64x64xf32> -> vector<2x64x64xf32>
    "tpu.trace_stop"() : () -> ()
    %c3 = arith.constant 3 : index
    %c0_52 = arith.constant 0 : index
    %c0_53 = arith.constant 0 : index
    %112 = vector.load %arg3[%c3, %c0_52, %c0_53] : memref<4x64x64xbf16, #tpu.memory_space<vmem>>, vector<1x64x64xbf16>
    %113 = vector.shape_cast %112 : vector<1x64x64xbf16> to vector<64x64xbf16>
    %114 = arith.extf %113 : vector<64x64xbf16> to vector<64x64xf32>
    %115 = vector.shape_cast %114 : vector<64x64xf32> to vector<1x64x64xf32>
    %116 = vector.broadcast %115 : vector<1x64x64xf32> to vector<2x64x64xf32>
    %117 = arith.addf %111, %116 : vector<2x64x64xf32>
    %cst_54 = arith.constant dense<0xFF800000> : vector<2x64xf32>
    %118 = vector.multi_reduction <maximumf>, %117, %cst_54 [2] : vector<2x64x64xf32> to vector<2x64xf32>
    %119 = vector.shape_cast %118 : vector<2x64xf32> to vector<2x64x1xf32>
    %120 = vector.broadcast %119 : vector<2x64x1xf32> to vector<2x64x64xf32>
    %121 = arith.subf %117, %120 : vector<2x64x64xf32>
    %122 = math.exp %121 : vector<2x64x64xf32>
    %cst_55 = arith.constant dense<0.000000e+00> : vector<2x64xf32>
    %123 = vector.multi_reduction <add>, %122, %cst_55 [2] : vector<2x64x64xf32> to vector<2x64xf32>
    %124 = vector.shape_cast %123 : vector<2x64xf32> to vector<2x64x1xf32>
    %125 = tpu.reciprocal %124 {approx = true} : vector<2x64x1xf32> -> vector<2x64x1xf32>
    %126 = vector.broadcast %125 : vector<2x64x1xf32> to vector<2x64x64xf32>
    %127 = arith.mulf %122, %126 : vector<2x64x64xf32>
    %128 = arith.truncf %127 : vector<2x64x64xf32> to vector<2x64x64xbf16>
    "tpu.trace_start"() <{level = 10 : i32, message = "bqk,bkd->bqd"}> : () -> ()
    %cst_56 = arith.constant dense<0.000000e+00> : vector<2x64x8xf32>
    %129 = tpu.matmul %128, %110, %cst_56 {dimension_numbers = #tpu.dot_dimension_numbers<[2], [1], [1], [2], [0, 0, 0, 1, 1, 2], [0], [0]>} : vector<2x64x64xbf16>, vector<2x64x8xbf16>, vector<2x64x8xf32> -> vector<2x64x8xf32>
    "tpu.trace_stop"() : () -> ()
    %c0_57 = arith.constant 0 : index
    %c0_58 = arith.constant 0 : index
    %130 = vector.load %arg7[%c0_57, %c0_58] : memref<128x32xf32, #tpu.memory_space<vmem>>, vector<128x32xf32>
    %131 = vector.shape_cast %129 : vector<2x64x8xf32> to vector<128x8xf32>
    %132 = arith.truncf %131 : vector<128x8xf32> to vector<128x8xbf16>
    %c3_59 = arith.constant 3 : index
    %c0_60 = arith.constant 0 : index
    %c0_61 = arith.constant 0 : index
    %133 = vector.load %arg4[%c3_59, %c0_60, %c0_61] : memref<4x8x32xbf16, #tpu.memory_space<vmem>>, vector<1x8x32xbf16>
    %134 = vector.shape_cast %133 : vector<1x8x32xbf16> to vector<8x32xbf16>
    %cst_62 = arith.constant dense<0.000000e+00> : vector<128x32xf32>
    %135 = tpu.matmul %132, %134, %cst_62 {dimension_numbers = #tpu.dot_dimension_numbers<[1], [0], [0], [1], [0, 0, 1, 1], [], []>} : vector<128x8xbf16>, vector<8x32xbf16>, vector<128x32xf32> -> vector<128x32xf32>
    %136 = arith.addf %130, %135 : vector<128x32xf32>
    %c0_63 = arith.constant 0 : index
    %c0_64 = arith.constant 0 : index
    %137 = vector.load %arg7[%c0_63, %c0_64] : memref<128x32xf32, #tpu.memory_space<vmem>>, vector<128x32xf32>
    tpu.vector_store %arg7[%c0_63, %c0_64], %136 {strides = array<i32>} : memref<128x32xf32, #tpu.memory_space<vmem>>, vector<128x32xf32>,
    %c0_65 = arith.constant 0 : index
    %c0_66 = arith.constant 0 : index
    %138 = vector.load %arg7[%c0_65, %c0_66] : memref<128x32xf32, #tpu.memory_space<vmem>>, vector<128x32xf32>
    %c0_67 = arith.constant 0 : index
    %c0_68 = arith.constant 0 : index
    %139 = vector.load %arg5[%c0_67, %c0_68] : memref<1x32xf32, #tpu.memory_space<vmem>>, vector<1x32xf32>
    %140 = vector.broadcast %139 : vector<1x32xf32> to vector<128x32xf32>
    %141 = arith.addf %138, %140 : vector<128x32xf32>
    %142 = vector.shape_cast %141 : vector<128x32xf32> to vector<2x64x32xf32>
    %c0_69 = arith.constant 0 : index
    %c0_70 = arith.constant 0 : index
    %c0_71 = arith.constant 0 : index
    %143 = vector.load %arg6[%c0_69, %c0_70, %c0_71] : memref<2x64x32xf32, #tpu.memory_space<vmem>>, vector<2x64x32xf32>
    tpu.vector_store %arg6[%c0_69, %c0_70, %c0_71], %142 {strides = array<i32>} : memref<2x64x32xf32, #tpu.memory_space<vmem>>, vector<2x64x32xf32>,
    return
  }
  func.func @transform_0(%arg0: i32) -> (i32, i32, i32) {
    %c0_i32 = arith.constant 0 : i32
    %c0_i32_0 = arith.constant 0 : i32
    %c0_i32_1 = arith.constant 0 : i32
    return %arg0, %c0_i32, %c0_i32_0 : i32, i32, i32
  }
  func.func @transform_1(%arg0: i32) -> (i32, i32) {
    %c0_i32 = arith.constant 0 : i32
    %c0_i32_0 = arith.constant 0 : i32
    %c0_i32_1 = arith.constant 0 : i32
    return %c0_i32, %c0_i32_0 : i32, i32
  }
  func.func @transform_2(%arg0: i32) -> (i32, i32, i32) {
    %c0_i32 = arith.constant 0 : i32
    %c0_i32_0 = arith.constant 0 : i32
    %c0_i32_1 = arith.constant 0 : i32
    %c0_i32_2 = arith.constant 0 : i32
    return %c0_i32, %c0_i32_0, %c0_i32_1 : i32, i32, i32
  }
  func.func @transform_3(%arg0: i32) -> (i32, i32, i32) {
    %c0_i32 = arith.constant 0 : i32
    %c0_i32_0 = arith.constant 0 : i32
    %c0_i32_1 = arith.constant 0 : i32
    %c0_i32_2 = arith.constant 0 : i32
    return %c0_i32, %c0_i32_0, %c0_i32_1 : i32, i32, i32
  }
  func.func @transform_4(%arg0: i32) -> (i32, i32) {
    %c0_i32 = arith.constant 0 : i32
    %c0_i32_0 = arith.constant 0 : i32
    %c0_i32_1 = arith.constant 0 : i32
    return %c0_i32, %c0_i32_0 : i32, i32
  }
  func.func @transform_5(%arg0: i32) -> (i32, i32, i32) {
    %c0_i32 = arith.constant 0 : i32
    %c0_i32_0 = arith.constant 0 : i32
    %c0_i32_1 = arith.constant 0 : i32
    return %arg0, %c0_i32, %c0_i32_0 : i32, i32, i32
  }
}

</mosaic_0001>

<bundles_post_ra>
// kernel: attention_forward.1
= control target key start
LH: loop header
LB: loop body
LE: loop exit
PB: predicated region body
PF: predicated region fallthrough
CT: control target
= control target key end

     0   :  { %s4756_s18 = smov 0   ;;  %s6035_s0 = inlined_call_operand.vmem [shape: f32[8,64,32], index: 0, kind: input, shape index: {}]   ;;  %s6036_s1 = inlined_call_operand.vmem [shape: bf16[32,96], index: 1, kind: input, shape index: {}]   ;;  %s6037_s2 = inlined_call_operand.vmem [shape: bf16[4,64,64], index: 2, kind: input, shape index: {}]   ;;  %s6038_s3 = inlined_call_operand.vmem [shape: bf16[4,8,32], index: 3, kind: input, shape index: {}]   ;;  %s6039_s4 = inlined_call_operand.vmem [shape: f32[1,32], index: 4, kind: input, shape index: {}]   ;;  %s6040_s5 = inlined_call_operand.vmem [shape: f32[8,64,32], index: 5, kind: output, shape index: {}]  }
   0x1 LB: > { %s3642_s19 = sadd.s32 4294967295, %s4712_s18   ;;  %p3646_p0 = scmp.ge.s32.totalorder %s4712_s18, 1  ;;  %s4712_s18 = sphi %s4756_s18, %s15_s18  }
   0x2   : > { %p189_p1 = scmp.lt.s32.totalorder %s4712_s18, 5 }
   0x4   : > { %p190_p2 = pnand %p3646_p0, %p189_p1 }
   0x5   : > { %v4448_v0 = vld [vmem:[%s6036_s1] sm:$0xff] (!%p190_p2)   ;;  %s3647_s22 = sshll.u32 (!%p190_p2), %s3642_s19, 1  ;;  %v4449_v1 = vld [vmem:[%s6036_s1 + $0x8] sm:$0xff] (!%p190_p2)   ;;  %vm274_vm0 = vcmask (!%p190_p2), 261120   ;;  %vm472_vm1 = vcmask (!%p190_p2), 64512   ;;  %s4714_s29 = smov (!%p190_p2), 96  }
   0x6   : > { %193 = sbr.rel (%p190_p2) target bundleno = 3769 (0xeb9), region = 40  ;;  %p220_p3 = scmp.lt.s32.totalorder (!%p190_p2), %s3647_s22, 7  ;;  %4044 = vmatprep.subr.bf16.mxu1 (!%p190_p2), %v4448_v0  ;;  %vm663_vm2 = vcmask (!%p190_p2), 523264   ;;  %vm1075_vm3 = vcmask (!%p190_p2), 1043456  }
   0x7   : > { %4045 = vmatpush3.bf16.msra.mxu1 (!%p190_p2), %v4448_v0  ;;  %s4715_s30 = smov (!%p190_p2), 64   ;;  %s4716_s14 = smov (!%p190_p2), 88  }
   0x8   : > { %4046 = vmatprep.subr.bf16.mxu1 (!%p190_p2), %v4449_v1  ;;  %s4717_s17 = smov (!%p190_p2), 120   ;;  %s4718_s19 = smov (!%p190_p2), 56  }
   0x9   : > { %s4721_s8 = smov (!%p190_p2), 112   ;;  %s4722_s9 = smov (!%p190_p2), 48  }
   0xa   : > { %s4724_s23 = smov (!%p190_p2), 104   ;;  %s4725_s24 = smov (!%p190_p2), 40  }
   0xb   : > { %4047 = vmatpush3.bf16.msra.mxu1 (!%p190_p2), %v4449_v1 }
   0xd   : > { %s6042_s22 = smov (!%p220_p3, %s3647_s22), 7 }
   0xe   : > { %s3789_s25 = sshll.u32 %s6042_s22, 6 }
   0xf   : > { %s4778_s28 = scalar_lea.vmem %s6035_s0, %s3789_s25  ;;  %s5970_s15 = scalar_lea.vmem %s6040_s5, %s3789_s25 }
  0x10   : > { %v234_v2 = vld [vmem:[%s4778_s28] sm:$0xff]  ;;  %v235_v3 = vld [vmem:[%s4778_s28 + $0x8] sm:$0xff]  ;;  %v236_v4 = vld [vmem:[%s4778_s28 + $0x10] sm:$0xff] }
  0x11   : > { %v250_v5 = vpack.c.bf16 %v235_v3, %v234_v2  ;;  %v237_v6 = vld [vmem:[%s4778_s28 + $0x18] sm:$0xff]  ;;  %v238_v7 = vld [vmem:[%s4778_s28 + $0x20] sm:$0xff]  ;;  %v239_v8 = vld [vmem:[%s4778_s28 + $0x28] sm:$0xff] }
  0x12   : > { %v251_v9 = vpack.c.bf16 %v237_v6, %v236_v4  ;;  %v252_v10 = vpack.c.bf16 %v239_v8, %v238_v7  ;;  %v240_v11 = vld [vmem:[%s4778_s28 + $0x30] sm:$0xff]  ;;  %v241_v12 = vld [vmem:[%s4778_s28 + $0x38] sm:$0xff]  ;;  %v242_v13 = vld [vmem:[%s4778_s28 + $0x40] sm:$0xff] }
  0x13   : > { %4048 = vmatprep.mubr.msk.bf16.mxu1 %vm274_vm0, %v250_v5  ;;  %v243_v14 = vld [vmem:[%s4778_s28 + $0x48] sm:$0xff]  ;;  %v253_v15 = vpack.c.bf16 %v241_v12, %v240_v11  ;;  %v244_v17 = vld [vmem:[%s4778_s28 + $0x50] sm:$0xff]  ;;  %v245_v18 = vld [vmem:[%s4778_s28 + $0x58] sm:$0xff] }
  0x14   : > { %4049 = vmatmul.mubr.msk.bf16.vlgmr.msra.gmra.mrb[0].mxu1 %vm274_vm0, %v251_v9  ;;  %v254_v16 = vpack.c.bf16 %v243_v14, %v242_v13  ;;  %v246_v19 = vld [vmem:[%s4778_s28 + $0x60] sm:$0xff]  ;;  %v247_v20 = vld [vmem:[%s4778_s28 + $0x68] sm:$0xff]  ;;  %v255_v21 = vpack.c.bf16 %v245_v18, %v244_v17  ;;  %v248_v23 = vld [vmem:[%s4778_s28 + $0x70] sm:$0xff] }
  0x15   : > { %4052 = vmatprep.mubr.msk.bf16.mxu1 %vm274_vm0, %v252_v10  ;;  %v256_v22 = vpack.c.bf16 %v247_v20, %v246_v19  ;;  %v249_v24 = vld [vmem:[%s4778_s28 + $0x78] sm:$0xff] }
  0x16   : > { %v257_v25 = vpack.c.bf16 %v249_v24, %v248_v23 }
  0x1c   : > { %4053 = vmatmul.mubr.msk.bf16.gmra.mrb[4].mxu1 %vm274_vm0, %v253_v15 }
  0x1d   : > { %4056 = vmatprep.mubr.msk.bf16.mxu1 %vm274_vm0, %v254_v16 }
  0x24   : > { %4057 = vmatmul.mubr.msk.bf16.gmra.mrb[8].mxu1 %vm274_vm0, %v255_v21 }
  0x25   : > { %4060 = vmatprep.mubr.msk.bf16.mxu1 %vm274_vm0, %v256_v22 }
  0x2c   : > { %4061 = vmatmul.mubr.msk.bf16.gmra.mrb[12].mxu1 %vm274_vm0, %v257_v25 }
  0xe7   : > { %v4050_v26 = vpop.f32.mrb[0].mxu1 }
  0xe8   : > { %v333_v27 = vpop.f32.mrb[1].mxu1  ;;  %v398_v29 = vmul.f32 0.35355338, %v4050_v26 }
  0xe9   : > { %v4051_v28 = vpop.f32.mrb[2].mxu1  ;;  %v396_v33 = vmul.f32 0.35355338, %v333_v27 }
  0xea   : > { %v399_v30 = vmul.f32 0.35355338, %v4051_v28  ;;  %v4804_v31 = vpack.c.bf16 %v4051_v28, %v4050_v26  ;;  %v336_v32 = vpop.f32.mrb[3].mxu1  ;;  %v3855_v28 = vld [vmem:[%s6037_s2 + $0x8] sm:$0xff]  }
  0xeb   : > { %v397_v34 = vmul.f32 0.35355338, %v336_v32  ;;  %v4806_v35 = vpack.c.bf16 %v336_v32, %v333_v27 }
  0xec   : > { %v4808_v36 = vpack.c.bf16 %v399_v30, %v398_v29  ;;  %v3792_v29 = vld [vmem:[%s6037_s2] sm:$0xff]   ;;  %v3797_v30 = vunpack.c.l.bf16 %v3855_v28 }
  0xed   : > { %v4810_v37 = vpack.c.bf16 %v397_v34, %v396_v33  ;;  %464 = vrot.lane.b32.xlu0 %v4806_v35, %s4714_s29  ;;  %v3793_v32 = vunpack.c.l.bf16 %v3792_v29  ;;  %v3794_v34 = vunpack.c.h.bf16 %v3792_v29 }
  0xef   : > { %4072 = vmatprep.mubr.msk.bf16.mxu1 %vm472_vm1, %v4810_v37  ;;  %v4054_v38 = vpop.f32.mrb[4].mxu1 }
  0xf0   : > { %v402_v39 = vmul.f32 0.35355338, %v4054_v38  ;;  %v349_v40 = vpop.f32.mrb[5].mxu1 }
  0xf1   : > { %466 = vrot.lane.b32.xlu0 %v4804_v31, %s4714_s29  ;;  %v400_v41 = vmul.f32 0.35355338, %v349_v40  ;;  %v4055_v42 = vpop.f32.mrb[6].mxu1 }
  0xf2   : > { %v403_v43 = vmul.f32 0.35355338, %v4055_v42  ;;  %v4818_v44 = vpack.c.bf16 %v4055_v42, %v4054_v38  ;;  %v352_v45 = vpop.f32.mrb[7].mxu1 }
  0xf3   : > { %v401_v46 = vmul.f32 0.35355338, %v352_v45  ;;  %v4820_v47 = vpack.c.bf16 %v352_v45, %v349_v40 }
  0xf4   : > { %v4822_v48 = vpack.c.bf16 %v403_v43, %v402_v39  ;;  %v3798_v43 = vunpack.c.h.bf16 %v3855_v28 }
  0xf5   : > { %v4824_v49 = vpack.c.bf16 %v401_v46, %v400_v41  ;;  %468 = vrot.lane.b32.xlu1 %v4820_v47, %s4714_s29  ;;  %470 = vrot.lane.b32.xlu0 %v4818_v44, %s4714_s29  ;;  %v3857_v41 = vld [vmem:[%s6037_s2 + $0x18] sm:$0xff]  }
  0xf7   : > { %v4058_v50 = vpop.f32.mrb[8].mxu1 }
  0xf8   : > { %v406_v51 = vmul.f32 0.35355338, %v4058_v50  ;;  %v365_v52 = vpop.f32.mrb[9].mxu1 }
  0xf9   : > { %v404_v53 = vmul.f32 0.35355338, %v365_v52  ;;  %v4059_v54 = vpop.f32.mrb[10].mxu1 }
  0xfa   : > { %v407_v55 = vmul.f32 0.35355338, %v4059_v54  ;;  %v4830_v56 = vpack.c.bf16 %v4059_v54, %v4058_v50  ;;  %v368_v57 = vpop.f32.mrb[11].mxu1 }
  0xfb   : > { %v405_v58 = vmul.f32 0.35355338, %v368_v57  ;;  %v4832_v59 = vpack.c.bf16 %v368_v57, %v365_v52  ;;  %v3805_v52 = vunpack.c.l.bf16 %v3857_v41 }
  0xfc   : > { %v4834_v60 = vpack.c.bf16 %v407_v55, %v406_v51  ;;  %v3856_v51 = vld [vmem:[%s6037_s2 + $0x10] sm:$0xff]  }
  0xfd   : > { %v4836_v61 = vpack.c.bf16 %v405_v58, %v404_v53  ;;  %566 = vrot.lane.b32.xlu1 %v4832_v59, %s4714_s29  ;;  %v3801_v57 = vunpack.c.l.bf16 %v3856_v51  ;;  %v3806_v58 = vunpack.c.h.bf16 %v3857_v41 }
  0xff   : > { %v4062_v62 = vpop.f32.mrb[12].mxu1  ;;  %4088 = vmatprep.mubr.msk.bf16.mxu0 %vm472_vm1, %v4836_v61 }
 0x100   : > { %v410_v63 = vmul.f32 0.35355338, %v4062_v62  ;;  %v381_v0 = vpop.f32.mrb[13].mxu1 }
 0x101   : > { %568 = vrot.lane.b32.xlu1 %v4830_v56, %s4714_s29  ;;  %v408_v1 = vmul.f32 0.35355338, %v381_v0  ;;  %v4063_v2 = vpop.f32.mrb[14].mxu1 }
 0x102   : > { %v411_v3 = vmul.f32 0.35355338, %v4063_v2  ;;  %v4844_v4 = vpack.c.bf16 %v4063_v2, %v4062_v62  ;;  %v384_v5 = vpop.f32.mrb[15].mxu1  ;;  %v3802_v2 = vunpack.c.h.bf16 %v3856_v51 }
 0x103   : > { %v409_v6 = vmul.f32 0.35355338, %v384_v5  ;;  %v4846_v7 = vpack.c.bf16 %v384_v5, %v381_v0 }
 0x104   : > { %v4848_v8 = vpack.c.bf16 %v411_v3, %v410_v63 }
 0x105   : > { %572 = vrot.lane.b32.xlu1 %v4844_v4, %s4714_s29  ;;  %v4852_v9 = vpack.c.bf16 %v409_v6, %v408_v1  ;;  %570 = vrot.lane.b32.xlu0 %v4846_v7, %s4714_s29 }
 0x109   : > { %848 = vrot.lane.b32.xlu1 %v4806_v35, %s4715_s30 }
 0x10d   : > { %850 = vrot.lane.b32.xlu1 %v4804_v31, %s4715_s30 }
 0x15f   : > { %v465_v10 = vpop.permute.xlu0 %464 }
 0x160   : > { %4392 = vmatprep.subr.msk.bf16.mxu1 %vm472_vm1, %v465_v10  ;;  %v486_v11 = vsel %vm472_vm1, %v465_v10, 0 }
 0x161   : > { %4065 = vmatpush3.bf16.xpose.msra.mxu1 %v486_v11 }
 0x163   : > { %v467_v12 = vpop.permute.xlu0 %466 }
 0x164   : > { %4393 = vmatprep.subr.msk.bf16.mxu1 %vm472_vm1, %v467_v12  ;;  %v489_v14 = vsel %vm472_vm1, %v467_v12, 0 }
 0x167   : > { %v469_v13 = vpop.permute.xlu1 %468  ;;  %v471_v18 = vpop.permute.xlu0 %470 }
 0x168   : > { %v492_v16 = vsel %vm472_vm1, %v469_v13, 0  ;;  %v495_v22 = vsel %vm472_vm1, %v471_v18, 0 }
 0x169   : > { %4067 = vmatpush3.bf16.xpose.msra.mxu1 %v489_v14 }
 0x16a   : > { %4394 = vmatprep.subr.msk.bf16.mxu1 %vm472_vm1, %v469_v13 }
 0x16f   : > { %v567_v15 = vpop.permute.xlu1 %566 }
 0x170   : > { %4396 = vmatprep.subr.msk.bf16.mxu0 %vm472_vm1, %v567_v15  ;;  %v587_v17 = vsel %vm472_vm1, %v567_v15, 0 }
 0x171   : > { %4069 = vmatpush3.bf16.xpose.msra.mxu1 %v492_v16  ;;  %4081 = vmatpush3.bf16.xpose.msra.mxu0 %v587_v17 }
 0x172   : > { %4395 = vmatprep.subr.msk.bf16.mxu1 %vm472_vm1, %v471_v18 }
 0x173   : > { %v569_v19 = vpop.permute.xlu1 %568 }
 0x174   : > { %4397 = vmatprep.subr.msk.bf16.mxu0 %vm472_vm1, %v569_v19  ;;  %v590_v23 = vsel %vm472_vm1, %v569_v19, 0 }
 0x177   : > { %v573_v20 = vpop.permute.xlu1 %572  ;;  %v571_v21 = vpop.permute.xlu0 %570 }
 0x178   : > { %v593_v25 = vsel %vm472_vm1, %v571_v21, 0  ;;  %v596_v27 = vsel %vm472_vm1, %v573_v20, 0 }
 0x179   : > { %4071 = vmatpush3.bf16.xpose.msra.mxu1 %v495_v22  ;;  %4083 = vmatpush3.bf16.xpose.msra.mxu0 %v590_v23 }
 0x17a   : > { %4398 = vmatprep.subr.msk.bf16.mxu0 %vm472_vm1, %v571_v21 }
 0x17b   : > { %v849_v24 = vpop.permute.xlu1 %848 }
 0x17c   : > { %4096 = vmatprep.subr.bf16.mxu1 %v849_v24 }
 0x17f   : > { %v851_v26 = vpop.permute.xlu1 %850 }
 0x180   : > { %4073 = vmatmul.mubr.msk.bf16.vlgmr.msra.gmra.mrb[16].mxu1 %vm472_vm1, %v4808_v36 }
 0x181   : > { %4076 = vmatprep.mubr.msk.bf16.mxu1 %vm472_vm1, %v4824_v49  ;;  %4085 = vmatpush3.bf16.xpose.msra.mxu0 %v593_v25 }
 0x182   : > { %4097 = vmatpush3.bf16.msra.mxu1 %v849_v24  ;;  %4399 = vmatprep.subr.msk.bf16.mxu0 %vm472_vm1, %v573_v20 }
 0x183   : > { %4098 = vmatprep.subr.bf16.mxu1 %v851_v26 }
 0x186   : > { %4099 = vmatpush3.bf16.msra.mxu1 %v851_v26 }
 0x188   : > { %4077 = vmatmul.mubr.msk.bf16.gmra.mrb[20].mxu1 %vm472_vm1, %v4822_v48 }
 0x189   : > { %4087 = vmatpush3.bf16.xpose.msra.mxu0 %v596_v27 }
 0x190   : > { %4089 = vmatmul.mubr.msk.bf16.vlgmr.msra.gmra.mrb[0].mxu0 %vm472_vm1, %v4834_v60 }
 0x191   : > { %4092 = vmatprep.mubr.msk.bf16.mxu0 %vm472_vm1, %v4852_v9 }
 0x198   : > { %4093 = vmatmul.mubr.msk.bf16.gmra.mrb[4].mxu0 %vm472_vm1, %v4848_v8 }
 0x253   : > { %v4074_v33 = vpop.f32.mrb[16].mxu1 }
 0x254   : > { %v4894_v38 = vadd.f32 %v4074_v33, %v3797_v30  ;;  %v531_v39 = vpop.f32.mrb[17].mxu1 }
 0x255   : > { %v4075_v40 = vpop.f32.mrb[18].mxu1  ;;  %v4899_v42 = vadd.f32 %v3793_v32, %v531_v39 }
 0x256   : > { %v534_v45 = vpop.f32.mrb[19].mxu1  ;;  %v670_v46 = vsel %vm663_vm2, %v4894_v38, -inf  ;;  %v4910_v54 = vadd.f32 %v4075_v40, %v3798_v43 }
 0x257   : > { %v4903_v50 = vadd.f32 %v3794_v34, %v534_v45  ;;  %671 = vmax.xlane.f32.xlu0 %v670_v46  ;;  %v664_v55 = vsel %vm663_vm2, %v4899_v42, -inf }
 0x258   : > { %v673_v11 = vsel %vm663_vm2, %v4910_v54, -inf }
 0x259   : > { %v667_v53 = vsel %vm663_vm2, %v4903_v50, -inf }
 0x25a   : > { %668 = vmax.xlane.f32.xlu1 %v667_v53 }
 0x25b   : > { %v4078_v62 = vpop.f32.mrb[20].mxu1  ;;  %665 = vmax.xlane.f32.xlu0 %v664_v55 }
 0x25c   : > { %v4914_v63 = vadd.f32 %v4078_v62, %v3805_v52  ;;  %v547_v0 = vpop.f32.mrb[21].mxu1 }
 0x25d   : > { %v4079_v1 = vpop.f32.mrb[22].mxu1  ;;  %v4916_v3 = vadd.f32 %v3801_v57, %v547_v0 }
 0x25e   : > { %v4918_v5 = vadd.f32 %v4079_v1, %v3806_v58  ;;  %v550_v6 = vpop.f32.mrb[23].mxu1  ;;  %v682_v10 = vsel %vm663_vm2, %v4914_v63, -inf }
 0x25f   : > { %683 = vmax.xlane.f32.xlu1 %v682_v10  ;;  %674 = vmax.xlane.f32.xlu0 %v673_v11  ;;  %v4924_v12 = vadd.f32 %v3802_v2, %v550_v6  ;;  %v676_v13 = vsel %vm663_vm2, %v4916_v3, -inf }
 0x260   : > { %v685_v14 = vsel %vm663_vm2, %v4918_v5, -inf }
 0x261   : > { %v679_v22 = vsel %vm663_vm2, %v4924_v12, -inf }
 0x263   : > { %677 = vmax.xlane.f32.xlu1 %v676_v13  ;;  %686 = vmax.xlane.f32.xlu0 %v685_v14  ;;  %v4090_v15 = vpop.f32.mrb[0].mxu0 }
 0x264   : > { %v4930_v16 = vadd.f32 %v4090_v15, %v3797_v30  ;;  %v632_v17 = vpop.f32.mrb[1].mxu0 }
 0x265   : > { %v4091_v18 = vpop.f32.mrb[2].mxu0  ;;  %v4932_v19 = vadd.f32 %v3793_v32, %v632_v17 }
 0x266   : > { %v4934_v20 = vadd.f32 %v4091_v18, %v3798_v43  ;;  %v635_v21 = vpop.f32.mrb[3].mxu0  ;;  %v694_v23 = vsel %vm663_vm2, %v4930_v16, -inf }
 0x267   : > { %680 = vmax.xlane.f32.xlu0 %v679_v22  ;;  %695 = vmax.xlane.f32.xlu1 %v694_v23  ;;  %v4940_v24 = vadd.f32 %v3794_v34, %v635_v21  ;;  %v688_v26 = vsel %vm663_vm2, %v4932_v19, -inf }
 0x268   : > { %v697_v25 = vsel %vm663_vm2, %v4934_v20, -inf }
 0x269   : > { %v691_v34 = vsel %vm663_vm2, %v4940_v24, -inf }
 0x26b   : > { %698 = vmax.xlane.f32.xlu0 %v697_v25  ;;  %689 = vmax.xlane.f32.xlu1 %v688_v26  ;;  %v4094_v27 = vpop.f32.mrb[4].mxu0 }
 0x26c   : > { %v4946_v28 = vadd.f32 %v4094_v27, %v3805_v52  ;;  %v648_v29 = vpop.f32.mrb[5].mxu0 }
 0x26d   : > { %v4095_v30 = vpop.f32.mrb[6].mxu0  ;;  %v4948_v32 = vadd.f32 %v3801_v57, %v648_v29 }
 0x26e   : > { %v4950_v33 = vadd.f32 %v4095_v30, %v3806_v58  ;;  %v651_v39 = vpop.f32.mrb[7].mxu0  ;;  %v706_v40 = vsel %vm663_vm2, %v4946_v28, -inf }
 0x26f   : > { %692 = vmax.xlane.f32.xlu0 %v691_v34  ;;  %707 = vmax.xlane.f32.xlu1 %v706_v40  ;;  %v4956_v41 = vadd.f32 %v3802_v2, %v651_v39  ;;  %v700_v45 = vsel %vm663_vm2, %v4948_v32, -inf }
 0x270   : > { %v709_v43 = vsel %vm663_vm2, %v4950_v33, -inf }
 0x271   : > { %v703_v46 = vsel %vm663_vm2, %v4956_v41, -inf }
 0x273   : > { %710 = vmax.xlane.f32.xlu0 %v709_v43  ;;  %701 = vmax.xlane.f32.xlu1 %v700_v45 }
 0x277   : > { %704 = vmax.xlane.f32.xlu0 %v703_v46 }
 0x284   : > { %854 = vrot.lane.b32.xlu1 %v4818_v44, %s4715_s30 }
 0x28d   : > { %852 = vrot.lane.b32.xlu0 %v4820_v47, %s4715_s30 }
 0x2e4   : > { %v672_v51 = vpop.xlane.xlu0 %671 }
 0x2e5   : > { %v714_v52 = vsub.f32 %v4894_v38, %v672_v51 }
 0x2e7   : > { %v732_v53 = vmul.f32 1.442695, %v714_v52  ;;  %v669_v55 = vpop.xlane.xlu1 %668 }
 0x2e8   : > { %v666_v57 = vpop.xlane.xlu0 %665  ;;  %v713_v0 = vsub.f32 %v4903_v50, %v669_v55 }
 0x2e9   : > { %4450 = vpow2.f32 %v732_v53  ;;  %v712_v58 = vsub.f32 %v4899_v42, %v666_v57 }
 0x2ea   : > { %v730_v14 = vmul.f32 1.442695, %v713_v0 }
 0x2eb   : > { %v728_v62 = vmul.f32 1.442695, %v712_v58 }
 0x2ec   : > { %v684_v1 = vpop.xlane.xlu1 %683  ;;  %v675_v2 = vpop.xlane.xlu0 %674 }
 0x2ed   : > { %4452 = vpow2.f32 %v728_v62  ;;  %v718_v6 = vsub.f32 %v4914_v63, %v684_v1  ;;  %v715_v10 = vsub.f32 %v4910_v54, %v675_v2 }
 0x2ef   : > { %v740_v11 = vmul.f32 1.442695, %v718_v6  ;;  %v734_v13 = vmul.f32 1.442695, %v715_v10 }
 0x2f0   : > { %v678_v38 = vpop.xlane.xlu1 %677  ;;  %v687_v15 = vpop.xlane.xlu0 %686 }
 0x2f1   : > { %4454 = vpow2.f32 %v740_v11  ;;  %v716_v17 = vsub.f32 %v4916_v3, %v678_v38  ;;  %v719_v42 = vsub.f32 %v4918_v5, %v687_v15 }
 0x2f2   : > { %4456 = vpow2.f32 %v734_v13 }
 0x2f3   : > { %v4975_v18 = vpop.eup %4450  ;;  %v736_v50 = vmul.f32 1.442695, %v716_v17  ;;  %4458 = vpow2.f32 %v730_v14  ;;  %v742_v21 = vmul.f32 1.442695, %v719_v42 }
 0x2f4   : > { %v696_v22 = vpop.xlane.xlu1 %695  ;;  %v681_v63 = vpop.xlane.xlu0 %680  ;;  %v766_v54 = vsel %vm663_vm2, %v4975_v18, 0.0 }
 0x2f5   : > { %4460 = vpow2.f32 %v736_v50  ;;  %v717_v23 = vsub.f32 %v4924_v12, %v681_v63  ;;  %767 = vadd.xlane.f32.xlu1 %v766_v54  ;;  %v722_v3 = vsub.f32 %v4930_v16, %v696_v22 }
 0x2f6   : > { %4462 = vpow2.f32 %v742_v21 }
 0x2f7   : > { %v4980_v25 = vpop.eup %4452  ;;  %v738_v5 = vmul.f32 1.442695, %v717_v23  ;;  %v748_v34 = vmul.f32 1.442695, %v722_v3 }
 0x2f8   : > { %v690_v26 = vpop.xlane.xlu1 %689  ;;  %v699_v27 = vpop.xlane.xlu0 %698  ;;  %v760_v29 = vsel %vm663_vm2, %v4980_v25, 0.0 }
 0x2f9   : > { %761 = vadd.xlane.f32.xlu1 %v760_v29  ;;  %4464 = vpow2.f32 %v738_v5  ;;  %v720_v12 = vsub.f32 %v4932_v19, %v690_v26  ;;  %v723_v53 = vsub.f32 %v4934_v20, %v699_v27 }
 0x2fa   : > { %4466 = vpow2.f32 %v748_v34 }
 0x2fb   : > { %v4985_v30 = vpop.eup %4454  ;;  %v744_v19 = vmul.f32 1.442695, %v720_v12  ;;  %v750_v20 = vmul.f32 1.442695, %v723_v53 }
 0x2fc   : > { %v4987_v39 = vpop.eup %4456  ;;  %v693_v40 = vpop.xlane.xlu0 %692  ;;  %v778_v16 = vsel %vm663_vm2, %v4985_v30, 0.0 }
 0x2fd   : > { %v708_v43 = vpop.xlane.xlu1 %707  ;;  %v769_v46 = vsel %vm663_vm2, %v4987_v39, 0.0  ;;  %779 = vadd.xlane.f32.xlu1 %v778_v16  ;;  %v4995_v51 = vpop.eup %4458  ;;  %v721_v10 = vsub.f32 %v4940_v24, %v693_v40  ;;  %v1050_v16 = vld [vmem:[%s6038_s3] sm:$0xf] }
 0x2fe   : > { %v726_v45 = vsub.f32 %v4946_v28, %v708_v43  ;;  %770 = vadd.xlane.f32.xlu0 %v769_v46  ;;  %v763_v1 = vsel %vm663_vm2, %v4995_v51, 0.0 }
 0x2ff   : > { %v4997_v52 = vpop.eup %4460 }
 0x300   : > { %v756_v55 = vmul.f32 1.442695, %v726_v45  ;;  %v711_v57 = vpop.xlane.xlu0 %710  ;;  %v772_v62 = vsel %vm663_vm2, %v4997_v52, 0.0  ;;  %v5006_v2 = vpop.eup %4462 }
 0x301   : > { %v702_v58 = vpop.xlane.xlu1 %701  ;;  %v727_v28 = vsub.f32 %v4950_v33, %v711_v57  ;;  %773 = vadd.xlane.f32.xlu1 %v772_v62  ;;  %v781_v33 = vsel %vm663_vm2, %v5006_v2, 0.0 }
 0x302   : > { %v724_v0 = vsub.f32 %v4948_v32, %v702_v58  ;;  %4468 = vpow2.f32 %v756_v55  ;;  %764 = vadd.xlane.f32.xlu0 %v763_v1  ;;  %v746_v32 = vmul.f32 1.442695, %v721_v10 }
 0x303   : > { %4470 = vpow2.f32 %v744_v19  ;;  %v758_v11 = vmul.f32 1.442695, %v727_v28  ;;  %v5011_v14 = vpop.eup %4464 }
 0x304   : > { %v752_v6 = vmul.f32 1.442695, %v724_v0  ;;  %v705_v13 = vpop.xlane.xlu0 %704  ;;  %v775_v17 = vsel %vm663_vm2, %v5011_v14, 0.0  ;;  %v5016_v24 = vpop.eup %4466 }
 0x305   : > { %v725_v38 = vsub.f32 %v4956_v41, %v705_v13  ;;  %v855_v42 = vpop.permute.xlu1 %854  ;;  %v790_v22 = vsel %vm663_vm2, %v5016_v24, 0.0 }
 0x306   : > { %4472 = vpow2.f32 %v752_v6  ;;  %782 = vadd.xlane.f32.xlu0 %v781_v33 }
 0x307   : > { %4474 = vpow2.f32 %v750_v20  ;;  %v754_v21 = vmul.f32 1.442695, %v725_v38 }
 0x308   : > { %4476 = vpow2.f32 %v758_v11  ;;  %v853_v15 = vpop.permute.xlu0 %852 }
 0x309   : > { %4100 = vmatprep.subr.bf16.mxu1 %v853_v15  ;;  %4478 = vpow2.f32 %v746_v32 }
 0x30a   : > { %776 = vadd.xlane.f32.xlu0 %v775_v17  ;;  %4101 = vmatpush3.bf16.msra.mxu1 %v853_v15  ;;  %4480 = vpow2.f32 %v754_v21  ;;  %v1077_v17 = vsel %vm1075_vm3, %v1050_v16, 0 }
 0x30b   : > { %4102 = vmatprep.subr.bf16.mxu1 %v855_v42 }
 0x30c   : > { %v5018_v50 = vpop.eup %4468 }
 0x30d   : > { %v802_v41 = vsel %vm663_vm2, %v5018_v50, 0.0  ;;  %v5024_v63 = vpop.eup %4470 }
 0x30e   : > { %791 = vadd.xlane.f32.xlu0 %v790_v22  ;;  %803 = vadd.xlane.f32.xlu1 %v802_v41  ;;  %v784_v3 = vsel %vm663_vm2, %v5024_v63, 0.0 }
 0x30f   : > { %4103 = vmatpush3.bf16.msra.mxu1 %v855_v42 }
 0x310   : > { %v5026_v54 = vpop.eup %4472  ;;  %4400 = vmatprep.subr.msk.bf16.mxu1 %vm1075_vm3, %v1050_v16 }
 0x311   : > { %v5028_v23 = vpop.eup %4474  ;;  %v796_v5 = vsel %vm663_vm2, %v5026_v54, 0.0 }
 0x312   : > { %v5034_v26 = vpop.eup %4476  ;;  %785 = vadd.xlane.f32.xlu0 %v784_v3  ;;  %797 = vadd.xlane.f32.xlu1 %v796_v5  ;;  %v793_v27 = vsel %vm663_vm2, %v5028_v23, 0.0 }
 0x313   : > { %v805_v29 = vsel %vm663_vm2, %v5034_v26, 0.0  ;;  %v5040_v34 = vpop.eup %4478 }
 0x314   : > { %v787_v12 = vsel %vm663_vm2, %v5040_v34, 0.0  ;;  %v5044_v40 = vpop.eup %4480 }
 0x315   : > { %v799_v43 = vsel %vm663_vm2, %v5044_v40, 0.0 }
 0x316   : > { %794 = vadd.xlane.f32.xlu0 %v793_v27  ;;  %806 = vadd.xlane.f32.xlu1 %v805_v29 }
 0x31a   : > { %788 = vadd.xlane.f32.xlu0 %v787_v12 }
 0x31e   : > { %800 = vadd.xlane.f32.xlu0 %v799_v43 }
 0x327   : > { %939 = vrot.lane.b32.xlu1 %v4830_v56, %s4715_s30 }
 0x32b   : > { %941 = vrot.lane.b32.xlu1 %v4846_v7, %s4715_s30 }
 0x32f   : > { %943 = vrot.lane.b32.xlu1 %v4844_v4, %s4715_s30 }
 0x333   : > { %1239 = vrot.lane.b32.xlu1 %v4804_v31, %s4716_s14 }
 0x334   : > { %937 = vrot.lane.b32.xlu0 %v4832_v59, %s4715_s30  ;;  %s4720_s30 = smov 80  }
 0x337   : > { %1346 = vrot.lane.b32.xlu1 %v4832_v59, %s4716_s14 }
 0x338   : > { %1237 = vrot.lane.b32.xlu0 %v4806_v35, %s4716_s14 }
 0x33b   : > { %1348 = vrot.lane.b32.xlu1 %v4830_v56, %s4716_s14 }
 0x33c   : > { %1241 = vrot.lane.b32.xlu0 %v4820_v47, %s4716_s14 }
 0x33f   : > { %1231 = vrot.lane.b32.xlu1 %v4808_v36, %s4717_s17 }
 0x340   : > { %1243 = vrot.lane.b32.xlu0 %v4818_v44, %s4716_s14 }
 0x343   : > { %1233 = vrot.lane.b32.xlu1 %v4824_v49, %s4717_s17 }
 0x344   : > { %1229 = vrot.lane.b32.xlu0 %v4810_v37, %s4717_s17 }
 0x347   : > { %1352 = vrot.lane.b32.xlu1 %v4844_v4, %s4716_s14 }
 0x348   : > { %1350 = vrot.lane.b32.xlu0 %v4846_v7, %s4716_s14 }
 0x34b   : > { %1340 = vrot.lane.b32.xlu1 %v4834_v60, %s4717_s17 }
 0x34c   : > { %1235 = vrot.lane.b32.xlu0 %v4822_v48, %s4717_s17 }
 0x34f   : > { %1344 = vrot.lane.b32.xlu1 %v4848_v8, %s4717_s17 }
 0x350   : > { %1338 = vrot.lane.b32.xlu0 %v4836_v61, %s4717_s17 }
 0x353   : > { %1627 = vrot.lane.b32.xlu1 %v4806_v35, %s4718_s19 }
 0x354   : > { %1342 = vrot.lane.b32.xlu0 %v4852_v9, %s4717_s17 }
 0x382   : > { %v768_v45 = vpop.xlane.xlu1 %767 }
 0x386   : > { %v762_v46 = vpop.xlane.xlu1 %761 }
 0x38a   : > { %v780_v55 = vpop.xlane.xlu1 %779 }
 0x38b   : > { %v771_v53 = vpop.xlane.xlu0 %770 }
 0x38c   : > { %4482 = vrcp.f32 %v771_v53 }
 0x38d   : > { %4484 = vrcp.f32 %v762_v46 }
 0x38e   : > { %4486 = vrcp.f32 %v768_v45  ;;  %v774_v57 = vpop.xlane.xlu1 %773 }
 0x38f   : > { %v765_v19 = vpop.xlane.xlu0 %764 }
 0x390   : > { %4488 = vrcp.f32 %v765_v19 }
 0x393   : > { %v783_v58 = vpop.xlane.xlu0 %782 }
 0x394   : > { %4490 = vrcp.f32 %v783_v58 }
 0x395   : > { %4492 = vrcp.f32 %v774_v57 }
 0x396   : > { %v4483_v62 = vpop.eup %4482  ;;  %4494 = vrcp.f32 %v780_v55 }
 0x397   : > { %v777_v28 = vpop.xlane.xlu0 %776  ;;  %v4485_v0 = vpop.eup %4484  ;;  %v827_v6 = vmul.f32 %v4483_v62, %v4987_v39 }
 0x398   : > { %4496 = vrcp.f32 %v777_v28  ;;  %v4487_v1 = vpop.eup %4486  ;;  %v824_v13 = vmul.f32 %v4485_v0, %v4980_v25 }
 0x399   : > { %v826_v32 = vmul.f32 %v4487_v1, %v4975_v18 }
 0x39a   : > { %v4489_v20 = vpop.eup %4488 }
 0x39b   : > { %v792_v10 = vpop.xlane.xlu0 %791  ;;  %v804_v11 = vpop.xlane.xlu1 %803  ;;  %v825_v33 = vmul.f32 %v4489_v20, %v4995_v51  ;;  %v841_v15 = vpack.c.bf16 %v827_v6, %v826_v32 }
 0x39d   : > { %v840_v38 = vpack.c.bf16 %v825_v33, %v824_v13 }
 0x39e   : > { %v4491_v42 = vpop.eup %4490 }
 0x39f   : > { %v786_v21 = vpop.xlane.xlu0 %785  ;;  %4104 = vmatprep.mubr.msk.bf16.mxu1 %vm663_vm2, %v840_v38  ;;  %v798_v22 = vpop.xlane.xlu1 %797  ;;  %v831_v25 = vmul.f32 %v4491_v42, %v5006_v2 }
 0x3a0   : > { %v4493_v41 = vpop.eup %4492  ;;  %4105 = vmatmul.mubr.msk.bf16.vlgmr.msra.gmra.mrb[24].mxu1 %vm663_vm2, %v841_v15  ;;  %4498 = vrcp.f32 %v786_v21 }
 0x3a1   : > { %v4495_v39 = vpop.eup %4494  ;;  %4129 = vmatpush3.bf16.msra.mxu1 %v1077_v17  ;;  %v828_v18 = vmul.f32 %v4493_v41, %v4997_v52 }
 0x3a2   : > { %v4497_v3 = vpop.eup %4496  ;;  %v830_v29 = vmul.f32 %v4495_v39, %v4985_v30 }
 0x3a3   : > { %v795_v51 = vpop.xlane.xlu0 %794  ;;  %v807_v5 = vpop.xlane.xlu1 %806  ;;  %v829_v27 = vmul.f32 %v4497_v3, %v5011_v14 }
 0x3a4   : > { %v843_v43 = vpack.c.bf16 %v831_v25, %v830_v29 }
 0x3a5   : > { %v842_v12 = vpack.c.bf16 %v829_v27, %v828_v18 }
 0x3a7   : > { %v789_v16 = vpop.xlane.xlu0 %788  ;;  %4108 = vmatprep.mubr.msk.bf16.mxu1 %vm663_vm2, %v842_v12  ;;  %v940_v45 = vpop.permute.xlu1 %939 }
 0x3a8   : > { %4500 = vrcp.f32 %v789_v16  ;;  %4109 = vmatmul.mubr.msk.bf16.gmra.mrb[28].mxu1 %vm663_vm2, %v843_v43 }
 0x3a9   : > { %4502 = vrcp.f32 %v795_v51 }
 0x3aa   : > { %v4499_v14 = vpop.eup %4498 }
 0x3ab   : > { %v801_v46 = vpop.xlane.xlu0 %800  ;;  %v942_v2 = vpop.permute.xlu1 %941  ;;  %v832_v19 = vmul.f32 %v4499_v14, %v5024_v63 }
 0x3ac   : > { %4504 = vrcp.f32 %v801_v46 }
 0x3ad   : > { %4506 = vrcp.f32 %v792_v10 }
 0x3ae   : > { %4508 = vrcp.f32 %v798_v22 }
 0x3af   : > { %v938_v52 = vpop.permute.xlu0 %937  ;;  %v944_v53 = vpop.permute.xlu1 %943  ;;  %4510 = vrcp.f32 %v807_v5 }
 0x3b0   : > { %4112 = vmatprep.subr.bf16.mxu0 %v938_v52  ;;  %4512 = vrcp.f32 %v804_v11 }
 0x3b1   : > { %4113 = vmatpush3.bf16.msra.mxu0 %v938_v52 }
 0x3b2   : > { %v4501_v30 = vpop.eup %4500  ;;  %4114 = vmatprep.subr.bf16.mxu0 %v940_v45 }
 0x3b3   : > { %v1240_v55 = vpop.permute.xlu1 %1239  ;;  %v833_v57 = vmul.f32 %v4501_v30, %v5040_v34  ;;  %v1238_v62 = vpop.permute.xlu0 %1237 }
 0x3b4   : > { %v4503_v28 = vpop.eup %4502  ;;  %v1258_v21 = vsel %vm472_vm1, %v1238_v62, 0  ;;  %v1261_v3 = vsel %vm472_vm1, %v1240_v55, 0 }
 0x3b5   : > { %4115 = vmatpush3.bf16.msra.mxu0 %v940_v45  ;;  %v844_v58 = vpack.c.bf16 %v833_v57, %v832_v19  ;;  %v835_v63 = vmul.f32 %v4503_v28, %v5028_v23 }
 0x3b6   : > { %4116 = vmatprep.subr.bf16.mxu0 %v942_v2  ;;  %v4505_v1 = vpop.eup %4504 }
 0x3b7   : > { %4120 = vmatprep.mubr.msk.bf16.mxu0 %vm663_vm2, %v844_v58  ;;  %v1347_v0 = vpop.permute.xlu1 %1346  ;;  %v4507_v20 = vpop.eup %4506  ;;  %v837_v10 = vmul.f32 %v4505_v1, %v5044_v40 }
 0x3b8   : > { %4405 = vmatprep.subr.msk.bf16.mxu1 %vm472_vm1, %v1347_v0  ;;  %v4509_v6 = vpop.eup %4508  ;;  %v834_v13 = vmul.f32 %v4507_v20, %v5016_v24  ;;  %v1242_v33 = vpop.permute.xlu0 %1241 }
 0x3b9   : > { %4117 = vmatpush3.bf16.msra.mxu0 %v942_v2  ;;  %v836_v11 = vmul.f32 %v4509_v6, %v5026_v54  ;;  %v4511_v38 = vpop.eup %4510  ;;  %v1367_v2 = vsel %vm472_vm1, %v1347_v0, 0 }
 0x3ba   : > { %4118 = vmatprep.subr.bf16.mxu0 %v944_v53  ;;  %v845_v32 = vpack.c.bf16 %v835_v63, %v834_v13  ;;  %v4513_v23 = vpop.eup %4512  ;;  %v839_v40 = vmul.f32 %v4511_v38, %v5034_v26 }
 0x3bb   : > { %v5096_v34 = vpop.permute.xlu1 %1348  ;;  %v846_v15 = vpack.c.bf16 %v837_v10, %v836_v11  ;;  %v838_v24 = vmul.f32 %v4513_v23, %v5018_v50  ;;  %v1264_v50 = vsel %vm472_vm1, %v1242_v33, 0  ;;  %v5147_v23 = vld [vmem:[%s6037_s2 + $0x20] sm:$0xff]  }
 0x3bc   : > { %v1244_v42 = vpop.permute.xlu0 %1243  ;;  %v1370_v57 = vsel %vm472_vm1, %v5096_v34, 0 }
 0x3bd   : > { %4119 = vmatpush3.bf16.msra.mxu0 %v944_v53  ;;  %v847_v54 = vpack.c.bf16 %v839_v40, %v838_v24  ;;  %v1267_v51 = vsel %vm472_vm1, %v1244_v42, 0  ;;  %v3809_v40 = vunpack.c.l.bf16 %v5147_v23 }
 0x3be   : > { %4401 = vmatprep.subr.msk.bf16.mxu0 %vm472_vm1, %v1238_v62 }
 0x3bf   : > { %v1232_v17 = vpop.permute.xlu1 %1231 }
 0x3c0   : > { %4121 = vmatmul.mubr.msk.bf16.vlgmr.msra.gmra.mrb[8].mxu0 %vm663_vm2, %v845_v32  ;;  %v1230_v41 = vpop.permute.xlu0 %1229 }
 0x3c1   : > { %4124 = vmatprep.mubr.msk.bf16.mxu0 %vm663_vm2, %v846_v15 }
 0x3c3   : > { %v1234_v22 = vpop.permute.xlu1 %1233 }
 0x3c4   : > { %v1351_v18 = vpop.permute.xlu0 %1350 }
 0x3c5   : > { %v1373_v58 = vsel %vm472_vm1, %v1351_v18, 0 }
 0x3c6   : > { %4147 = vmatpush3.bf16.xpose.msra.mxu0 %v1258_v21  ;;  %v3810_v21 = vunpack.c.h.bf16 %v5147_v23 }
 0x3c7   : > { %4402 = vmatprep.subr.msk.bf16.mxu0 %vm472_vm1, %v1240_v55  ;;  %v1353_v39 = vpop.permute.xlu1 %1352 }
 0x3c8   : > { %4125 = vmatmul.mubr.msk.bf16.gmra.mrb[12].mxu0 %vm663_vm2, %v847_v54  ;;  %v1236_v27 = vpop.permute.xlu0 %1235  ;;  %v1376_v62 = vsel %vm472_vm1, %v1353_v39, 0 }
 0x3c9   : > { %4154 = vmatprep.mubr.msk.bf16.mxu0 %vm472_vm1, %v1230_v41 }
 0x3cb   : > { %v1341_v26 = vpop.permute.xlu1 %1340 }
 0x3cc   : > { %v1339_v38 = vpop.permute.xlu0 %1338 }
 0x3ce   : > { %4149 = vmatpush3.bf16.xpose.msra.mxu0 %v1261_v3 }
 0x3cf   : > { %4403 = vmatprep.subr.msk.bf16.mxu0 %vm472_vm1, %v1242_v33  ;;  %v1345_v25 = vpop.permute.xlu1 %1344 }
 0x3d0   : > { %v1343_v15 = vpop.permute.xlu0 %1342 }
 0x3d3   : > { %v1628_v5 = vpop.permute.xlu1 %1627 }
 0x3d6   : > { %4151 = vmatpush3.bf16.xpose.msra.mxu0 %v1264_v50 }
 0x3d7   : > { %4404 = vmatprep.subr.msk.bf16.mxu0 %vm472_vm1, %v1244_v42 }
 0x3de   : > { %4153 = vmatpush3.bf16.xpose.msra.mxu0 %v1267_v51 }
 0x3df   : > { %4178 = vmatprep.subr.bf16.mxu0 %v1628_v5 }
 0x3e5   : > { %4155 = vmatmul.mubr.msk.bf16.vlgmr.msra.gmra.mrb[16].mxu0 %vm472_vm1, %v1232_v17  ;;  %v5142_v17 = vld [vmem:[%s6037_s2 + $0x28] sm:$0xff]  }
 0x3e6   : > { %4158 = vmatprep.mubr.msk.bf16.mxu0 %vm472_vm1, %v1234_v22  ;;  %4179 = vmatpush3.bf16.msra.mxu0 %v1628_v5  ;;  %v3813_v42 = vunpack.c.l.bf16 %v5142_v17  ;;  %v5172_v5 = vld [vmem:[%s6037_s2 + $0x30] sm:$0xff]  }
 0x3ed   : > { %4159 = vmatmul.mubr.msk.bf16.gmra.mrb[20].mxu0 %vm472_vm1, %v1236_v27 }
 0x473   : > { %v4106_v29 = vpop.f32.mrb[24].mxu1 }
 0x474   : > { %v906_v12 = vpop.f32.mrb[25].mxu1 }
 0x475   : > { %v4107_v43 = vpop.f32.mrb[26].mxu1 }
 0x476   : > { %v1043_v16 = vpack.c.bf16 %v4107_v43, %v4106_v29  ;;  %v909_v45 = vpop.f32.mrb[27].mxu1  ;;  %v3817_v43 = vunpack.c.l.bf16 %v5172_v5 }
 0x477   : > { %v1042_v46 = vpack.c.bf16 %v909_v45, %v906_v12 }
 0x479   : > { %4130 = vmatprep.mubr.msk.bf16.mxu1 %vm472_vm1, %v1042_v46 }
 0x47a   : > { %4131 = vmatmul.mubr.msk.bf16.vlgmr.msra.gmra.mrb[32].mxu1 %vm472_vm1, %v1043_v16 }
 0x47b   : > { %4163 = vmatpush3.bf16.xpose.msra.mxu1 %v1367_v2  ;;  %v4110_v52 = vpop.f32.mrb[28].mxu1 }
 0x47c   : > { %4406 = vmatprep.subr.msk.bf16.mxu1 %vm472_vm1, %v5096_v34  ;;  %v922_v53 = vpop.f32.mrb[29].mxu1 }
 0x47d   : > { %v4111_v14 = vpop.f32.mrb[30].mxu1 }
 0x47e   : > { %v1045_v30 = vpack.c.bf16 %v4111_v14, %v4110_v52  ;;  %v925_v55 = vpop.f32.mrb[31].mxu1 }
 0x47f   : > { %v1044_v19 = vpack.c.bf16 %v925_v55, %v922_v53  ;;  %v3818_v53 = vunpack.c.h.bf16 %v5172_v5 }
 0x481   : > { %4134 = vmatprep.mubr.msk.bf16.mxu1 %vm472_vm1, %v1044_v19 }
 0x482   : > { %4135 = vmatmul.mubr.msk.bf16.gmra.mrb[36].mxu1 %vm472_vm1, %v1045_v30 }
 0x483   : > { %4165 = vmatpush3.bf16.xpose.msra.mxu1 %v1370_v57 }
 0x484   : > { %4407 = vmatprep.subr.msk.bf16.mxu1 %vm472_vm1, %v1351_v18 }
 0x48b   : > { %4167 = vmatpush3.bf16.xpose.msra.mxu1 %v1373_v58 }
 0x48c   : > { %4408 = vmatprep.subr.msk.bf16.mxu1 %vm472_vm1, %v1353_v39  ;;  %v5157_v39 = vld [vmem:[%s6037_s2 + $0x38] sm:$0xff]  }
 0x48d   : > { %v3821_v18 = vunpack.c.l.bf16 %v5157_v39  ;;  %v3822_v16 = vunpack.c.h.bf16 %v5157_v39 }
 0x493   : > { %4169 = vmatpush3.bf16.xpose.msra.mxu1 %v1376_v62  ;;  %v4122_v28 = vpop.f32.mrb[8].mxu0 }
 0x494   : > { %v995_v0 = vpop.f32.mrb[9].mxu0 }
 0x495   : > { %v4123_v1 = vpop.f32.mrb[10].mxu0 }
 0x496   : > { %v1047_v20 = vpack.c.bf16 %v4123_v1, %v4122_v28  ;;  %v998_v6 = vpop.f32.mrb[11].mxu0 }
 0x497   : > { %v1046_v63 = vpack.c.bf16 %v998_v6, %v995_v0  ;;  %v4719_v0 = vmov 0.0  }
 0x498   : > { %430 = vst.msk [vmem:[#allocation2 + $0x10] sm:$0xff] %vm274_vm0, %v4719_v0  ;;  %428 = vst.msk [vmem:[#allocation2] sm:$0xff] %vm274_vm0, %v4719_v0 }
 0x499   : > { %4138 = vmatprep.mubr.msk.bf16.mxu1 %vm472_vm1, %v1046_v63  ;;  %429 = vst.msk [vmem:[#allocation2 + $0x8] sm:$0xff] %vm274_vm0, %v4719_v0  ;;  %431 = vst.msk [vmem:[#allocation2 + $0x18] sm:$0xff] %vm274_vm0, %v4719_v0 }
 0x49a   : > { %4139 = vmatmul.mubr.msk.bf16.gmra.mrb[40].mxu1 %vm472_vm1, %v1047_v20  ;;  %432 = vst.msk [vmem:[#allocation2 + $0x20] sm:$0xff] %vm274_vm0, %v4719_v0  ;;  %433 = vst.msk [vmem:[#allocation2 + $0x28] sm:$0xff] %vm274_vm0, %v4719_v0 }
 0x49b   : > { %v4126_v34 = vpop.f32.mrb[12].mxu0  ;;  %434 = vst.msk [vmem:[#allocation2 + $0x30] sm:$0xff] %vm274_vm0, %v4719_v0  ;;  %435 = vst.msk [vmem:[#allocation2 + $0x38] sm:$0xff] %vm274_vm0, %v4719_v0 }
 0x49c   : > { %v1011_v10 = vpop.f32.mrb[13].mxu0  ;;  %436 = vst.msk [vmem:[#allocation2 + $0x40] sm:$0xff] %vm274_vm0, %v4719_v0  ;;  %437 = vst.msk [vmem:[#allocation2 + $0x48] sm:$0xff] %vm274_vm0, %v4719_v0 }
 0x49d   : > { %v4127_v13 = vpop.f32.mrb[14].mxu0  ;;  %438 = vst.msk [vmem:[#allocation2 + $0x50] sm:$0xff] %vm274_vm0, %v4719_v0  ;;  %439 = vst.msk [vmem:[#allocation2 + $0x58] sm:$0xff] %vm274_vm0, %v4719_v0 }
 0x49e   : > { %v1049_v33 = vpack.c.bf16 %v4127_v13, %v4126_v34  ;;  %v1014_v11 = vpop.f32.mrb[15].mxu0  ;;  %440 = vst.msk [vmem:[#allocation2 + $0x60] sm:$0xff] %vm274_vm0, %v4719_v0  ;;  %441 = vst.msk [vmem:[#allocation2 + $0x68] sm:$0xff] %vm274_vm0, %v4719_v0 }
 0x49f   : > { %v1048_v32 = vpack.c.bf16 %v1014_v11, %v1011_v10  ;;  %442 = vst.msk [vmem:[#allocation2 + $0x70] sm:$0xff] %vm274_vm0, %v4719_v0  ;;  %443 = vst.msk [vmem:[#allocation2 + $0x78] sm:$0xff] %vm274_vm0, %v4719_v0  ;;  %v1028_v63 = vld [vmem:[#allocation2 + $0x10] sm:$0xff]  ;;  %v1026_v13 = vld [vmem:[#allocation2] sm:$0xff] }
 0x4a1   : > { %4142 = vmatprep.mubr.msk.bf16.mxu1 %vm472_vm1, %v1048_v32  ;;  %v1029_v32 = vld [vmem:[#allocation2 + $0x18] sm:$0xff] }
 0x4a2   : > { %4143 = vmatmul.mubr.msk.bf16.gmra.mrb[44].mxu1 %vm472_vm1, %v1049_v33 }
 0x4a3   : > { %4170 = vmatprep.mubr.msk.bf16.mxu1 %vm472_vm1, %v1339_v38 }
 0x4aa   : > { %4171 = vmatmul.mubr.msk.bf16.vlgmr.msra.gmra.mrb[48].mxu1 %vm472_vm1, %v1341_v26  ;;  %v3814_v26 = vunpack.c.h.bf16 %v5142_v17 }
 0x4ab   : > { %4174 = vmatprep.mubr.msk.bf16.mxu1 %vm472_vm1, %v1343_v15 }
 0x4b2   : > { %4175 = vmatmul.mubr.msk.bf16.gmra.mrb[52].mxu1 %vm472_vm1, %v1345_v25 }
 0x4b8   : > { %v4156_v24 = vpop.f32.mrb[16].mxu0 }
 0x4b9   : > { %v1312_v22 = vadd.f32 %v4156_v24, %v3813_v42  ;;  %v1303_v54 = vpop.f32.mrb[17].mxu0 }
 0x4ba   : > { %v4157_v41 = vpop.f32.mrb[18].mxu0  ;;  %v5161_v3 = vadd.f32 %v3809_v40, %v1303_v54  ;;  %v1027_v54 = vld [vmem:[#allocation2 + $0x8] sm:$0xff] }
 0x4bb   : > { %v1306_v50 = vpop.f32.mrb[19].mxu0  ;;  %v1449_v25 = vsel %vm663_vm2, %v1312_v22, -inf  ;;  %v5179_v29 = vadd.f32 %v4157_v41, %v3814_v26 }
 0x4bc   : > { %v5167_v51 = vadd.f32 %v3810_v21, %v1306_v50  ;;  %1450 = vmax.xlane.f32.xlu0 %v1449_v25  ;;  %v1443_v12 = vsel %vm663_vm2, %v5161_v3, -inf }
 0x4bd   : > { %v1452_v19 = vsel %vm663_vm2, %v5179_v29, -inf }
 0x4be   : > { %v1446_v27 = vsel %vm663_vm2, %v5167_v51, -inf }
 0x4bf   : > { %1447 = vmax.xlane.f32.xlu1 %v1446_v27 }
 0x4c0   : > { %1444 = vmax.xlane.f32.xlu0 %v1443_v12  ;;  %v4160_v45 = vpop.f32.mrb[20].mxu0 }
 0x4c1   : > { %v5187_v46 = vadd.f32 %v4160_v45, %v3821_v18  ;;  %v1319_v2 = vpop.f32.mrb[21].mxu0 }
 0x4c2   : > { %v4161_v52 = vpop.f32.mrb[22].mxu0  ;;  %v5192_v14 = vadd.f32 %v3817_v43, %v1319_v2 }
 0x4c3   : > { %v5196_v30 = vadd.f32 %v4161_v52, %v3822_v16  ;;  %v1322_v55 = vpop.f32.mrb[23].mxu0  ;;  %v1461_v57 = vsel %vm663_vm2, %v5187_v46, -inf }
 0x4c4   : > { %1453 = vmax.xlane.f32.xlu0 %v1452_v19  ;;  %1462 = vmax.xlane.f32.xlu1 %v1461_v57  ;;  %v5204_v58 = vadd.f32 %v3818_v53, %v1322_v55  ;;  %v1455_v28 = vsel %vm663_vm2, %v5192_v14, -inf  ;;  %v1030_v19 = vld [vmem:[#allocation2 + $0x20] sm:$0xff] }
 0x4c5   : > { %v1464_v62 = vsel %vm663_vm2, %v5196_v30, -inf }
 0x4c6   : > { %v1458_v1 = vsel %vm663_vm2, %v5204_v58, -inf }
 0x4c8   : > { %1465 = vmax.xlane.f32.xlu0 %v1464_v62  ;;  %1456 = vmax.xlane.f32.xlu1 %v1455_v28 }
 0x4cc   : > { %1459 = vmax.xlane.f32.xlu0 %v1458_v1 }
 0x549   : > { %v1451_v20 = vpop.xlane.xlu0 %1450 }
 0x54a   : > { %v1493_v6 = vsub.f32 %v1312_v22, %v1451_v20  ;;  %v1033_v20 = vld [vmem:[#allocation2 + $0x38] sm:$0xff] }
 0x54c   : > { %v1511_v34 = vmul.f32 1.442695, %v1493_v6  ;;  %v1448_v10 = vpop.xlane.xlu1 %1447 }
 0x54d   : > { %v4132_v33 = vpop.f32.mrb[32].mxu1  ;;  %v1445_v11 = vpop.xlane.xlu0 %1444  ;;  %v1492_v25 = vsub.f32 %v5167_v51, %v1448_v10  ;;  %v1032_v51 = vld [vmem:[#allocation2 + $0x30] sm:$0xff] }
 0x54e   : > { %4514 = vpow2.f32 %v1511_v34  ;;  %v1178_v38 = vadd.f32 %v4132_v33, %v1028_v63  ;;  %v1491_v15 = vsub.f32 %v5161_v3, %v1445_v11  ;;  %v1113_v24 = vpop.f32.mrb[33].mxu1 }
 0x54f   : > { %v1176_v41 = vadd.f32 %v1113_v24, %v1026_v13  ;;  %v4133_v50 = vpop.f32.mrb[34].mxu1  ;;  %v1509_v57 = vmul.f32 1.442695, %v1492_v25  ;;  %v1031_v13 = vld [vmem:[#allocation2 + $0x28] sm:$0xff] }
 0x550   : > { %1194 = vst.msk [vmem:[#allocation2 + $0x10] sm:$0xff] %vm274_vm0, %v1178_v38  ;;  %v1507_v22 = vmul.f32 1.442695, %v1491_v15  ;;  %v1179_v27 = vadd.f32 %v4133_v50, %v1029_v32  ;;  %v1116_v12 = vpop.f32.mrb[35].mxu1 }
 0x551   : > { %1192 = vst.msk [vmem:[#allocation2] sm:$0xff] %vm274_vm0, %v1176_v41  ;;  %v1177_v45 = vadd.f32 %v1116_v12, %v1027_v54  ;;  %v1454_v2 = vpop.xlane.xlu0 %1453  ;;  %v1463_v52 = vpop.xlane.xlu1 %1462 }
 0x552   : > { %4516 = vpow2.f32 %v1507_v22  ;;  %1195 = vst.msk [vmem:[#allocation2 + $0x18] sm:$0xff] %vm274_vm0, %v1179_v27  ;;  %v1494_v3 = vsub.f32 %v5179_v29, %v1454_v2  ;;  %v1497_v55 = vsub.f32 %v5187_v46, %v1463_v52 }
 0x553   : > { %1193 = vst.msk [vmem:[#allocation2 + $0x8] sm:$0xff] %vm274_vm0, %v1177_v45 }
 0x554   : > { %v1513_v62 = vmul.f32 1.442695, %v1494_v3  ;;  %v1519_v28 = vmul.f32 1.442695, %v1497_v55 }
 0x555   : > { %v4136_v0 = vpop.f32.mrb[36].mxu1  ;;  %v1466_v1 = vpop.xlane.xlu0 %1465 }
 0x556   : > { %4518 = vpow2.f32 %v1513_v62  ;;  %v1182_v6 = vadd.f32 %v4136_v0, %v1032_v51  ;;  %v1498_v63 = vsub.f32 %v5196_v30, %v1466_v1  ;;  %v1457_v34 = vpop.xlane.xlu1 %1456  ;;  %v1129_v10 = vpop.f32.mrb[37].mxu1  ;;  %v1036_v62 = vld [vmem:[#allocation2 + $0x50] sm:$0xff] }
 0x557   : > { %4520 = vpow2.f32 %v1519_v28  ;;  %v1495_v29 = vsub.f32 %v5192_v14, %v1457_v34  ;;  %v1180_v46 = vadd.f32 %v1129_v10, %v1030_v19  ;;  %v4137_v33 = vpop.f32.mrb[38].mxu1  ;;  %v1034_v28 = vld [vmem:[#allocation2 + $0x40] sm:$0xff]  ;;  %v1035_v34 = vld [vmem:[#allocation2 + $0x48] sm:$0xff] }
 0x558   : > { %v5238_v11 = vpop.eup %4514  ;;  %4522 = vpow2.f32 %v1509_v57  ;;  %1198 = vst.msk [vmem:[#allocation2 + $0x30] sm:$0xff] %vm274_vm0, %v1182_v6  ;;  %v1521_v32 = vmul.f32 1.442695, %v1498_v63  ;;  %v1183_v38 = vadd.f32 %v4137_v33, %v1033_v20  ;;  %v1132_v15 = vpop.f32.mrb[39].mxu1  ;;  %v1037_v20 = vld [vmem:[#allocation2 + $0x58] sm:$0xff] }
 0x559   : > { %v1515_v24 = vmul.f32 1.442695, %v1495_v29  ;;  %1196 = vst.msk [vmem:[#allocation2 + $0x20] sm:$0xff] %vm274_vm0, %v1180_v46  ;;  %v1181_v30 = vadd.f32 %v1132_v15, %v1031_v13  ;;  %v1460_v54 = vpop.xlane.xlu0 %1459  ;;  %v1545_v41 = vsel %vm663_vm2, %v5238_v11, 0.0 }
 0x55a   : > { %1199 = vst.msk [vmem:[#allocation2 + $0x38] sm:$0xff] %vm274_vm0, %v1183_v38  ;;  %v1496_v14 = vsub.f32 %v5204_v58, %v1460_v54  ;;  %1546 = vadd.xlane.f32.xlu1 %v1545_v41  ;;  %v1038_v38 = vld [vmem:[#allocation2 + $0x60] sm:$0xff]  ;;  %v1039_v41 = vld [vmem:[#allocation2 + $0x68] sm:$0xff] }
 0x55b   : > { %4524 = vpow2.f32 %v1515_v24  ;;  %1197 = vst.msk [vmem:[#allocation2 + $0x28] sm:$0xff] %vm274_vm0, %v1181_v30  ;;  %v1041_v24 = vld [vmem:[#allocation2 + $0x78] sm:$0xff] }
 0x55c   : > { %v5247_v50 = vpop.eup %4516  ;;  %4526 = vpow2.f32 %v1521_v32  ;;  %v1517_v25 = vmul.f32 1.442695, %v1496_v14  ;;  %v1040_v32 = vld [vmem:[#allocation2 + $0x70] sm:$0xff] }
 0x55d   : > { %v1539_v22 = vsel %vm663_vm2, %v5247_v50, 0.0 }
 0x55e   : > { %1540 = vadd.xlane.f32.xlu1 %v1539_v22  ;;  %4528 = vpow2.f32 %v1517_v25 }
 0x560   : > { %v5251_v27 = vpop.eup %4518 }
 0x561   : > { %v5253_v12 = vpop.eup %4520  ;;  %v1548_v58 = vsel %vm663_vm2, %v5251_v27, 0.0 }
 0x562   : > { %v5257_v45 = vpop.eup %4522  ;;  %1549 = vadd.xlane.f32.xlu0 %v1548_v58  ;;  %v1557_v2 = vsel %vm663_vm2, %v5253_v12, 0.0 }
 0x563   : > { %1558 = vadd.xlane.f32.xlu1 %v1557_v2  ;;  %v1542_v3 = vsel %vm663_vm2, %v5257_v45, 0.0 }
 0x565   : > { %v5261_v52 = vpop.eup %4524 }
 0x566   : > { %v5265_v55 = vpop.eup %4526  ;;  %1543 = vadd.xlane.f32.xlu0 %v1542_v3  ;;  %v1551_v51 = vsel %vm663_vm2, %v5261_v52, 0.0 }
 0x567   : > { %1552 = vadd.xlane.f32.xlu1 %v1551_v51  ;;  %v1560_v19 = vsel %vm663_vm2, %v5265_v55, 0.0 }
 0x568   : > { %v5271_v57 = vpop.eup %4528 }
 0x569   : > { %v1554_v1 = vsel %vm663_vm2, %v5271_v57, 0.0 }
 0x56a   : > { %1561 = vadd.xlane.f32.xlu0 %v1560_v19 }
 0x56d   : > { %v4140_v0 = vpop.f32.mrb[40].mxu1 }
 0x56e   : > { %v1186_v6 = vadd.f32 %v4140_v0, %v1036_v62  ;;  %v1145_v63 = vpop.f32.mrb[41].mxu1  ;;  %1555 = vadd.xlane.f32.xlu0 %v1554_v1 }
 0x56f   : > { %v1184_v10 = vadd.f32 %v1145_v63, %v1034_v28  ;;  %v4141_v13 = vpop.f32.mrb[42].mxu1 }
 0x570   : > { %1202 = vst.msk [vmem:[#allocation2 + $0x50] sm:$0xff] %vm274_vm0, %v1186_v6  ;;  %v1187_v29 = vadd.f32 %v4141_v13, %v1037_v20  ;;  %v1148_v46 = vpop.f32.mrb[43].mxu1 }
 0x571   : > { %1200 = vst.msk [vmem:[#allocation2 + $0x40] sm:$0xff] %vm274_vm0, %v1184_v10  ;;  %v1185_v33 = vadd.f32 %v1148_v46, %v1035_v34 }
 0x572   : > { %1203 = vst.msk [vmem:[#allocation2 + $0x58] sm:$0xff] %vm274_vm0, %v1187_v29 }
 0x573   : > { %1201 = vst.msk [vmem:[#allocation2 + $0x48] sm:$0xff] %vm274_vm0, %v1185_v33 }
 0x575   : > { %v4144_v15 = vpop.f32.mrb[44].mxu1 }
 0x576   : > { %v1190_v30 = vadd.f32 %v4144_v15, %v1040_v32  ;;  %v1161_v54 = vpop.f32.mrb[45].mxu1 }
 0x577   : > { %v1188_v14 = vadd.f32 %v1161_v54, %v1038_v38  ;;  %v4145_v25 = vpop.f32.mrb[46].mxu1 }
 0x578   : > { %1206 = vst.msk [vmem:[#allocation2 + $0x70] sm:$0xff] %vm274_vm0, %v1190_v30  ;;  %v1191_v22 = vadd.f32 %v4145_v25, %v1041_v24  ;;  %v1164_v58 = vpop.f32.mrb[47].mxu1 }
 0x579   : > { %1204 = vst.msk [vmem:[#allocation2 + $0x60] sm:$0xff] %vm274_vm0, %v1188_v14  ;;  %v1189_v2 = vadd.f32 %v1164_v58, %v1039_v41 }
 0x57a   : > { %1207 = vst.msk [vmem:[#allocation2 + $0x78] sm:$0xff] %vm274_vm0, %v1191_v22 }
 0x57b   : > { %1205 = vst.msk [vmem:[#allocation2 + $0x68] sm:$0xff] %vm274_vm0, %v1189_v2 }
 0x57d   : > { %v4172_v3 = vpop.f32.mrb[48].mxu1 }
 0x57e   : > { %v1421_v51 = vadd.f32 %v4172_v3, %v3813_v42  ;;  %v1412_v19 = vpop.f32.mrb[49].mxu1 }
 0x57f   : > { %v4173_v62 = vpop.f32.mrb[50].mxu1  ;;  %v1413_v28 = vadd.f32 %v3809_v40, %v1412_v19 }
 0x580   : > { %v1424_v0 = vadd.f32 %v4173_v62, %v3814_v26  ;;  %v1415_v1 = vpop.f32.mrb[51].mxu1  ;;  %v1473_v20 = vsel %vm663_vm2, %v1421_v51, -inf }
 0x581   : > { %1474 = vmax.xlane.f32.xlu1 %v1473_v20  ;;  %v1416_v6 = vadd.f32 %v3810_v21, %v1415_v1  ;;  %v1467_v42 = vsel %vm663_vm2, %v1413_v28, -inf }
 0x582   : > { %v1476_v63 = vsel %vm663_vm2, %v1424_v0, -inf }
 0x583   : > { %1477 = vmax.xlane.f32.xlu0 %v1476_v63  ;;  %v1470_v17 = vsel %vm663_vm2, %v1416_v6, -inf }
 0x585   : > { %v4176_v34 = vpop.f32.mrb[52].mxu1  ;;  %1468 = vmax.xlane.f32.xlu1 %v1467_v42 }
 0x586   : > { %v1437_v40 = vadd.f32 %v4176_v34, %v3821_v18  ;;  %v1428_v10 = vpop.f32.mrb[53].mxu1 }
 0x587   : > { %v4177_v26 = vpop.f32.mrb[54].mxu1  ;;  %1471 = vmax.xlane.f32.xlu0 %v1470_v17  ;;  %v1429_v13 = vadd.f32 %v3817_v43, %v1428_v10 }
 0x588   : > { %v1440_v23 = vadd.f32 %v4177_v26, %v3822_v16  ;;  %v1431_v21 = vpop.f32.mrb[55].mxu1  ;;  %v1485_v29 = vsel %vm663_vm2, %v1437_v40, -inf }
 0x589   : > { %1486 = vmax.xlane.f32.xlu1 %v1485_v29  ;;  %v5304_v46 = vadd.f32 %v3818_v53, %v1431_v21  ;;  %v1479_v33 = vsel %vm663_vm2, %v1429_v13, -inf }
 0x58a   : > { %v1488_v18 = vsel %vm663_vm2, %v1440_v23, -inf }
 0x58b   : > { %1489 = vmax.xlane.f32.xlu0 %v1488_v18  ;;  %v1482_v43 = vsel %vm663_vm2, %v5304_v46, -inf }
 0x58d   : > { %1480 = vmax.xlane.f32.xlu1 %v1479_v33 }
 0x58f   : > { %1483 = vmax.xlane.f32.xlu0 %v1482_v43 }
 0x59e   : > { %1629 = vrot.lane.b32.xlu1 %v4804_v31, %s4718_s19 }
 0x5a2   : > { %1633 = vrot.lane.b32.xlu1 %v4818_v44, %s4718_s19 }
 0x5a5   : > { %1631 = vrot.lane.b32.xlu0 %v4820_v47, %s4718_s19 }
 0x5e7   : > { %v1547_v39 = vpop.xlane.xlu1 %1546 }
 0x5eb   : > { %v1541_v5 = vpop.xlane.xlu1 %1540 }
 0x5ec   : > { %4530 = vrcp.f32 %v1541_v5 }
 0x5ef   : > { %v1550_v16 = vpop.xlane.xlu0 %1549 }
 0x5f0   : > { %v1559_v54 = vpop.xlane.xlu1 %1558 }
 0x5f3   : > { %v1544_v53 = vpop.xlane.xlu0 %1543 }
 0x5f4   : > { %4532 = vrcp.f32 %v1544_v53  ;;  %v1553_v14 = vpop.xlane.xlu1 %1552 }
 0x5f6   : > { %v4531_v32 = vpop.eup %4530 }
 0x5f7   : > { %v1603_v15 = vmul.f32 %v4531_v32, %v5247_v50  ;;  %v1562_v41 = vpop.xlane.xlu0 %1561 }
 0x5fb   : > { %v1556_v25 = vpop.xlane.xlu0 %1555 }
 0x5fe   : > { %v4533_v38 = vpop.eup %4532 }
 0x5ff   : > { %v1604_v24 = vmul.f32 %v4533_v38, %v5257_v45 }
 0x601   : > { %v1619_v30 = vpack.c.bf16 %v1604_v24, %v1603_v15 }
 0x603   : > { %4186 = vmatprep.mubr.msk.bf16.mxu0 %vm663_vm2, %v1619_v30 }
 0x60e   : > { %v1475_v22 = vpop.xlane.xlu1 %1474 }
 0x60f   : > { %v1501_v58 = vsub.f32 %v1421_v51, %v1475_v22 }
 0x610   : > { %v1478_v2 = vpop.xlane.xlu0 %1477 }
 0x611   : > { %v1527_v3 = vmul.f32 1.442695, %v1501_v58  ;;  %v1502_v19 = vsub.f32 %v1424_v0, %v1478_v2 }
 0x612   : > { %v1469_v62 = vpop.xlane.xlu1 %1468 }
 0x613   : > { %4534 = vpow2.f32 %v1527_v3  ;;  %v1499_v1 = vsub.f32 %v1413_v28, %v1469_v62  ;;  %v1529_v63 = vmul.f32 1.442695, %v1502_v19 }
 0x614   : > { %v1472_v20 = vpop.xlane.xlu0 %1471  ;;  %4536 = vrcp.f32 %v1547_v39 }
 0x615   : > { %v1523_v50 = vmul.f32 1.442695, %v1499_v1  ;;  %v1500_v42 = vsub.f32 %v1416_v6, %v1472_v20 }
 0x616   : > { %v1487_v45 = vpop.xlane.xlu1 %1486 }
 0x617   : > { %4538 = vpow2.f32 %v1523_v50  ;;  %v1505_v34 = vsub.f32 %v1437_v40, %v1487_v45  ;;  %v1525_v17 = vmul.f32 1.442695, %v1500_v42 }
 0x618   : > { %4540 = vrcp.f32 %v1550_v16  ;;  %v1490_v10 = vpop.xlane.xlu0 %1489 }
 0x619   : > { %4542 = vpow2.f32 %v1529_v63  ;;  %v1535_v26 = vmul.f32 1.442695, %v1505_v34  ;;  %v1506_v51 = vsub.f32 %v1440_v23, %v1490_v10 }
 0x61a   : > { %4544 = vrcp.f32 %v1556_v25  ;;  %v1481_v21 = vpop.xlane.xlu1 %1480 }
 0x61b   : > { %4546 = vpow2.f32 %v1535_v26  ;;  %v1503_v0 = vsub.f32 %v1429_v13, %v1481_v21  ;;  %v1537_v28 = vmul.f32 1.442695, %v1506_v51 }
 0x61c   : > { %4548 = vrcp.f32 %v1553_v14  ;;  %v1484_v29 = vpop.xlane.xlu0 %1483 }
 0x61d   : > { %v5319_v18 = vpop.eup %4534  ;;  %4550 = vpow2.f32 %v1525_v17  ;;  %v1531_v6 = vmul.f32 1.442695, %v1503_v0  ;;  %v1504_v33 = vsub.f32 %v5304_v46, %v1484_v29 }
 0x61e   : > { %4552 = vrcp.f32 %v1562_v41  ;;  %v1630_v40 = vpop.permute.xlu1 %1629  ;;  %v1569_v43 = vsel %vm663_vm2, %v5319_v18, 0.0  ;;  %v4537_v39 = vpop.eup %4536 }
 0x61f   : > { %4554 = vpow2.f32 %v1531_v6  ;;  %v1533_v23 = vmul.f32 1.442695, %v1504_v33  ;;  %1570 = vadd.xlane.f32.xlu0 %v1569_v43  ;;  %4180 = vmatprep.subr.bf16.mxu0 %v1630_v40  ;;  %v1605_v58 = vmul.f32 %v4537_v39, %v5238_v11 }
 0x620   : > { %4556 = vpow2.f32 %v1537_v28  ;;  %v1632_v13 = vpop.permute.xlu0 %1631  ;;  %4181 = vmatpush3.bf16.msra.mxu0 %v1630_v40 }
 0x621   : > { %v5324_v5 = vpop.eup %4538  ;;  %4558 = vpow2.f32 %v1533_v23  ;;  %4182 = vmatprep.subr.bf16.mxu0 %v1632_v13 }
 0x622   : > { %v4541_v16 = vpop.eup %4540  ;;  %v1563_v46 = vsel %vm663_vm2, %v5324_v5, 0.0  ;;  %4560 = vrcp.f32 %v1559_v54  ;;  %v1634_v38 = vpop.permute.xlu1 %1633 }
 0x623   : > { %v5328_v53 = vpop.eup %4542  ;;  %1564 = vadd.xlane.f32.xlu0 %v1563_v46  ;;  %v1606_v30 = vmul.f32 %v4541_v16, %v5251_v27 }
 0x624   : > { %v4545_v32 = vpop.eup %4544  ;;  %4183 = vmatpush3.bf16.msra.mxu0 %v1632_v13  ;;  %v1572_v41 = vsel %vm663_vm2, %v5328_v53, 0.0 }
 0x625   : > { %v5330_v15 = vpop.eup %4546  ;;  %4184 = vmatprep.subr.bf16.mxu0 %v1634_v38  ;;  %v1608_v54 = vmul.f32 %v4545_v32, %v5271_v57  ;;  %v1620_v19 = vpack.c.bf16 %v1606_v30, %v1605_v58 }
 0x626   : > { %v4549_v24 = vpop.eup %4548  ;;  %v1581_v14 = vsel %vm663_vm2, %v5330_v15, 0.0 }
 0x627   : > { %v5337_v25 = vpop.eup %4550  ;;  %1573 = vadd.xlane.f32.xlu0 %v1572_v41  ;;  %1582 = vadd.xlane.f32.xlu1 %v1581_v14  ;;  %v1607_v27 = vmul.f32 %v4549_v24, %v5261_v52 }
 0x628   : > { %v4553_v22 = vpop.eup %4552  ;;  %4185 = vmatpush3.bf16.msra.mxu0 %v1634_v38  ;;  %v1566_v62 = vsel %vm663_vm2, %v5337_v25, 0.0 }
 0x629   : > { %v5341_v2 = vpop.eup %4554  ;;  %v1621_v57 = vpack.c.bf16 %v1608_v54, %v1607_v27  ;;  %v1610_v50 = vmul.f32 %v4553_v22, %v5265_v55 }
 0x62a   : > { %v5344_v3 = vpop.eup %4556  ;;  %v1575_v1 = vsel %vm663_vm2, %v5341_v2, 0.0 }
 0x62b   : > { %v5350_v20 = vpop.eup %4558  ;;  %1567 = vadd.xlane.f32.xlu0 %v1566_v62  ;;  %1576 = vadd.xlane.f32.xlu1 %v1575_v1  ;;  %v1584_v63 = vsel %vm663_vm2, %v5344_v3, 0.0 }
 0x62c   : > { %4187 = vmatmul.mubr.msk.bf16.vlgmr.msra.gmra.mrb[24].mxu0 %vm663_vm2, %v1620_v19  ;;  %v4561_v11 = vpop.eup %4560  ;;  %v1578_v52 = vsel %vm663_vm2, %v5350_v20, 0.0 }
 0x62d   : > { %4190 = vmatprep.mubr.msk.bf16.mxu0 %vm663_vm2, %v1621_v57  ;;  %v1609_v42 = vmul.f32 %v4561_v11, %v5253_v12  ;;  %v3711_v12 = vld [vmem:[%s6038_s3 + $0x4] sm:$0xf] }
 0x62e   : > { %4409 = vmatprep.subr.msk.bf16.mxu0 %vm1075_vm3, %v3711_v12  ;;  %v1856_v55 = vsel %vm1075_vm3, %v3711_v12, 0 }
 0x62f   : > { %1579 = vadd.xlane.f32.xlu0 %v1578_v52  ;;  %1585 = vadd.xlane.f32.xlu1 %v1584_v63  ;;  %v1622_v45 = vpack.c.bf16 %v1610_v50, %v1609_v42 }
 0x630   : > { %4211 = vmatpush3.bf16.msra.mxu0 %v1856_v55 }
 0x634   : > { %4191 = vmatmul.mubr.msk.bf16.gmra.mrb[28].mxu0 %vm663_vm2, %v1622_v45 }
 0x640   : > { %1718 = vrot.lane.b32.xlu1 %v4830_v56, %s4718_s19 }
 0x644   : > { %1720 = vrot.lane.b32.xlu1 %v4846_v7, %s4718_s19 }
 0x645   : > { %1716 = vrot.lane.b32.xlu0 %v4832_v59, %s4718_s19 }
 0x648   : > { %1722 = vrot.lane.b32.xlu1 %v4844_v4, %s4718_s19  ;;  %s4723_s19 = smov 72  }
 0x649   : > { %2012 = vrot.lane.b32.xlu0 %v4806_v35, %s4720_s30 }
 0x64c   : > { %2014 = vrot.lane.b32.xlu1 %v4804_v31, %s4720_s30 }
 0x64d   : > { %2016 = vrot.lane.b32.xlu0 %v4820_v47, %s4720_s30 }
 0x650   : > { %2117 = vrot.lane.b32.xlu1 %v4832_v59, %s4720_s30 }
 0x651   : > { %2018 = vrot.lane.b32.xlu0 %v4818_v44, %s4720_s30 }
 0x654   : > { %2119 = vrot.lane.b32.xlu1 %v4830_v56, %s4720_s30 }
 0x655   : > { %2004 = vrot.lane.b32.xlu0 %v4810_v37, %s4721_s8 }
 0x658   : > { %2006 = vrot.lane.b32.xlu1 %v4808_v36, %s4721_s8 }
 0x659   : > { %2121 = vrot.lane.b32.xlu0 %v4846_v7, %s4720_s30 }
 0x65c   : > { %2008 = vrot.lane.b32.xlu1 %v4824_v49, %s4721_s8 }
 0x65d   : > { %2010 = vrot.lane.b32.xlu0 %v4822_v48, %s4721_s8 }
 0x660   : > { %2123 = vrot.lane.b32.xlu1 %v4844_v4, %s4720_s30 }
 0x661   : > { %2109 = vrot.lane.b32.xlu0 %v4836_v61, %s4721_s8 }
 0x664   : > { %2111 = vrot.lane.b32.xlu1 %v4834_v60, %s4721_s8 }
 0x665   : > { %2113 = vrot.lane.b32.xlu0 %v4852_v9, %s4721_s8 }
 0x668   : > { %2115 = vrot.lane.b32.xlu1 %v4848_v8, %s4721_s8 }
 0x66c   : > { %2398 = vrot.lane.b32.xlu1 %v4806_v35, %s4722_s9 }
 0x6ac   : > { %v1571_v34 = vpop.xlane.xlu0 %1570 }
 0x6b0   : > { %v1565_v10 = vpop.xlane.xlu0 %1564 }
 0x6b1   : > { %4562 = vrcp.f32 %v1565_v10 }
 0x6b4   : > { %v1574_v17 = vpop.xlane.xlu0 %1573  ;;  %v1583_v26 = vpop.xlane.xlu1 %1582 }
 0x6b8   : > { %v1568_v51 = vpop.xlane.xlu0 %1567  ;;  %v1577_v21 = vpop.xlane.xlu1 %1576 }
 0x6b9   : > { %4564 = vrcp.f32 %v1568_v51 }
 0x6ba   : > { %4566 = vrcp.f32 %v1574_v17 }
 0x6bb   : > { %v4563_v33 = vpop.eup %4562 }
 0x6bc   : > { %v1580_v0 = vpop.xlane.xlu0 %1579  ;;  %v1586_v28 = vpop.xlane.xlu1 %1585  ;;  %v1611_v23 = vmul.f32 %v4563_v33, %v5324_v5 }
 0x6bd   : > { %4568 = vrcp.f32 %v1580_v0 }
 0x6be   : > { %4570 = vrcp.f32 %v1571_v34 }
 0x6bf   : > { %4572 = vrcp.f32 %v1577_v21 }
 0x6c0   : > { %v1717_v29 = vpop.permute.xlu0 %1716  ;;  %v1719_v6 = vpop.permute.xlu1 %1718  ;;  %4574 = vrcp.f32 %v1586_v28 }
 0x6c1   : > { %4194 = vmatprep.subr.bf16.mxu1 %v1717_v29  ;;  %4576 = vrcp.f32 %v1583_v26 }
 0x6c2   : > { %4195 = vmatpush3.bf16.msra.mxu1 %v1717_v29 }
 0x6c3   : > { %v4565_v40 = vpop.eup %4564  ;;  %4196 = vmatprep.subr.bf16.mxu1 %v1719_v6 }
 0x6c4   : > { %v1721_v43 = vpop.permute.xlu1 %1720  ;;  %v1612_v39 = vmul.f32 %v4565_v40, %v5337_v25  ;;  %v2013_v16 = vpop.permute.xlu0 %2012 }
 0x6c5   : > { %v4567_v46 = vpop.eup %4566 }
 0x6c6   : > { %4197 = vmatpush3.bf16.msra.mxu1 %v1719_v6  ;;  %v1623_v13 = vpack.c.bf16 %v1612_v39, %v1611_v23  ;;  %v1614_v41 = vmul.f32 %v4567_v46, %v5328_v53 }
 0x6c7   : > { %4198 = vmatprep.subr.bf16.mxu1 %v1721_v43  ;;  %v4569_v38 = vpop.eup %4568 }
 0x6c8   : > { %4202 = vmatprep.mubr.msk.bf16.mxu1 %vm663_vm2, %v1623_v13  ;;  %v1723_v32 = vpop.permute.xlu1 %1722  ;;  %v4571_v24 = vpop.eup %4570  ;;  %v1616_v14 = vmul.f32 %v4569_v38, %v5350_v20 }
 0x6c9   : > { %v4573_v30 = vpop.eup %4572  ;;  %v1613_v25 = vmul.f32 %v4571_v24, %v5319_v18  ;;  %v2017_v54 = vpop.permute.xlu0 %2016 }
 0x6ca   : > { %4199 = vmatpush3.bf16.msra.mxu1 %v1721_v43  ;;  %v1615_v22 = vmul.f32 %v4573_v30, %v5341_v2  ;;  %v4575_v27 = vpop.eup %4574  ;;  %v2033_v2 = vsel %vm472_vm1, %v2013_v16, 0  ;;  %v2039_v45 = vsel %vm472_vm1, %v2017_v54, 0 }
 0x6cb   : > { %4200 = vmatprep.subr.bf16.mxu1 %v1723_v32  ;;  %v1624_v58 = vpack.c.bf16 %v1614_v41, %v1613_v25  ;;  %v4577_v53 = vpop.eup %4576  ;;  %v1618_v18 = vmul.f32 %v4575_v27, %v5344_v3 }
 0x6cc   : > { %v2015_v5 = vpop.permute.xlu1 %2014  ;;  %v1625_v62 = vpack.c.bf16 %v1616_v14, %v1615_v22  ;;  %v1617_v57 = vmul.f32 %v4577_v53, %v5330_v15 }
 0x6cd   : > { %v2019_v1 = vpop.permute.xlu0 %2018  ;;  %v2036_v42 = vsel %vm472_vm1, %v2015_v5, 0 }
 0x6ce   : > { %4201 = vmatpush3.bf16.msra.mxu1 %v1723_v32  ;;  %v1626_v11 = vpack.c.bf16 %v1618_v18, %v1617_v57  ;;  %v2042_v55 = vsel %vm472_vm1, %v2019_v1, 0  ;;  %v5444_v18 = vld [vmem:[%s6037_s2 + $0x40] sm:$0xff]  }
 0x6cf   : > { %4410 = vmatprep.subr.msk.bf16.mxu1 %vm472_vm1, %v2013_v16  ;;  %v3825_v57 = vunpack.c.l.bf16 %v5444_v18 }
 0x6d0   : > { %v2118_v19 = vpop.permute.xlu1 %2117 }
 0x6d1   : > { %4203 = vmatmul.mubr.msk.bf16.vlgmr.msra.gmra.mrb[56].mxu1 %vm663_vm2, %v1624_v58  ;;  %4414 = vmatprep.subr.msk.bf16.mxu0 %vm472_vm1, %v2118_v19  ;;  %v2005_v63 = vpop.permute.xlu0 %2004  ;;  %v2138_v6 = vsel %vm472_vm1, %v2118_v19, 0 }
 0x6d2   : > { %4206 = vmatprep.mubr.msk.bf16.mxu1 %vm663_vm2, %v1625_v62 }
 0x6d4   : > { %v2120_v20 = vpop.permute.xlu1 %2119 }
 0x6d5   : > { %v2122_v10 = vpop.permute.xlu0 %2121  ;;  %v2141_v16 = vsel %vm472_vm1, %v2120_v20, 0 }
 0x6d6   : > { %v2144_v46 = vsel %vm472_vm1, %v2122_v10, 0 }
 0x6d7   : > { %4229 = vmatpush3.bf16.xpose.msra.mxu1 %v2033_v2 }
 0x6d8   : > { %4411 = vmatprep.subr.msk.bf16.mxu1 %vm472_vm1, %v2015_v5  ;;  %v2007_v52 = vpop.permute.xlu1 %2006 }
 0x6d9   : > { %4207 = vmatmul.mubr.msk.bf16.gmra.mrb[60].mxu1 %vm663_vm2, %v1626_v11  ;;  %v2011_v17 = vpop.permute.xlu0 %2010  ;;  %v3826_v11 = vunpack.c.h.bf16 %v5444_v18 }
 0x6da   : > { %4236 = vmatprep.mubr.msk.bf16.mxu1 %vm472_vm1, %v2005_v63 }
 0x6dc   : > { %v2009_v50 = vpop.permute.xlu1 %2008 }
 0x6dd   : > { %v2110_v62 = vpop.permute.xlu0 %2109 }
 0x6df   : > { %4231 = vmatpush3.bf16.xpose.msra.mxu1 %v2036_v42  ;;  %v5456_v42 = vld [vmem:[%s6037_s2 + $0x58] sm:$0xff]  }
 0x6e0   : > { %4412 = vmatprep.subr.msk.bf16.mxu1 %vm472_vm1, %v2017_v54  ;;  %v2124_v3 = vpop.permute.xlu1 %2123 }
 0x6e1   : > { %v2147_v32 = vsel %vm472_vm1, %v2124_v3, 0  ;;  %v2114_v53 = vpop.permute.xlu0 %2113 }
 0x6e4   : > { %v2112_v15 = vpop.permute.xlu1 %2111 }
 0x6e7   : > { %4233 = vmatpush3.bf16.xpose.msra.mxu1 %v2039_v45 }
 0x6e8   : > { %4413 = vmatprep.subr.msk.bf16.mxu1 %vm472_vm1, %v2019_v1  ;;  %v2116_v12 = vpop.permute.xlu1 %2115  ;;  %v5439_v1 = vld [vmem:[%s6037_s2 + $0x48] sm:$0xff]  }
 0x6ec   : > { %v2399_v34 = vpop.permute.xlu1 %2398 }
 0x6ef   : > { %4235 = vmatpush3.bf16.xpose.msra.mxu1 %v2042_v55 }
 0x6f0   : > { %4260 = vmatprep.subr.bf16.mxu1 %v2399_v34 }
 0x6f6   : > { %4237 = vmatmul.mubr.msk.bf16.vlgmr.msra.gmra.mrb[64].mxu1 %vm472_vm1, %v2007_v52 }
 0x6f7   : > { %4240 = vmatprep.mubr.msk.bf16.mxu1 %vm472_vm1, %v2009_v50  ;;  %4261 = vmatpush3.bf16.msra.mxu1 %v2399_v34  ;;  %v5472_v34 = vld [vmem:[%s6037_s2 + $0x50] sm:$0xff]  }
 0x6fe   : > { %4241 = vmatmul.mubr.msk.bf16.gmra.mrb[68].mxu1 %vm472_vm1, %v2011_v17 }
 0x6ff   : > { %v4188_v26 = vpop.f32.mrb[24].mxu0 }
 0x700   : > { %v1685_v51 = vpop.f32.mrb[25].mxu0 }
 0x701   : > { %v4189_v21 = vpop.f32.mrb[26].mxu0 }
 0x702   : > { %v1822_v0 = vpack.c.bf16 %v4189_v21, %v4188_v26  ;;  %v1688_v28 = vpop.f32.mrb[27].mxu0  ;;  %v3833_v21 = vunpack.c.l.bf16 %v5472_v34 }
 0x703   : > { %v1821_v29 = vpack.c.bf16 %v1688_v28, %v1685_v51 }
 0x705   : > { %4212 = vmatprep.mubr.msk.bf16.mxu0 %vm472_vm1, %v1821_v29 }
 0x706   : > { %4213 = vmatmul.mubr.msk.bf16.vlgmr.msra.gmra.mrb[32].mxu0 %vm472_vm1, %v1822_v0  ;;  %v3838_v0 = vunpack.c.h.bf16 %v5456_v42 }
 0x707   : > { %4245 = vmatpush3.bf16.xpose.msra.mxu0 %v2138_v6  ;;  %v4192_v33 = vpop.f32.mrb[28].mxu0 }
 0x708   : > { %4415 = vmatprep.subr.msk.bf16.mxu0 %vm472_vm1, %v2120_v20  ;;  %v1701_v40 = vpop.f32.mrb[29].mxu0  ;;  %v3829_v20 = vunpack.c.l.bf16 %v5439_v1 }
 0x709   : > { %v4193_v43 = vpop.f32.mrb[30].mxu0 }
 0x70a   : > { %v1824_v23 = vpack.c.bf16 %v4193_v43, %v4192_v33  ;;  %v1704_v39 = vpop.f32.mrb[31].mxu0 }
 0x70b   : > { %v1823_v13 = vpack.c.bf16 %v1704_v39, %v1701_v40  ;;  %v3834_v40 = vunpack.c.h.bf16 %v5472_v34 }
 0x70d   : > { %4216 = vmatprep.mubr.msk.bf16.mxu0 %vm472_vm1, %v1823_v13 }
 0x70e   : > { %4217 = vmatmul.mubr.msk.bf16.gmra.mrb[36].mxu0 %vm472_vm1, %v1824_v23 }
 0x70f   : > { %4247 = vmatpush3.bf16.xpose.msra.mxu0 %v2141_v16 }
 0x710   : > { %4416 = vmatprep.subr.msk.bf16.mxu0 %vm472_vm1, %v2122_v10  ;;  %v3837_v10 = vunpack.c.l.bf16 %v5456_v42 }
 0x717   : > { %4249 = vmatpush3.bf16.xpose.msra.mxu0 %v2144_v46 }
 0x718   : > { %4417 = vmatprep.subr.msk.bf16.mxu0 %vm472_vm1, %v2124_v3 }
 0x71f   : > { %4251 = vmatpush3.bf16.xpose.msra.mxu0 %v2147_v32 }
 0x7a4   : > { %v4204_v38 = vpop.f32.mrb[56].mxu1 }
 0x7a5   : > { %v1774_v24 = vpop.f32.mrb[57].mxu1 }
 0x7a6   : > { %v4205_v30 = vpop.f32.mrb[58].mxu1 }
 0x7a7   : > { %v1826_v41 = vpack.c.bf16 %v4205_v30, %v4204_v38  ;;  %v1777_v5 = vpop.f32.mrb[59].mxu1 }
 0x7a8   : > { %v1825_v14 = vpack.c.bf16 %v1777_v5, %v1774_v24  ;;  %v1807_v24 = vld [vmem:[#allocation2 + $0x10] sm:$0xff]  ;;  %v1805_v5 = vld [vmem:[#allocation2] sm:$0xff] }
 0x7aa   : > { %4220 = vmatprep.mubr.msk.bf16.mxu0 %vm472_vm1, %v1825_v14 }
 0x7ab   : > { %4221 = vmatmul.mubr.msk.bf16.gmra.mrb[40].mxu0 %vm472_vm1, %v1826_v41 }
 0x7ac   : > { %v4208_v25 = vpop.f32.mrb[60].mxu1 }
 0x7ad   : > { %v1790_v54 = vpop.f32.mrb[61].mxu1 }
 0x7ae   : > { %v4209_v22 = vpop.f32.mrb[62].mxu1 }
 0x7af   : > { %v1828_v58 = vpack.c.bf16 %v4209_v22, %v4208_v25  ;;  %v1793_v27 = vpop.f32.mrb[63].mxu1 }
 0x7b0   : > { %v1827_v19 = vpack.c.bf16 %v1793_v27, %v1790_v54  ;;  %v1808_v54 = vld [vmem:[#allocation2 + $0x18] sm:$0xff]  ;;  %v1806_v27 = vld [vmem:[#allocation2 + $0x8] sm:$0xff] }
 0x7b2   : > { %4224 = vmatprep.mubr.msk.bf16.mxu0 %vm472_vm1, %v1827_v19 }
 0x7b3   : > { %4225 = vmatmul.mubr.msk.bf16.gmra.mrb[44].mxu0 %vm472_vm1, %v1828_v58 }
 0x7b4   : > { %4252 = vmatprep.mubr.msk.bf16.mxu0 %vm472_vm1, %v2110_v62 }
 0x7bb   : > { %4253 = vmatmul.mubr.msk.bf16.vlgmr.msra.gmra.mrb[48].mxu0 %vm472_vm1, %v2112_v15  ;;  %v3830_v15 = vunpack.c.h.bf16 %v5439_v1 }
 0x7bc   : > { %4256 = vmatprep.mubr.msk.bf16.mxu0 %vm472_vm1, %v2114_v53 }
 0x7c3   : > { %4257 = vmatmul.mubr.msk.bf16.gmra.mrb[52].mxu0 %vm472_vm1, %v2116_v12 }
 0x7c9   : > { %v4238_v2 = vpop.f32.mrb[64].mxu1 }
 0x7ca   : > { %v5451_v52 = vadd.f32 %v4238_v2, %v3829_v20  ;;  %v2078_v63 = vpop.f32.mrb[65].mxu1  ;;  %v1811_v2 = vld [vmem:[#allocation2 + $0x30] sm:$0xff] }
 0x7cb   : > { %v4239_v50 = vpop.f32.mrb[66].mxu1  ;;  %v5460_v3 = vadd.f32 %v3825_v57, %v2078_v63 }
 0x7cc   : > { %v2081_v45 = vpop.f32.mrb[67].mxu1  ;;  %v2220_v12 = vsel %vm663_vm2, %v5451_v52, -inf  ;;  %v5479_v26 = vadd.f32 %v4239_v50, %v3830_v15 }
 0x7cd   : > { %v5467_v55 = vadd.f32 %v3826_v11, %v2081_v45  ;;  %2221 = vmax.xlane.f32.xlu0 %v2220_v12  ;;  %v2214_v51 = vsel %vm663_vm2, %v5460_v3, -inf  ;;  %v1809_v45 = vld [vmem:[#allocation2 + $0x20] sm:$0xff] }
 0x7ce   : > { %v2223_v13 = vsel %vm663_vm2, %v5479_v26, -inf }
 0x7cf   : > { %v2217_v17 = vsel %vm663_vm2, %v5467_v55, -inf }
 0x7d0   : > { %2218 = vmax.xlane.f32.xlu1 %v2217_v17 }
 0x7d1   : > { %2215 = vmax.xlane.f32.xlu0 %v2214_v51  ;;  %v4242_v28 = vpop.f32.mrb[68].mxu1  ;;  %v1812_v51 = vld [vmem:[#allocation2 + $0x38] sm:$0xff] }
 0x7d2   : > { %v5487_v29 = vadd.f32 %v4242_v28, %v3837_v10  ;;  %v2094_v6 = vpop.f32.mrb[69].mxu1 }
 0x7d3   : > { %v4243_v33 = vpop.f32.mrb[70].mxu1  ;;  %v5492_v43 = vadd.f32 %v3833_v21, %v2094_v6 }
 0x7d4   : > { %v5496_v23 = vadd.f32 %v4243_v33, %v3838_v0  ;;  %v2097_v39 = vpop.f32.mrb[71].mxu1  ;;  %v2232_v16 = vsel %vm663_vm2, %v5487_v29, -inf  ;;  %v1810_v33 = vld [vmem:[#allocation2 + $0x28] sm:$0xff] }
 0x7d5   : > { %2224 = vmax.xlane.f32.xlu0 %v2223_v13  ;;  %2233 = vmax.xlane.f32.xlu1 %v2232_v16  ;;  %v5504_v46 = vadd.f32 %v3834_v40, %v2097_v39  ;;  %v2226_v38 = vsel %vm663_vm2, %v5492_v43, -inf }
 0x7d6   : > { %v2235_v32 = vsel %vm663_vm2, %v5496_v23, -inf }
 0x7d7   : > { %v2229_v62 = vsel %vm663_vm2, %v5504_v46, -inf }
 0x7d9   : > { %v4214_v30 = vpop.f32.mrb[32].mxu0  ;;  %2236 = vmax.xlane.f32.xlu0 %v2235_v32  ;;  %2227 = vmax.xlane.f32.xlu1 %v2226_v38 }
 0x7da   : > { %v1957_v41 = vadd.f32 %v4214_v30, %v1807_v24  ;;  %v1892_v14 = vpop.f32.mrb[33].mxu0 }
 0x7db   : > { %v1955_v25 = vadd.f32 %v1892_v14, %v1805_v5  ;;  %v4215_v22 = vpop.f32.mrb[34].mxu0 }
 0x7dc   : > { %1973 = vst.msk [vmem:[#allocation2 + $0x10] sm:$0xff] %vm274_vm0, %v1957_v41  ;;  %v1958_v58 = vadd.f32 %v4215_v22, %v1808_v54  ;;  %v1895_v19 = vpop.f32.mrb[35].mxu0 }
 0x7dd   : > { %1971 = vst.msk [vmem:[#allocation2] sm:$0xff] %vm274_vm0, %v1955_v25  ;;  %v1956_v53 = vadd.f32 %v1895_v19, %v1806_v27  ;;  %2230 = vmax.xlane.f32.xlu0 %v2229_v62 }
 0x7de   : > { %1974 = vst.msk [vmem:[#allocation2 + $0x18] sm:$0xff] %vm274_vm0, %v1958_v58 }
 0x7df   : > { %1972 = vst.msk [vmem:[#allocation2 + $0x8] sm:$0xff] %vm274_vm0, %v1956_v53 }
 0x7e1   : > { %v4218_v63 = vpop.f32.mrb[36].mxu0 }
 0x7e2   : > { %v1961_v50 = vadd.f32 %v4218_v63, %v1811_v2  ;;  %v1908_v12 = vpop.f32.mrb[37].mxu0 }
 0x7e3   : > { %v1959_v17 = vadd.f32 %v1908_v12, %v1809_v45  ;;  %v4219_v28 = vpop.f32.mrb[38].mxu0 }
 0x7e4   : > { %1977 = vst.msk [vmem:[#allocation2 + $0x30] sm:$0xff] %vm274_vm0, %v1961_v50  ;;  %v1962_v6 = vadd.f32 %v4219_v28, %v1812_v51  ;;  %v1911_v39 = vpop.f32.mrb[39].mxu0 }
 0x7e5   : > { %1975 = vst.msk [vmem:[#allocation2 + $0x20] sm:$0xff] %vm274_vm0, %v1959_v17  ;;  %v1960_v13 = vadd.f32 %v1911_v39, %v1810_v33 }
 0x7e6   : > { %1978 = vst.msk [vmem:[#allocation2 + $0x38] sm:$0xff] %vm274_vm0, %v1962_v6 }
 0x7e7   : > { %1976 = vst.msk [vmem:[#allocation2 + $0x28] sm:$0xff] %vm274_vm0, %v1960_v13 }
 0x85a   : > { %v2222_v16 = vpop.xlane.xlu0 %2221 }
 0x85b   : > { %v2264_v32 = vsub.f32 %v5451_v52, %v2222_v16 }
 0x85d   : > { %v2282_v38 = vmul.f32 1.442695, %v2264_v32  ;;  %v2219_v24 = vpop.xlane.xlu1 %2218 }
 0x85e   : > { %v2216_v30 = vpop.xlane.xlu0 %2215  ;;  %v2263_v5 = vsub.f32 %v5467_v55, %v2219_v24  ;;  %v1815_v24 = vld [vmem:[#allocation2 + $0x50] sm:$0xff] }
 0x85f   : > { %4578 = vpow2.f32 %v2282_v38  ;;  %v2262_v41 = vsub.f32 %v5460_v3, %v2216_v30 }
 0x860   : > { %v2280_v27 = vmul.f32 1.442695, %v2263_v5 }
 0x861   : > { %v2278_v14 = vmul.f32 1.442695, %v2262_v41 }
 0x862   : > { %v2225_v25 = vpop.xlane.xlu0 %2224  ;;  %v2234_v54 = vpop.xlane.xlu1 %2233 }
 0x863   : > { %4580 = vpow2.f32 %v2278_v14  ;;  %v2265_v22 = vsub.f32 %v5479_v26, %v2225_v25  ;;  %v2268_v58 = vsub.f32 %v5487_v29, %v2234_v54  ;;  %v1813_v14 = vld [vmem:[#allocation2 + $0x40] sm:$0xff] }
 0x865   : > { %v2284_v19 = vmul.f32 1.442695, %v2265_v22  ;;  %v2290_v62 = vmul.f32 1.442695, %v2268_v58  ;;  %v1816_v22 = vld [vmem:[#allocation2 + $0x58] sm:$0xff] }
 0x866   : > { %v2237_v52 = vpop.xlane.xlu0 %2236  ;;  %v2228_v53 = vpop.xlane.xlu1 %2227 }
 0x867   : > { %4582 = vpow2.f32 %v2284_v19  ;;  %v2269_v2 = vsub.f32 %v5496_v23, %v2237_v52  ;;  %v2266_v3 = vsub.f32 %v5492_v43, %v2228_v53  ;;  %v1814_v19 = vld [vmem:[#allocation2 + $0x48] sm:$0xff]  ;;  %v1819_v53 = vld [vmem:[#allocation2 + $0x70] sm:$0xff] }
 0x868   : > { %4584 = vpow2.f32 %v2290_v62 }
 0x869   : > { %v5527_v55 = vpop.eup %4578  ;;  %4586 = vpow2.f32 %v2280_v27  ;;  %v2292_v63 = vmul.f32 1.442695, %v2269_v2  ;;  %v2286_v50 = vmul.f32 1.442695, %v2266_v3 }
 0x86a   : > { %v2231_v45 = vpop.xlane.xlu0 %2230  ;;  %v2316_v26 = vsel %vm663_vm2, %v5527_v55, 0.0 }
 0x86b   : > { %v2267_v29 = vsub.f32 %v5504_v46, %v2231_v45  ;;  %2317 = vadd.xlane.f32.xlu1 %v2316_v26  ;;  %4588 = vpow2.f32 %v2286_v50  ;;  %v1820_v26 = vld [vmem:[#allocation2 + $0x78] sm:$0xff] }
 0x86c   : > { %4590 = vpow2.f32 %v2292_v63  ;;  %v1817_v63 = vld [vmem:[#allocation2 + $0x60] sm:$0xff] }
 0x86d   : > { %v5532_v12 = vpop.eup %4580  ;;  %v2288_v23 = vmul.f32 1.442695, %v2267_v29 }
 0x86e   : > { %v2310_v43 = vsel %vm663_vm2, %v5532_v12, 0.0 }
 0x86f   : > { %2311 = vadd.xlane.f32.xlu1 %v2310_v43  ;;  %4592 = vpow2.f32 %v2288_v23  ;;  %v1818_v43 = vld [vmem:[#allocation2 + $0x68] sm:$0xff] }
 0x871   : > { %v5536_v17 = vpop.eup %4582 }
 0x872   : > { %v5538_v51 = vpop.eup %4584  ;;  %v2319_v28 = vsel %vm663_vm2, %v5536_v17, 0.0 }
 0x873   : > { %v5542_v6 = vpop.eup %4586  ;;  %2320 = vadd.xlane.f32.xlu0 %v2319_v28  ;;  %v2328_v46 = vsel %vm663_vm2, %v5538_v51, 0.0 }
 0x874   : > { %2329 = vadd.xlane.f32.xlu1 %v2328_v46  ;;  %v2313_v39 = vsel %vm663_vm2, %v5542_v6, 0.0 }
 0x875   : > { %v5546_v33 = vpop.eup %4588 }
 0x876   : > { %v5550_v13 = vpop.eup %4590  ;;  %v2322_v16 = vsel %vm663_vm2, %v5546_v33, 0.0 }
 0x877   : > { %2314 = vadd.xlane.f32.xlu0 %v2313_v39  ;;  %v2331_v32 = vsel %vm663_vm2, %v5550_v13, 0.0 }
 0x878   : > { %2323 = vadd.xlane.f32.xlu1 %v2322_v16 }
 0x879   : > { %v5556_v38 = vpop.eup %4592 }
 0x87a   : > { %v2325_v41 = vsel %vm663_vm2, %v5556_v38, 0.0 }
 0x87b   : > { %2332 = vadd.xlane.f32.xlu0 %v2331_v32 }
 0x87e   : > { %v4222_v30 = vpop.f32.mrb[40].mxu0 }
 0x87f   : > { %v1965_v5 = vadd.f32 %v4222_v30, %v1815_v24  ;;  %v1924_v25 = vpop.f32.mrb[41].mxu0  ;;  %2326 = vadd.xlane.f32.xlu0 %v2325_v41 }
 0x880   : > { %v1963_v54 = vadd.f32 %v1924_v25, %v1813_v14  ;;  %v4223_v58 = vpop.f32.mrb[42].mxu0 }
 0x881   : > { %1981 = vst.msk [vmem:[#allocation2 + $0x50] sm:$0xff] %vm274_vm0, %v1965_v5  ;;  %v1966_v27 = vadd.f32 %v4223_v58, %v1816_v22  ;;  %v1927_v62 = vpop.f32.mrb[43].mxu0 }
 0x882   : > { %1979 = vst.msk [vmem:[#allocation2 + $0x40] sm:$0xff] %vm274_vm0, %v1963_v54  ;;  %v1964_v52 = vadd.f32 %v1927_v62, %v1814_v19 }
 0x883   : > { %1982 = vst.msk [vmem:[#allocation2 + $0x58] sm:$0xff] %vm274_vm0, %v1966_v27 }
 0x884   : > { %1980 = vst.msk [vmem:[#allocation2 + $0x48] sm:$0xff] %vm274_vm0, %v1964_v52 }
 0x886   : > { %v4226_v2 = vpop.f32.mrb[44].mxu0 }
 0x887   : > { %v1969_v3 = vadd.f32 %v4226_v2, %v1819_v53  ;;  %v1940_v50 = vpop.f32.mrb[45].mxu0 }
 0x888   : > { %v1967_v45 = vadd.f32 %v1940_v50, %v1817_v63  ;;  %v4227_v29 = vpop.f32.mrb[46].mxu0 }
 0x889   : > { %1985 = vst.msk [vmem:[#allocation2 + $0x70] sm:$0xff] %vm274_vm0, %v1969_v3  ;;  %v1970_v23 = vadd.f32 %v4227_v29, %v1820_v26  ;;  %v1943_v28 = vpop.f32.mrb[47].mxu0 }
 0x88a   : > { %1983 = vst.msk [vmem:[#allocation2 + $0x60] sm:$0xff] %vm274_vm0, %v1967_v45  ;;  %v1968_v46 = vadd.f32 %v1943_v28, %v1818_v43 }
 0x88b   : > { %1986 = vst.msk [vmem:[#allocation2 + $0x78] sm:$0xff] %vm274_vm0, %v1970_v23 }
 0x88c   : > { %1984 = vst.msk [vmem:[#allocation2 + $0x68] sm:$0xff] %vm274_vm0, %v1968_v46 }
 0x88e   : > { %v4254_v39 = vpop.f32.mrb[48].mxu0 }
 0x88f   : > { %v2192_v16 = vadd.f32 %v4254_v39, %v3829_v20  ;;  %v2183_v32 = vpop.f32.mrb[49].mxu0 }
 0x890   : > { %v4255_v24 = vpop.f32.mrb[50].mxu0  ;;  %v2184_v30 = vadd.f32 %v3825_v57, %v2183_v32 }
 0x891   : > { %v2195_v41 = vadd.f32 %v4255_v24, %v3830_v15  ;;  %v2186_v5 = vpop.f32.mrb[51].mxu0  ;;  %v2244_v14 = vsel %vm663_vm2, %v2192_v16, -inf }
 0x892   : > { %2245 = vmax.xlane.f32.xlu1 %v2244_v14  ;;  %v2187_v25 = vadd.f32 %v3826_v11, %v2186_v5  ;;  %v2238_v20 = vsel %vm663_vm2, %v2184_v30, -inf }
 0x893   : > { %v2247_v54 = vsel %vm663_vm2, %v2195_v41, -inf }
 0x894   : > { %2248 = vmax.xlane.f32.xlu0 %v2247_v54  ;;  %v2241_v1 = vsel %vm663_vm2, %v2187_v25, -inf }
 0x896   : > { %v4258_v22 = vpop.f32.mrb[52].mxu0  ;;  %2239 = vmax.xlane.f32.xlu1 %v2238_v20 }
 0x897   : > { %v2208_v57 = vadd.f32 %v4258_v22, %v3837_v10  ;;  %v2199_v58 = vpop.f32.mrb[53].mxu0 }
 0x898   : > { %v4259_v15 = vpop.f32.mrb[54].mxu0  ;;  %2242 = vmax.xlane.f32.xlu0 %v2241_v1  ;;  %v2200_v27 = vadd.f32 %v3833_v21, %v2199_v58 }
 0x899   : > { %v2211_v18 = vadd.f32 %v4259_v15, %v3838_v0  ;;  %v2202_v11 = vpop.f32.mrb[55].mxu0  ;;  %v2256_v19 = vsel %vm663_vm2, %v2208_v57, -inf }
 0x89a   : > { %2257 = vmax.xlane.f32.xlu1 %v2256_v19  ;;  %v5589_v62 = vadd.f32 %v3834_v40, %v2202_v11  ;;  %v2250_v52 = vsel %vm663_vm2, %v2200_v27, -inf }
 0x89b   : > { %v2259_v10 = vsel %vm663_vm2, %v2211_v18, -inf }
 0x89c   : > { %2260 = vmax.xlane.f32.xlu0 %v2259_v10  ;;  %v2253_v21 = vsel %vm663_vm2, %v5589_v62, -inf }
 0x89e   : > { %2251 = vmax.xlane.f32.xlu1 %v2250_v52 }
 0x8a0   : > { %2254 = vmax.xlane.f32.xlu0 %v2253_v21 }
 0x8af   : > { %2400 = vrot.lane.b32.xlu1 %v4804_v31, %s4722_s9 }
 0x8b3   : > { %2404 = vrot.lane.b32.xlu1 %v4818_v44, %s4722_s9 }
 0x8b6   : > { %2402 = vrot.lane.b32.xlu0 %v4820_v47, %s4722_s9 }
 0x8f8   : > { %v2318_v42 = vpop.xlane.xlu1 %2317 }
 0x8fc   : > { %v2312_v34 = vpop.xlane.xlu1 %2311 }
 0x8fd   : > { %4594 = vrcp.f32 %v2312_v34 }
 0x900   : > { %v2321_v0 = vpop.xlane.xlu0 %2320 }
 0x901   : > { %v2330_v45 = vpop.xlane.xlu1 %2329 }
 0x904   : > { %v2315_v40 = vpop.xlane.xlu0 %2314 }
 0x905   : > { %4596 = vrcp.f32 %v2315_v40  ;;  %v2324_v29 = vpop.xlane.xlu1 %2323 }
 0x907   : > { %v4595_v53 = vpop.eup %4594 }
 0x908   : > { %v2374_v3 = vmul.f32 %v4595_v53, %v5532_v12  ;;  %v2333_v26 = vpop.xlane.xlu0 %2332 }
 0x90c   : > { %v2327_v23 = vpop.xlane.xlu0 %2326 }
 0x90f   : > { %v4597_v2 = vpop.eup %4596 }
 0x910   : > { %v2375_v63 = vmul.f32 %v4597_v2, %v5542_v6 }
 0x912   : > { %v2390_v50 = vpack.c.bf16 %v2375_v63, %v2374_v3 }
 0x914   : > { %4268 = vmatprep.mubr.msk.bf16.mxu1 %vm663_vm2, %v2390_v50 }
 0x91f   : > { %v2246_v43 = vpop.xlane.xlu1 %2245 }
 0x920   : > { %v2272_v28 = vsub.f32 %v2192_v16, %v2246_v43 }
 0x921   : > { %v2249_v46 = vpop.xlane.xlu0 %2248 }
 0x922   : > { %v2298_v39 = vmul.f32 1.442695, %v2272_v28  ;;  %v2273_v32 = vsub.f32 %v2195_v41, %v2249_v46 }
 0x923   : > { %v2240_v24 = vpop.xlane.xlu1 %2239 }
 0x924   : > { %4598 = vpow2.f32 %v2298_v39  ;;  %v2270_v5 = vsub.f32 %v2184_v30, %v2240_v24  ;;  %v2300_v54 = vmul.f32 1.442695, %v2273_v32 }
 0x925   : > { %v2243_v14 = vpop.xlane.xlu0 %2242  ;;  %4600 = vrcp.f32 %v2318_v42 }
 0x926   : > { %v2294_v12 = vmul.f32 1.442695, %v2270_v5  ;;  %v2271_v20 = vsub.f32 %v2187_v25, %v2243_v14 }
 0x927   : > { %v2258_v6 = vpop.xlane.xlu1 %2257 }
 0x928   : > { %4602 = vpow2.f32 %v2294_v12  ;;  %v2276_v22 = vsub.f32 %v2208_v57, %v2258_v6  ;;  %v2296_v1 = vmul.f32 1.442695, %v2271_v20 }
 0x929   : > { %4604 = vrcp.f32 %v2321_v0  ;;  %v2261_v58 = vpop.xlane.xlu0 %2260 }
 0x92a   : > { %4606 = vpow2.f32 %v2300_v54  ;;  %v2306_v15 = vmul.f32 1.442695, %v2276_v22  ;;  %v2277_v16 = vsub.f32 %v2211_v18, %v2261_v58 }
 0x92b   : > { %4608 = vrcp.f32 %v2327_v23  ;;  %v2252_v11 = vpop.xlane.xlu1 %2251 }
 0x92c   : > { %4610 = vpow2.f32 %v2306_v15  ;;  %v2274_v41 = vsub.f32 %v2200_v27, %v2252_v11  ;;  %v2308_v30 = vmul.f32 1.442695, %v2277_v16 }
 0x92d   : > { %4612 = vrcp.f32 %v2324_v29  ;;  %v2255_v19 = vpop.xlane.xlu0 %2254 }
 0x92e   : > { %v5604_v10 = vpop.eup %4598  ;;  %4614 = vpow2.f32 %v2296_v1  ;;  %v2302_v25 = vmul.f32 1.442695, %v2274_v41  ;;  %v2275_v52 = vsub.f32 %v5589_v62, %v2255_v19 }
 0x92f   : > { %4616 = vrcp.f32 %v2333_v26  ;;  %v2401_v57 = vpop.permute.xlu1 %2400  ;;  %v2340_v21 = vsel %vm663_vm2, %v5604_v10, 0.0  ;;  %v4601_v42 = vpop.eup %4600 }
 0x930   : > { %4618 = vpow2.f32 %v2302_v25  ;;  %v2304_v18 = vmul.f32 1.442695, %v2275_v52  ;;  %2341 = vadd.xlane.f32.xlu0 %v2340_v21  ;;  %4262 = vmatprep.subr.bf16.mxu1 %v2401_v57  ;;  %v2376_v28 = vmul.f32 %v4601_v42, %v5527_v55 }
 0x931   : > { %4620 = vpow2.f32 %v2308_v30  ;;  %v2403_v27 = vpop.permute.xlu0 %2402  ;;  %4263 = vmatpush3.bf16.msra.mxu1 %v2401_v57 }
 0x932   : > { %v5609_v34 = vpop.eup %4602  ;;  %4622 = vpow2.f32 %v2304_v18  ;;  %4264 = vmatprep.subr.bf16.mxu1 %v2403_v27 }
 0x933   : > { %v4605_v0 = vpop.eup %4604  ;;  %v2334_v62 = vsel %vm663_vm2, %v5609_v34, 0.0  ;;  %4624 = vrcp.f32 %v2330_v45  ;;  %v2405_v2 = vpop.permute.xlu1 %2404 }
 0x934   : > { %v5613_v40 = vpop.eup %4606  ;;  %2335 = vadd.xlane.f32.xlu0 %v2334_v62  ;;  %v2377_v50 = vmul.f32 %v4605_v0, %v5536_v17 }
 0x935   : > { %v4609_v53 = vpop.eup %4608  ;;  %4265 = vmatpush3.bf16.msra.mxu1 %v2403_v27  ;;  %v2343_v26 = vsel %vm663_vm2, %v5613_v40, 0.0 }
 0x936   : > { %v5615_v3 = vpop.eup %4610  ;;  %4266 = vmatprep.subr.bf16.mxu1 %v2405_v2  ;;  %v2379_v45 = vmul.f32 %v4609_v53, %v5556_v38  ;;  %v2391_v32 = vpack.c.bf16 %v2377_v50, %v2376_v28 }
 0x937   : > { %v4613_v63 = vpop.eup %4612  ;;  %v2352_v29 = vsel %vm663_vm2, %v5615_v3, 0.0 }
 0x938   : > { %v5622_v23 = vpop.eup %4614  ;;  %2344 = vadd.xlane.f32.xlu0 %v2343_v26  ;;  %2353 = vadd.xlane.f32.xlu1 %v2352_v29  ;;  %v2378_v17 = vmul.f32 %v4613_v63, %v5546_v33 }
 0x939   : > { %v4617_v43 = vpop.eup %4616  ;;  %4267 = vmatpush3.bf16.msra.mxu1 %v2405_v2  ;;  %v2337_v24 = vsel %vm663_vm2, %v5622_v23, 0.0 }
 0x93a   : > { %v5626_v46 = vpop.eup %4618  ;;  %v2392_v38 = vpack.c.bf16 %v2379_v45, %v2378_v17  ;;  %v2381_v12 = vmul.f32 %v4617_v43, %v5550_v13 }
 0x93b   : > { %v5629_v39 = vpop.eup %4620  ;;  %v2346_v5 = vsel %vm663_vm2, %v5626_v46, 0.0 }
 0x93c   : > { %v5635_v14 = vpop.eup %4622  ;;  %2338 = vadd.xlane.f32.xlu0 %v2337_v24  ;;  %2347 = vadd.xlane.f32.xlu1 %v2346_v5  ;;  %v2355_v54 = vsel %vm663_vm2, %v5629_v39, 0.0 }
 0x93d   : > { %4269 = vmatmul.mubr.msk.bf16.vlgmr.msra.gmra.mrb[72].mxu1 %vm663_vm2, %v2391_v32  ;;  %v4625_v55 = vpop.eup %4624  ;;  %v2349_v33 = vsel %vm663_vm2, %v5635_v14, 0.0 }
 0x93e   : > { %4272 = vmatprep.mubr.msk.bf16.mxu1 %vm663_vm2, %v2392_v38  ;;  %v2380_v20 = vmul.f32 %v4625_v55, %v5538_v51  ;;  %v3744_v51 = vld [vmem:[%s6038_s3 + $0x8] sm:$0xf] }
 0x93f   : > { %4418 = vmatprep.subr.msk.bf16.mxu1 %vm1075_vm3, %v3744_v51  ;;  %v2627_v13 = vsel %vm1075_vm3, %v3744_v51, 0 }
 0x940   : > { %2350 = vadd.xlane.f32.xlu0 %v2349_v33  ;;  %2356 = vadd.xlane.f32.xlu1 %v2355_v54  ;;  %v2393_v6 = vpack.c.bf16 %v2381_v12, %v2380_v20 }
 0x941   : > { %4293 = vmatpush3.bf16.msra.mxu1 %v2627_v13 }
 0x945   : > { %4273 = vmatmul.mubr.msk.bf16.gmra.mrb[76].mxu1 %vm663_vm2, %v2393_v6 }
 0x951   : > { %2489 = vrot.lane.b32.xlu1 %v4830_v56, %s4722_s9 }
 0x955   : > { %2491 = vrot.lane.b32.xlu1 %v4846_v7, %s4722_s9 }
 0x956   : > { %2487 = vrot.lane.b32.xlu0 %v4832_v59, %s4722_s9 }
 0x959   : > { %2493 = vrot.lane.b32.xlu1 %v4844_v4, %s4722_s9 }
 0x95a   : > { %2783 = vrot.lane.b32.xlu0 %v4806_v35, %s4723_s19 }
 0x95d   : > { %2785 = vrot.lane.b32.xlu1 %v4804_v31, %s4723_s19 }
 0x95e   : > { %2787 = vrot.lane.b32.xlu0 %v4820_v47, %s4723_s19 }
 0x961   : > { %2888 = vrot.lane.b32.xlu1 %v4832_v59, %s4723_s19 }
 0x962   : > { %2789 = vrot.lane.b32.xlu0 %v4818_v44, %s4723_s19 }
 0x965   : > { %2890 = vrot.lane.b32.xlu1 %v4830_v56, %s4723_s19 }
 0x966   : > { %2775 = vrot.lane.b32.xlu0 %v4810_v37, %s4724_s23 }
 0x969   : > { %2777 = vrot.lane.b32.xlu1 %v4808_v36, %s4724_s23 }
 0x96a   : > { %2892 = vrot.lane.b32.xlu0 %v4846_v7, %s4723_s19 }
 0x96d   : > { %2779 = vrot.lane.b32.xlu1 %v4824_v49, %s4724_s23 }
 0x96e   : > { %2781 = vrot.lane.b32.xlu0 %v4822_v48, %s4724_s23 }
 0x971   : > { %2894 = vrot.lane.b32.xlu1 %v4844_v4, %s4723_s19 }
 0x972   : > { %2880 = vrot.lane.b32.xlu0 %v4836_v61, %s4724_s23 }
 0x975   : > { %2882 = vrot.lane.b32.xlu1 %v4834_v60, %s4724_s23 }
 0x976   : > { %2884 = vrot.lane.b32.xlu0 %v4852_v9, %s4724_s23 }
 0x979   : > { %2886 = vrot.lane.b32.xlu1 %v4848_v8, %s4724_s23 }
 0x97d   : > { %3169 = vrot.lane.b32.xlu1 %v4806_v35, %s4725_s24 }
 0x9bd   : > { %v2342_v36 = vpop.xlane.xlu0 %2341 }
 0x9c1   : > { %v2336_v37 = vpop.xlane.xlu0 %2335 }
 0x9c2   : > { %4626 = vrcp.f32 %v2336_v37 }
 0x9c5   : > { %v2345_v22 = vpop.xlane.xlu0 %2344  ;;  %v2354_v49 = vpop.xlane.xlu1 %2353 }
 0x9c9   : > { %v2339_v48 = vpop.xlane.xlu0 %2338  ;;  %v2348_v58 = vpop.xlane.xlu1 %2347 }
 0x9ca   : > { %4628 = vrcp.f32 %v2339_v48 }
 0x9cb   : > { %4630 = vrcp.f32 %v2345_v22 }
 0x9cc   : > { %v4627_v8 = vpop.eup %4626 }
 0x9cd   : > { %v2351_v1 = vpop.xlane.xlu0 %2350  ;;  %v2357_v61 = vpop.xlane.xlu1 %2356  ;;  %v2382_v16 = vmul.f32 %v4627_v8, %v5609_v34 }
 0x9ce   : > { %4632 = vrcp.f32 %v2351_v1 }
 0x9cf   : > { %4634 = vrcp.f32 %v2342_v36 }
 0x9d0   : > { %4636 = vrcp.f32 %v2348_v58 }
 0x9d1   : > { %v2488_v60 = vpop.permute.xlu0 %2487  ;;  %v2490_v9 = vpop.permute.xlu1 %2489  ;;  %4638 = vrcp.f32 %v2357_v61 }
 0x9d2   : > { %4276 = vmatprep.subr.bf16.mxu0 %v2488_v60  ;;  %4640 = vrcp.f32 %v2354_v49 }
 0x9d3   : > { %4277 = vmatpush3.bf16.msra.mxu0 %v2488_v60 }
 0x9d4   : > { %v4629_v35 = vpop.eup %4628  ;;  %4278 = vmatprep.subr.bf16.mxu0 %v2490_v9 }
 0x9d5   : > { %v2492_v15 = vpop.permute.xlu1 %2491  ;;  %v2383_v11 = vmul.f32 %v4629_v35, %v5622_v23  ;;  %v2784_v30 = vpop.permute.xlu0 %2783 }
 0x9d6   : > { %v4631_v19 = vpop.eup %4630  ;;  %v2804_v45 = vsel %vm472_vm1, %v2784_v30, 0 }
 0x9d7   : > { %4279 = vmatpush3.bf16.msra.mxu0 %v2490_v9  ;;  %v2394_v41 = vpack.c.bf16 %v2383_v11, %v2382_v16  ;;  %v2385_v18 = vmul.f32 %v4631_v19, %v5613_v40 }
 0x9d8   : > { %4280 = vmatprep.subr.bf16.mxu0 %v2492_v15  ;;  %v4633_v52 = vpop.eup %4632 }
 0x9d9   : > { %4284 = vmatprep.mubr.msk.bf16.mxu0 %vm663_vm2, %v2394_v41  ;;  %v2494_v25 = vpop.permute.xlu1 %2493  ;;  %v4635_v57 = vpop.eup %4634  ;;  %v2387_v27 = vmul.f32 %v4633_v52, %v5635_v14 }
 0x9da   : > { %v4637_v21 = vpop.eup %4636  ;;  %v2384_v34 = vmul.f32 %v4635_v57, %v5604_v10  ;;  %v2788_v0 = vpop.permute.xlu0 %2787 }
 0x9db   : > { %4281 = vmatpush3.bf16.msra.mxu0 %v2492_v15  ;;  %v2386_v62 = vmul.f32 %v4637_v21, %v5626_v46  ;;  %v4639_v2 = vpop.eup %4638  ;;  %v2810_v24 = vsel %vm472_vm1, %v2788_v0, 0 }
 0x9dc   : > { %4282 = vmatprep.subr.bf16.mxu0 %v2494_v25  ;;  %v2395_v53 = vpack.c.bf16 %v2385_v18, %v2384_v34  ;;  %v4641_v40 = vpop.eup %4640  ;;  %v2389_v10 = vmul.f32 %v4639_v2, %v5629_v39  ;;  %v5729_v34 = vld [vmem:[%s6037_s2 + $0x60] sm:$0xff]  }
 0x9dd   : > { %v2786_v42 = vpop.permute.xlu1 %2785  ;;  %v2396_v50 = vpack.c.bf16 %v2387_v27, %v2386_v62  ;;  %v2388_v23 = vmul.f32 %v4641_v40, %v5615_v3  ;;  %v5724_v27 = vld [vmem:[%s6037_s2 + $0x68] sm:$0xff]   ;;  %v3841_v62 = vunpack.c.l.bf16 %v5729_v34  ;;  %v3842_v2 = vunpack.c.h.bf16 %v5729_v34 }
 0x9de   : > { %v2790_v26 = vpop.permute.xlu0 %2789  ;;  %v2807_v32 = vsel %vm472_vm1, %v2786_v42, 0 }
 0x9df   : > { %4283 = vmatpush3.bf16.msra.mxu0 %v2494_v25  ;;  %v2397_v43 = vpack.c.bf16 %v2389_v10, %v2388_v23  ;;  %v2813_v14 = vsel %vm472_vm1, %v2790_v26, 0 }
 0x9e0   : > { %4419 = vmatprep.subr.msk.bf16.mxu0 %vm472_vm1, %v2784_v30 }
 0x9e1   : > { %v2889_v63 = vpop.permute.xlu1 %2888 }
 0x9e2   : > { %4285 = vmatmul.mubr.msk.bf16.vlgmr.msra.gmra.mrb[56].mxu0 %vm663_vm2, %v2395_v53  ;;  %4423 = vmatprep.subr.msk.bf16.mxu1 %vm472_vm1, %v2889_v63  ;;  %v2776_v46 = vpop.permute.xlu0 %2775  ;;  %v2909_v36 = vsel %vm472_vm1, %v2889_v63, 0 }
 0x9e3   : > { %4288 = vmatprep.mubr.msk.bf16.mxu0 %vm663_vm2, %v2396_v50 }
 0x9e5   : > { %v2891_v29 = vpop.permute.xlu1 %2890 }
 0x9e6   : > { %v2893_v55 = vpop.permute.xlu0 %2892  ;;  %v2912_v61 = vsel %vm472_vm1, %v2891_v29, 0 }
 0x9e7   : > { %v2915_v60 = vsel %vm472_vm1, %v2893_v55, 0 }
 0x9e8   : > { %4311 = vmatpush3.bf16.xpose.msra.mxu0 %v2804_v45 }
 0x9e9   : > { %4420 = vmatprep.subr.msk.bf16.mxu0 %vm472_vm1, %v2786_v42  ;;  %v2778_v28 = vpop.permute.xlu1 %2777 }
 0x9ea   : > { %4289 = vmatmul.mubr.msk.bf16.gmra.mrb[60].mxu0 %vm663_vm2, %v2397_v43  ;;  %v2782_v33 = vpop.permute.xlu0 %2781 }
 0x9eb   : > { %4318 = vmatprep.mubr.msk.bf16.mxu0 %vm472_vm1, %v2776_v46 }
 0x9ed   : > { %v2780_v17 = vpop.permute.xlu1 %2779 }
 0x9ee   : > { %v2881_v18 = vpop.permute.xlu0 %2880 }
 0x9f0   : > { %4313 = vmatpush3.bf16.xpose.msra.mxu0 %v2807_v32 }
 0x9f1   : > { %4421 = vmatprep.subr.msk.bf16.mxu0 %vm472_vm1, %v2788_v0  ;;  %v2895_v39 = vpop.permute.xlu1 %2894  ;;  %v3845_v0 = vunpack.c.l.bf16 %v5724_v27 }
 0x9f2   : > { %v2918_v9 = vsel %vm472_vm1, %v2895_v39, 0  ;;  %v2885_v42 = vpop.permute.xlu0 %2884 }
 0x9f5   : > { %v2883_v3 = vpop.permute.xlu1 %2882 }
 0x9f8   : > { %4315 = vmatpush3.bf16.xpose.msra.mxu0 %v2810_v24 }
 0x9f9   : > { %4422 = vmatprep.subr.msk.bf16.mxu0 %vm472_vm1, %v2790_v26  ;;  %v2887_v5 = vpop.permute.xlu1 %2886  ;;  %v5741_v26 = vld [vmem:[%s6037_s2 + $0x78] sm:$0xff]  }
 0x9fa   : > { %v3853_v46 = vunpack.c.l.bf16 %v5741_v26  ;;  %v3854_v24 = vunpack.c.h.bf16 %v5741_v26 }
 0x9fd   : > { %v3170_v38 = vpop.permute.xlu1 %3169 }
 0xa00   : > { %4317 = vmatpush3.bf16.xpose.msra.mxu0 %v2813_v14 }
 0xa01   : > { %4342 = vmatprep.subr.bf16.mxu0 %v3170_v38 }
 0xa07   : > { %4319 = vmatmul.mubr.msk.bf16.vlgmr.msra.gmra.mrb[64].mxu0 %vm472_vm1, %v2778_v28  ;;  %v5757_v28 = vld [vmem:[%s6037_s2 + $0x70] sm:$0xff]  }
 0xa08   : > { %4322 = vmatprep.mubr.msk.bf16.mxu0 %vm472_vm1, %v2780_v17  ;;  %4343 = vmatpush3.bf16.msra.mxu0 %v3170_v38 }
 0xa0f   : > { %4323 = vmatmul.mubr.msk.bf16.gmra.mrb[68].mxu0 %vm472_vm1, %v2782_v33  ;;  %v3850_v33 = vunpack.c.h.bf16 %v5757_v28 }
 0xa10   : > { %v4270_v54 = vpop.f32.mrb[72].mxu1 }
 0xa11   : > { %v2456_v12 = vpop.f32.mrb[73].mxu1 }
 0xa12   : > { %v4271_v20 = vpop.f32.mrb[74].mxu1 }
 0xa13   : > { %v2593_v6 = vpack.c.bf16 %v4271_v20, %v4270_v54  ;;  %v2459_v51 = vpop.f32.mrb[75].mxu1 }
 0xa14   : > { %v2592_v13 = vpack.c.bf16 %v2459_v51, %v2456_v12 }
 0xa16   : > { %4294 = vmatprep.mubr.msk.bf16.mxu1 %vm472_vm1, %v2592_v13 }
 0xa17   : > { %4295 = vmatmul.mubr.msk.bf16.vlgmr.msra.gmra.mrb[80].mxu1 %vm472_vm1, %v2593_v6 }
 0xa18   : > { %4327 = vmatpush3.bf16.xpose.msra.mxu1 %v2909_v36  ;;  %v4274_v37 = vpop.f32.mrb[76].mxu1 }
 0xa19   : > { %4424 = vmatprep.subr.msk.bf16.mxu1 %vm472_vm1, %v2891_v29  ;;  %v2472_v22 = vpop.f32.mrb[77].mxu1  ;;  %v3846_v29 = vunpack.c.h.bf16 %v5724_v27 }
 0xa1a   : > { %v4275_v49 = vpop.f32.mrb[78].mxu1 }
 0xa1b   : > { %v2595_v48 = vpack.c.bf16 %v4275_v49, %v4274_v37  ;;  %v2475_v58 = vpop.f32.mrb[79].mxu1 }
 0xa1c   : > { %v2594_v1 = vpack.c.bf16 %v2475_v58, %v2472_v22  ;;  %v2578_v22 = vld [vmem:[#allocation2 + $0x10] sm:$0xff]  ;;  %v2576_v58 = vld [vmem:[#allocation2] sm:$0xff] }
 0xa1e   : > { %4298 = vmatprep.mubr.msk.bf16.mxu1 %vm472_vm1, %v2594_v1 }
 0xa1f   : > { %4299 = vmatmul.mubr.msk.bf16.gmra.mrb[84].mxu1 %vm472_vm1, %v2595_v48 }
 0xa20   : > { %4329 = vmatpush3.bf16.xpose.msra.mxu1 %v2912_v61 }
 0xa21   : > { %4425 = vmatprep.subr.msk.bf16.mxu1 %vm472_vm1, %v2893_v55 }
 0xa28   : > { %4331 = vmatpush3.bf16.xpose.msra.mxu1 %v2915_v60  ;;  %v2579_v60 = vld [vmem:[#allocation2 + $0x18] sm:$0xff] }
 0xa29   : > { %4426 = vmatprep.subr.msk.bf16.mxu1 %vm472_vm1, %v2895_v39 }
 0xa30   : > { %4333 = vmatpush3.bf16.xpose.msra.mxu1 %v2918_v9 }
 0xab5   : > { %v4286_v8 = vpop.f32.mrb[56].mxu0 }
 0xab6   : > { %v2545_v35 = vpop.f32.mrb[57].mxu0 }
 0xab7   : > { %v4287_v15 = vpop.f32.mrb[58].mxu0 }
 0xab8   : > { %v2597_v16 = vpack.c.bf16 %v4287_v15, %v4286_v8  ;;  %v2548_v11 = vpop.f32.mrb[59].mxu0 }
 0xab9   : > { %v2596_v41 = vpack.c.bf16 %v2548_v11, %v2545_v35  ;;  %v2577_v35 = vld [vmem:[#allocation2 + $0x8] sm:$0xff] }
 0xabb   : > { %4302 = vmatprep.mubr.msk.bf16.mxu1 %vm472_vm1, %v2596_v41  ;;  %v2582_v41 = vld [vmem:[#allocation2 + $0x30] sm:$0xff] }
 0xabc   : > { %4303 = vmatmul.mubr.msk.bf16.gmra.mrb[88].mxu1 %vm472_vm1, %v2597_v16 }
 0xabd   : > { %v4290_v30 = vpop.f32.mrb[60].mxu0 }
 0xabe   : > { %v2561_v19 = vpop.f32.mrb[61].mxu0 }
 0xabf   : > { %v4291_v25 = vpop.f32.mrb[62].mxu0 }
 0xac0   : > { %v2599_v52 = vpack.c.bf16 %v4291_v25, %v4290_v30  ;;  %v2564_v57 = vpop.f32.mrb[63].mxu0  ;;  %v2580_v25 = vld [vmem:[#allocation2 + $0x20] sm:$0xff] }
 0xac1   : > { %v2598_v21 = vpack.c.bf16 %v2564_v57, %v2561_v19 }
 0xac3   : > { %4306 = vmatprep.mubr.msk.bf16.mxu1 %vm472_vm1, %v2598_v21  ;;  %v2583_v21 = vld [vmem:[#allocation2 + $0x38] sm:$0xff] }
 0xac4   : > { %4307 = vmatmul.mubr.msk.bf16.gmra.mrb[92].mxu1 %vm472_vm1, %v2599_v52 }
 0xac5   : > { %4334 = vmatprep.mubr.msk.bf16.mxu1 %vm472_vm1, %v2881_v18 }
 0xacc   : > { %4335 = vmatmul.mubr.msk.bf16.vlgmr.msra.gmra.mrb[96].mxu1 %vm472_vm1, %v2883_v3  ;;  %v3849_v3 = vunpack.c.l.bf16 %v5757_v28 }
 0xacd   : > { %4338 = vmatprep.mubr.msk.bf16.mxu1 %vm472_vm1, %v2885_v42 }
 0xad4   : > { %4339 = vmatmul.mubr.msk.bf16.gmra.mrb[100].mxu1 %vm472_vm1, %v2887_v5 }
 0xada   : > { %v4320_v53 = vpop.f32.mrb[64].mxu0 }
 0xadb   : > { %v5736_v63 = vadd.f32 %v4320_v53, %v3845_v0  ;;  %v2849_v50 = vpop.f32.mrb[65].mxu0  ;;  %v2581_v53 = vld [vmem:[#allocation2 + $0x28] sm:$0xff] }
 0xadc   : > { %v4321_v40 = vpop.f32.mrb[66].mxu0  ;;  %v5745_v10 = vadd.f32 %v3841_v62, %v2849_v50 }
 0xadd   : > { %v2852_v23 = vpop.f32.mrb[67].mxu0  ;;  %v2991_v45 = vsel %vm663_vm2, %v5736_v63, -inf  ;;  %v5764_v32 = vadd.f32 %v4321_v40, %v3846_v29 }
 0xade   : > { %v5752_v43 = vadd.f32 %v3842_v2, %v2852_v23  ;;  %2992 = vmax.xlane.f32.xlu0 %v2991_v45  ;;  %v2985_v39 = vsel %vm663_vm2, %v5745_v10, -inf }
 0xadf   : > { %v2994_v6 = vsel %vm663_vm2, %v5764_v32, -inf }
 0xae0   : > { %v2988_v17 = vsel %vm663_vm2, %v5752_v43, -inf }
 0xae1   : > { %2989 = vmax.xlane.f32.xlu1 %v2988_v17 }
 0xae2   : > { %2986 = vmax.xlane.f32.xlu0 %v2985_v39  ;;  %v4324_v5 = vpop.f32.mrb[68].mxu0 }
 0xae3   : > { %v5772_v14 = vadd.f32 %v4324_v5, %v3853_v46  ;;  %v2865_v38 = vpop.f32.mrb[69].mxu0 }
 0xae4   : > { %v4325_v55 = vpop.f32.mrb[70].mxu0  ;;  %v5777_v54 = vadd.f32 %v3849_v3, %v2865_v38 }
 0xae5   : > { %v5781_v12 = vadd.f32 %v4325_v55, %v3854_v24  ;;  %v2868_v20 = vpop.f32.mrb[71].mxu0  ;;  %v3003_v51 = vsel %vm663_vm2, %v5772_v14, -inf }
 0xae6   : > { %2995 = vmax.xlane.f32.xlu0 %v2994_v6  ;;  %3004 = vmax.xlane.f32.xlu1 %v3003_v51  ;;  %v5789_v13 = vadd.f32 %v3850_v33, %v2868_v20  ;;  %v2997_v37 = vsel %vm663_vm2, %v5777_v54, -inf }
 0xae7   : > { %v3006_v36 = vsel %vm663_vm2, %v5781_v12, -inf }
 0xae8   : > { %v3000_v16 = vsel %vm663_vm2, %v5789_v13, -inf }
 0xaea   : > { %v4296_v49 = vpop.f32.mrb[80].mxu1  ;;  %3007 = vmax.xlane.f32.xlu0 %v3006_v36  ;;  %2998 = vmax.xlane.f32.xlu1 %v2997_v37 }
 0xaeb   : > { %v2728_v48 = vadd.f32 %v4296_v49, %v2578_v22  ;;  %v2663_v1 = vpop.f32.mrb[81].mxu1 }
 0xaec   : > { %v2726_v61 = vadd.f32 %v2663_v1, %v2576_v58  ;;  %v4297_v9 = vpop.f32.mrb[82].mxu1 }
 0xaed   : > { %2744 = vst.msk [vmem:[#allocation2 + $0x10] sm:$0xff] %vm274_vm0, %v2728_v48  ;;  %v2729_v8 = vadd.f32 %v4297_v9, %v2579_v60  ;;  %v2666_v15 = vpop.f32.mrb[83].mxu1 }
 0xaee   : > { %2742 = vst.msk [vmem:[#allocation2] sm:$0xff] %vm274_vm0, %v2726_v61  ;;  %v2727_v11 = vadd.f32 %v2666_v15, %v2577_v35  ;;  %3001 = vmax.xlane.f32.xlu0 %v3000_v16 }
 0xaef   : > { %2745 = vst.msk [vmem:[#allocation2 + $0x18] sm:$0xff] %vm274_vm0, %v2729_v8 }
 0xaf0   : > { %2743 = vst.msk [vmem:[#allocation2 + $0x8] sm:$0xff] %vm274_vm0, %v2727_v11 }
 0xaf2   : > { %v4300_v30 = vpop.f32.mrb[84].mxu1 }
 0xaf3   : > { %v2732_v19 = vadd.f32 %v4300_v30, %v2582_v41  ;;  %v2679_v52 = vpop.f32.mrb[85].mxu1 }
 0xaf4   : > { %v2730_v57 = vadd.f32 %v2679_v52, %v2580_v25  ;;  %v4301_v18 = vpop.f32.mrb[86].mxu1 }
 0xaf5   : > { %2748 = vst.msk [vmem:[#allocation2 + $0x30] sm:$0xff] %vm274_vm0, %v2732_v19  ;;  %v2733_v42 = vadd.f32 %v4301_v18, %v2583_v21  ;;  %v2682_v50 = vpop.f32.mrb[87].mxu1  ;;  %v2586_v21 = vld [vmem:[#allocation2 + $0x50] sm:$0xff] }
 0xaf6   : > { %2746 = vst.msk [vmem:[#allocation2 + $0x20] sm:$0xff] %vm274_vm0, %v2730_v57  ;;  %v2731_v40 = vadd.f32 %v2682_v50, %v2581_v53  ;;  %v2584_v50 = vld [vmem:[#allocation2 + $0x40] sm:$0xff] }
 0xaf7   : > { %2749 = vst.msk [vmem:[#allocation2 + $0x38] sm:$0xff] %vm274_vm0, %v2733_v42 }
 0xaf8   : > { %2747 = vst.msk [vmem:[#allocation2 + $0x28] sm:$0xff] %vm274_vm0, %v2731_v40 }
 0xb6b   : > { %v2993_v23 = vpop.xlane.xlu0 %2992 }
 0xb6c   : > { %v3035_v45 = vsub.f32 %v5736_v63, %v2993_v23 }
 0xb6e   : > { %v3053_v17 = vmul.f32 1.442695, %v3035_v45  ;;  %v2990_v39 = vpop.xlane.xlu1 %2989  ;;  %v2587_v45 = vld [vmem:[#allocation2 + $0x58] sm:$0xff] }
 0xb6f   : > { %v2987_v5 = vpop.xlane.xlu0 %2986  ;;  %v3034_v55 = vsub.f32 %v5752_v43, %v2990_v39 }
 0xb70   : > { %4642 = vpow2.f32 %v3053_v17  ;;  %v3033_v38 = vsub.f32 %v5745_v10, %v2987_v5  ;;  %v2585_v5 = vld [vmem:[#allocation2 + $0x48] sm:$0xff] }
 0xb71   : > { %v3051_v22 = vmul.f32 1.442695, %v3034_v55 }
 0xb72   : > { %v3049_v20 = vmul.f32 1.442695, %v3033_v38 }
 0xb73   : > { %v2996_v6 = vpop.xlane.xlu0 %2995  ;;  %v3005_v51 = vpop.xlane.xlu1 %3004 }
 0xb74   : > { %4644 = vpow2.f32 %v3049_v20  ;;  %v3036_v36 = vsub.f32 %v5764_v32, %v2996_v6  ;;  %v3039_v37 = vsub.f32 %v5772_v14, %v3005_v51  ;;  %v2590_v20 = vld [vmem:[#allocation2 + $0x70] sm:$0xff] }
 0xb76   : > { %v3055_v49 = vmul.f32 1.442695, %v3036_v36  ;;  %v3061_v48 = vmul.f32 1.442695, %v3039_v37  ;;  %v2588_v36 = vld [vmem:[#allocation2 + $0x60] sm:$0xff] }
 0xb77   : > { %v3008_v63 = vpop.xlane.xlu0 %3007  ;;  %v2999_v58 = vpop.xlane.xlu1 %2998 }
 0xb78   : > { %4646 = vpow2.f32 %v3055_v49  ;;  %v3040_v1 = vsub.f32 %v5781_v12, %v3008_v63  ;;  %v3037_v10 = vsub.f32 %v5777_v54, %v2999_v58  ;;  %v2591_v49 = vld [vmem:[#allocation2 + $0x78] sm:$0xff]  ;;  %v2589_v58 = vld [vmem:[#allocation2 + $0x68] sm:$0xff] }
 0xb79   : > { %4648 = vpow2.f32 %v3061_v48 }
 0xb7a   : > { %v5812_v43 = vpop.eup %4642  ;;  %4650 = vpow2.f32 %v3051_v22  ;;  %v3063_v61 = vmul.f32 1.442695, %v3040_v1  ;;  %v3057_v60 = vmul.f32 1.442695, %v3037_v10 }
 0xb7b   : > { %v3002_v9 = vpop.xlane.xlu0 %3001  ;;  %v3087_v32 = vsel %vm663_vm2, %v5812_v43, 0.0 }
 0xb7c   : > { %v3038_v14 = vsub.f32 %v5789_v13, %v3002_v9  ;;  %3088 = vadd.xlane.f32.xlu1 %v3087_v32  ;;  %4652 = vpow2.f32 %v3057_v60 }
 0xb7d   : > { %4654 = vpow2.f32 %v3063_v61 }
 0xb7e   : > { %v5817_v8 = vpop.eup %4644  ;;  %v3059_v12 = vmul.f32 1.442695, %v3038_v14 }
 0xb7f   : > { %v3081_v54 = vsel %vm663_vm2, %v5817_v8, 0.0 }
 0xb80   : > { %3082 = vadd.xlane.f32.xlu1 %v3081_v54  ;;  %4656 = vpow2.f32 %v3059_v12 }
 0xb82   : > { %v5821_v35 = vpop.eup %4646 }
 0xb83   : > { %v5823_v15 = vpop.eup %4648  ;;  %v3090_v16 = vsel %vm663_vm2, %v5821_v35, 0.0 }
 0xb84   : > { %v5827_v11 = vpop.eup %4650  ;;  %3091 = vadd.xlane.f32.xlu0 %v3090_v16  ;;  %v3099_v13 = vsel %vm663_vm2, %v5823_v15, 0.0 }
 0xb85   : > { %3100 = vadd.xlane.f32.xlu1 %v3099_v13  ;;  %v3084_v30 = vsel %vm663_vm2, %v5827_v11, 0.0 }
 0xb86   : > { %v5831_v41 = vpop.eup %4652 }
 0xb87   : > { %v5835_v19 = vpop.eup %4654  ;;  %v3093_v25 = vsel %vm663_vm2, %v5831_v41, 0.0 }
 0xb88   : > { %3085 = vadd.xlane.f32.xlu0 %v3084_v30  ;;  %v3102_v52 = vsel %vm663_vm2, %v5835_v19, 0.0 }
 0xb89   : > { %3094 = vadd.xlane.f32.xlu1 %v3093_v25 }
 0xb8a   : > { %v5841_v57 = vpop.eup %4656 }
 0xb8b   : > { %v3096_v42 = vsel %vm663_vm2, %v5841_v57, 0.0 }
 0xb8c   : > { %3103 = vadd.xlane.f32.xlu0 %v3102_v52 }
 0xb8f   : > { %v4304_v18 = vpop.f32.mrb[88].mxu1 }
 0xb90   : > { %v2736_v53 = vadd.f32 %v4304_v18, %v2586_v21  ;;  %v2695_v40 = vpop.f32.mrb[89].mxu1  ;;  %3097 = vadd.xlane.f32.xlu0 %v3096_v42 }
 0xb91   : > { %v2734_v23 = vadd.f32 %v2695_v40, %v2584_v50  ;;  %v4305_v17 = vpop.f32.mrb[90].mxu1 }
 0xb92   : > { %2752 = vst.msk [vmem:[#allocation2 + $0x50] sm:$0xff] %vm274_vm0, %v2736_v53  ;;  %v2737_v39 = vadd.f32 %v4305_v17, %v2587_v45  ;;  %v2698_v38 = vpop.f32.mrb[91].mxu1 }
 0xb93   : > { %2750 = vst.msk [vmem:[#allocation2 + $0x40] sm:$0xff] %vm274_vm0, %v2734_v23  ;;  %v2735_v55 = vadd.f32 %v2698_v38, %v2585_v5 }
 0xb94   : > { %2753 = vst.msk [vmem:[#allocation2 + $0x58] sm:$0xff] %vm274_vm0, %v2737_v39 }
 0xb95   : > { %2751 = vst.msk [vmem:[#allocation2 + $0x48] sm:$0xff] %vm274_vm0, %v2735_v55 }
 0xb97   : > { %v4308_v6 = vpop.f32.mrb[92].mxu1 }
 0xb98   : > { %v2740_v51 = vadd.f32 %v4308_v6, %v2590_v20  ;;  %v2711_v37 = vpop.f32.mrb[93].mxu1 }
 0xb99   : > { %v2738_v22 = vadd.f32 %v2711_v37, %v2588_v36  ;;  %v4309_v48 = vpop.f32.mrb[94].mxu1 }
 0xb9a   : > { %2756 = vst.msk [vmem:[#allocation2 + $0x70] sm:$0xff] %vm274_vm0, %v2740_v51  ;;  %v2741_v63 = vadd.f32 %v4309_v48, %v2591_v49  ;;  %v2714_v1 = vpop.f32.mrb[95].mxu1 }
 0xb9b   : > { %2754 = vst.msk [vmem:[#allocation2 + $0x60] sm:$0xff] %vm274_vm0, %v2738_v22  ;;  %v2739_v10 = vadd.f32 %v2714_v1, %v2589_v58 }
 0xb9c   : > { %2757 = vst.msk [vmem:[#allocation2 + $0x78] sm:$0xff] %vm274_vm0, %v2741_v63 }
 0xb9d   : > { %2755 = vst.msk [vmem:[#allocation2 + $0x68] sm:$0xff] %vm274_vm0, %v2739_v10 }
 0xb9f   : > { %v4336_v61 = vpop.f32.mrb[96].mxu1 }
 0xba0   : > { %v2963_v60 = vadd.f32 %v4336_v61, %v3845_v0  ;;  %v2954_v9 = vpop.f32.mrb[97].mxu1 }
 0xba1   : > { %v4337_v32 = vpop.f32.mrb[98].mxu1  ;;  %v2955_v14 = vadd.f32 %v3841_v62, %v2954_v9 }
 0xba2   : > { %v2966_v12 = vadd.f32 %v4337_v32, %v3846_v29  ;;  %v2957_v54 = vpop.f32.mrb[99].mxu1  ;;  %v3015_v16 = vsel %vm663_vm2, %v2963_v60, -inf }
 0xba3   : > { %3016 = vmax.xlane.f32.xlu1 %v3015_v16  ;;  %v2958_v13 = vadd.f32 %v3842_v2, %v2957_v54  ;;  %v3009_v0 = vsel %vm663_vm2, %v2955_v14, -inf }
 0xba4   : > { %v3018_v30 = vsel %vm663_vm2, %v2966_v12, -inf }
 0xba5   : > { %3019 = vmax.xlane.f32.xlu0 %v3018_v30  ;;  %v3012_v27 = vsel %vm663_vm2, %v2958_v13, -inf }
 0xba7   : > { %v4340_v25 = vpop.f32.mrb[100].mxu1  ;;  %3010 = vmax.xlane.f32.xlu1 %v3009_v0 }
 0xba8   : > { %v2979_v62 = vadd.f32 %v4340_v25, %v3853_v46  ;;  %v2970_v52 = vpop.f32.mrb[101].mxu1 }
 0xba9   : > { %v4341_v29 = vpop.f32.mrb[102].mxu1  ;;  %3013 = vmax.xlane.f32.xlu0 %v3012_v27  ;;  %v2971_v21 = vadd.f32 %v3849_v3, %v2970_v52 }
 0xbaa   : > { %v2982_v34 = vadd.f32 %v4341_v29, %v3854_v24  ;;  %v2973_v2 = vpop.f32.mrb[103].mxu1  ;;  %v3027_v18 = vsel %vm663_vm2, %v2979_v62, -inf }
 0xbab   : > { %3028 = vmax.xlane.f32.xlu1 %v3027_v18  ;;  %v5874_v42 = vadd.f32 %v3850_v33, %v2973_v2  ;;  %v3021_v53 = vsel %vm663_vm2, %v2971_v21, -inf }
 0xbac   : > { %v3030_v46 = vsel %vm663_vm2, %v2982_v34, -inf }
 0xbad   : > { %3031 = vmax.xlane.f32.xlu0 %v3030_v46  ;;  %v3024_v3 = vsel %vm663_vm2, %v5874_v42, -inf }
 0xbaf   : > { %3022 = vmax.xlane.f32.xlu1 %v3021_v53 }
 0xbb1   : > { %3025 = vmax.xlane.f32.xlu0 %v3024_v3 }
 0xbc0   : > { %3171 = vrot.lane.b32.xlu1 %v4804_v31, %s4725_s24 }
 0xbc4   : > { %3175 = vrot.lane.b32.xlu1 %v4818_v44, %s4725_s24 }
 0xbc7   : > { %3173 = vrot.lane.b32.xlu0 %v4820_v47, %s4725_s24 }
 0xc09   : > { %v3089_v26 = vpop.xlane.xlu1 %3088 }
 0xc0d   : > { %v3083_v28 = vpop.xlane.xlu1 %3082 }
 0xc0e   : > { %4658 = vrcp.f32 %v3083_v28 }
 0xc11   : > { %v3092_v24 = vpop.xlane.xlu0 %3091 }
 0xc12   : > { %v3101_v31 = vpop.xlane.xlu1 %3100 }
 0xc15   : > { %v3086_v33 = vpop.xlane.xlu0 %3085 }
 0xc16   : > { %4660 = vrcp.f32 %v3086_v33  ;;  %v3095_v39 = vpop.xlane.xlu1 %3094 }
 0xc18   : > { %v4659_v50 = vpop.eup %4658 }
 0xc19   : > { %v3145_v23 = vmul.f32 %v4659_v50, %v5817_v8  ;;  %v3104_v44 = vpop.xlane.xlu0 %3103 }
 0xc1d   : > { %v3098_v5 = vpop.xlane.xlu0 %3097 }
 0xc20   : > { %v4661_v40 = vpop.eup %4660 }
 0xc21   : > { %v3146_v45 = vmul.f32 %v4661_v40, %v5827_v11 }
 0xc23   : > { %v3161_v17 = vpack.c.bf16 %v3146_v45, %v3145_v23 }
 0xc25   : > { %4350 = vmatprep.mubr.msk.bf16.mxu0 %vm663_vm2, %v3161_v17 }
 0xc30   : > { %v3017_v47 = vpop.xlane.xlu1 %3016 }
 0xc31   : > { %v3043_v38 = vsub.f32 %v2963_v60, %v3017_v47 }
 0xc32   : > { %v3020_v55 = vpop.xlane.xlu0 %3019 }
 0xc33   : > { %v3069_v20 = vmul.f32 1.442695, %v3043_v38  ;;  %v3044_v6 = vsub.f32 %v2966_v12, %v3020_v55 }
 0xc34   : > { %v3011_v51 = vpop.xlane.xlu1 %3010 }
 0xc35   : > { %4662 = vpow2.f32 %v3069_v20  ;;  %v3041_v36 = vsub.f32 %v2955_v14, %v3011_v51  ;;  %v3071_v22 = vmul.f32 1.442695, %v3044_v6 }
 0xc36   : > { %v3014_v37 = vpop.xlane.xlu0 %3013  ;;  %4664 = vrcp.f32 %v3089_v26 }
 0xc37   : > { %v3065_v8 = vmul.f32 1.442695, %v3041_v36  ;;  %v3042_v49 = vsub.f32 %v2958_v13, %v3014_v37 }
 0xc38   : > { %v3029_v11 = vpop.xlane.xlu1 %3028 }
 0xc39   : > { %4666 = vpow2.f32 %v3065_v8  ;;  %v3047_v48 = vsub.f32 %v2979_v62, %v3029_v11  ;;  %v3067_v58 = vmul.f32 1.442695, %v3042_v49 }
 0xc3a   : > { %4668 = vrcp.f32 %v3092_v24  ;;  %v3032_v63 = vpop.xlane.xlu0 %3031 }
 0xc3b   : > { %4670 = vpow2.f32 %v3071_v22  ;;  %v3077_v1 = vmul.f32 1.442695, %v3047_v48  ;;  %v3048_v10 = vsub.f32 %v2982_v34, %v3032_v63 }
 0xc3c   : > { %4672 = vrcp.f32 %v3098_v5  ;;  %v3023_v61 = vpop.xlane.xlu1 %3022 }
 0xc3d   : > { %4674 = vpow2.f32 %v3077_v1  ;;  %v3045_v60 = vsub.f32 %v2971_v21, %v3023_v61  ;;  %v3079_v9 = vmul.f32 1.442695, %v3048_v10 }
 0xc3e   : > { %4676 = vrcp.f32 %v3095_v39  ;;  %v3026_v32 = vpop.xlane.xlu0 %3025 }
 0xc3f   : > { %v5889_v14 = vpop.eup %4662  ;;  %4678 = vpow2.f32 %v3067_v58  ;;  %v3073_v12 = vmul.f32 1.442695, %v3045_v60  ;;  %v3046_v54 = vsub.f32 %v5874_v42, %v3026_v32 }
 0xc40   : > { %4680 = vrcp.f32 %v3104_v44  ;;  %v3172_v16 = vpop.permute.xlu1 %3171  ;;  %v3111_v13 = vsel %vm663_vm2, %v5889_v14, 0.0  ;;  %v4665_v0 = vpop.eup %4664 }
 0xc41   : > { %4682 = vpow2.f32 %v3073_v12  ;;  %v3075_v30 = vmul.f32 1.442695, %v3046_v54  ;;  %3112 = vadd.xlane.f32.xlu0 %v3111_v13  ;;  %4344 = vmatprep.subr.bf16.mxu0 %v3172_v16  ;;  %v3147_v24 = vmul.f32 %v4665_v0, %v5812_v43 }
 0xc42   : > { %4684 = vpow2.f32 %v3079_v9  ;;  %v3174_v25 = vpop.permute.xlu0 %3173  ;;  %4345 = vmatpush3.bf16.msra.mxu0 %v3172_v16 }
 0xc43   : > { %v5894_v62 = vpop.eup %4666  ;;  %4686 = vpow2.f32 %v3075_v30  ;;  %4346 = vmatprep.subr.bf16.mxu0 %v3174_v25 }
 0xc44   : > { %v4669_v52 = vpop.eup %4668  ;;  %v3105_v27 = vsel %vm663_vm2, %v5894_v62, 0.0  ;;  %4688 = vrcp.f32 %v3101_v31  ;;  %v3176_v34 = vpop.permute.xlu1 %3175 }
 0xc45   : > { %v5898_v29 = vpop.eup %4670  ;;  %3106 = vadd.xlane.f32.xlu0 %v3105_v27  ;;  %v3148_v42 = vmul.f32 %v4669_v52, %v5821_v35 }
 0xc46   : > { %v4673_v21 = vpop.eup %4672  ;;  %4347 = vmatpush3.bf16.msra.mxu0 %v3174_v25  ;;  %v3114_v46 = vsel %vm663_vm2, %v5898_v29, 0.0 }
 0xc47   : > { %v5900_v2 = vpop.eup %4674  ;;  %4348 = vmatprep.subr.bf16.mxu0 %v3176_v34  ;;  %v3150_v26 = vmul.f32 %v4673_v21, %v5841_v57  ;;  %v3162_v40 = vpack.c.bf16 %v3148_v42, %v3147_v24 }
 0xc48   : > { %v4677_v18 = vpop.eup %4676  ;;  %v3123_v53 = vsel %vm663_vm2, %v5900_v2, 0.0 }
 0xc49   : > { %v4679_v3 = vpop.eup %4678  ;;  %3115 = vadd.xlane.f32.xlu0 %v3114_v46  ;;  %3124 = vadd.xlane.f32.xlu1 %v3123_v53  ;;  %v3149_v50 = vmul.f32 %v4677_v18, %v5831_v41 }
 0xc4a   : > { %v4681_v28 = vpop.eup %4680  ;;  %4349 = vmatpush3.bf16.msra.mxu0 %v3176_v34  ;;  %v3108_v23 = vsel %vm663_vm2, %v4679_v3, 0.0 }
 0xc4b   : > { %v5909_v33 = vpop.eup %4682  ;;  %v3163_v57 = vpack.c.bf16 %v3150_v26, %v3149_v50  ;;  %v3152_v44 = vmul.f32 %v4681_v28, %v5835_v19  ;;  %v3777_v19 = vld [vmem:[%s6038_s3 + $0xc] sm:$0xf] }
 0xc4c   : > { %v5912_v35 = vpop.eup %4684  ;;  %v3117_v45 = vsel %vm663_vm2, %v5909_v33, 0.0  ;;  %4427 = vmatprep.subr.msk.bf16.mxu0 %vm1075_vm3, %v3777_v19 }
 0xc4d   : > { %v4687_v17 = vpop.eup %4686  ;;  %3109 = vadd.xlane.f32.xlu0 %v3108_v23  ;;  %3118 = vadd.xlane.f32.xlu1 %v3117_v45  ;;  %v3126_v41 = vsel %vm663_vm2, %v5912_v35, 0.0 }
 0xc4e   : > { %4351 = vmatmul.mubr.msk.bf16.vlgmr.msra.gmra.mrb[72].mxu0 %vm663_vm2, %v3162_v40  ;;  %v4689_v43 = vpop.eup %4688  ;;  %v3120_v31 = vsel %vm663_vm2, %v4687_v17, 0.0 }
 0xc4f   : > { %4354 = vmatprep.mubr.msk.bf16.mxu0 %vm663_vm2, %v3163_v57  ;;  %v3151_v39 = vmul.f32 %v4689_v43, %v5823_v15  ;;  %v3398_v15 = vsel %vm1075_vm3, %v3777_v19, 0  ;;  %v3349_v43 = vld [vmem:[#allocation2 + $0x10] sm:$0xff]  ;;  %v3350_v19 = vld [vmem:[#allocation2 + $0x18] sm:$0xff] }
 0xc50   : > { %4375 = vmatpush3.bf16.msra.mxu0 %v3398_v15 }
 0xc51   : > { %3121 = vadd.xlane.f32.xlu0 %v3120_v31  ;;  %3127 = vadd.xlane.f32.xlu1 %v3126_v41  ;;  %v3164_v5 = vpack.c.bf16 %v3152_v44, %v3151_v39  ;;  %v3347_v44 = vld [vmem:[#allocation2] sm:$0xff] }
 0xc56   : > { %4355 = vmatmul.mubr.msk.bf16.gmra.mrb[76].mxu0 %vm663_vm2, %v3164_v5 }
 0xc62   : > { %3260 = vrot.lane.b32.xlu1 %v4830_v56, %s4725_s24 }
 0xc66   : > { %3262 = vrot.lane.b32.xlu1 %v4846_v7, %s4725_s24 }
 0xc67   : > { %3258 = vrot.lane.b32.xlu0 %v4832_v59, %s4725_s24 }
 0xc6a   : > { %3264 = vrot.lane.b32.xlu1 %v4844_v4, %s4725_s24 }
 0xcce   : > { %v3113_v47 = vpop.xlane.xlu0 %3112 }
 0xcd2   : > { %v3107_v56 = vpop.xlane.xlu0 %3106 }
 0xcd3   : > { %4690 = vrcp.f32 %v3107_v56  ;;  %v3348_v56 = vld [vmem:[#allocation2 + $0x8] sm:$0xff] }
 0xcd6   : > { %v3116_v38 = vpop.xlane.xlu0 %3115  ;;  %v3125_v55 = vpop.xlane.xlu1 %3124 }
 0xcda   : > { %v3110_v7 = vpop.xlane.xlu0 %3109  ;;  %v3119_v20 = vpop.xlane.xlu1 %3118 }
 0xcdb   : > { %4692 = vrcp.f32 %v3110_v7  ;;  %v5963_v7 = vld [vmem:[%s6039_s4] ss:$0 sm:$0xff] }
 0xcdc   : > { %4694 = vrcp.f32 %v3116_v38 }
 0xcdd   : > { %v4691_v36 = vpop.eup %4690 }
 0xcde   : > { %v3122_v59 = vpop.xlane.xlu0 %3121  ;;  %v3128_v6 = vpop.xlane.xlu1 %3127  ;;  %v3153_v8 = vmul.f32 %v4691_v36, %v5894_v62 }
 0xcdf   : > { %4696 = vrcp.f32 %v3122_v59 }
 0xce0   : > { %4698 = vrcp.f32 %v3113_v47 }
 0xce1   : > { %4700 = vrcp.f32 %v3119_v20  ;;  %v3353_v20 = vld [vmem:[#allocation2 + $0x30] sm:$0xff] }
 0xce2   : > { %v3259_v4 = vpop.permute.xlu0 %3258  ;;  %v3261_v51 = vpop.permute.xlu1 %3260  ;;  %4702 = vrcp.f32 %v3128_v6 }
 0xce3   : > { %4358 = vmatprep.subr.bf16.mxu1 %v3259_v4  ;;  %4704 = vrcp.f32 %v3125_v55 }
 0xce4   : > { %4359 = vmatpush3.bf16.msra.mxu1 %v3259_v4  ;;  %v3351_v4 = vld [vmem:[#allocation2 + $0x20] sm:$0xff] }
 0xce5   : > { %v4693_v37 = vpop.eup %4692  ;;  %4360 = vmatprep.subr.bf16.mxu1 %v3261_v51 }
 0xce6   : > { %v3263_v22 = vpop.permute.xlu1 %3262  ;;  %v3154_v49 = vmul.f32 %v4693_v37, %v4679_v3  ;;  %v4695_v48 = vpop.eup %4694 }
 0xce7   : > { %v3156_v61 = vmul.f32 %v4695_v48, %v5898_v29 }
 0xce8   : > { %4361 = vmatpush3.bf16.msra.mxu1 %v3261_v51  ;;  %v3165_v11 = vpack.c.bf16 %v3154_v49, %v3153_v8 }
 0xce9   : > { %4362 = vmatprep.subr.bf16.mxu1 %v3263_v22  ;;  %v4697_v63 = vpop.eup %4696 }
 0xcea   : > { %4366 = vmatprep.mubr.msk.bf16.mxu1 %vm663_vm2, %v3165_v11  ;;  %v4699_v58 = vpop.eup %4698  ;;  %v3265_v1 = vpop.permute.xlu1 %3264  ;;  %v3158_v60 = vmul.f32 %v4697_v63, %v4687_v17  ;;  %v3352_v63 = vld [vmem:[#allocation2 + $0x28] sm:$0xff] }
 0xceb   : > { %v4701_v10 = vpop.eup %4700  ;;  %v3155_v9 = vmul.f32 %v4699_v58, %v5889_v14 }
 0xcec   : > { %4363 = vmatpush3.bf16.msra.mxu1 %v3263_v22  ;;  %v3157_v32 = vmul.f32 %v4701_v10, %v5909_v33  ;;  %v4703_v54 = vpop.eup %4702  ;;  %v3354_v22 = vld [vmem:[#allocation2 + $0x38] sm:$0xff] }
 0xced   : > { %4364 = vmatprep.subr.bf16.mxu1 %v3265_v1  ;;  %v3166_v12 = vpack.c.bf16 %v3156_v61, %v3155_v9  ;;  %v4705_v13 = vpop.eup %4704  ;;  %v3160_v30 = vmul.f32 %v4703_v54, %v5912_v35 }
 0xcee   : > { %v3167_v16 = vpack.c.bf16 %v3158_v60, %v3157_v32  ;;  %v3159_v0 = vmul.f32 %v4705_v13, %v5900_v2 }
 0xcf0   : > { %4365 = vmatpush3.bf16.msra.mxu1 %v3265_v1  ;;  %v3168_v25 = vpack.c.bf16 %v3160_v30, %v3159_v0 }
 0xcf3   : > { %4367 = vmatmul.mubr.msk.bf16.vlgmr.msra.gmra.mrb[104].mxu1 %vm663_vm2, %v3166_v12 }
 0xcf4   : > { %4370 = vmatprep.mubr.msk.bf16.mxu1 %vm663_vm2, %v3167_v16 }
 0xcfb   : > { %4371 = vmatmul.mubr.msk.bf16.gmra.mrb[108].mxu1 %vm663_vm2, %v3168_v25 }
 0xd21   : > { %v4352_v62 = vpop.f32.mrb[72].mxu0 }
 0xd22   : > { %v3227_v14 = vpop.f32.mrb[73].mxu0 }
 0xd23   : > { %v4353_v52 = vpop.f32.mrb[74].mxu0 }
 0xd24   : > { %v3364_v27 = vpack.c.bf16 %v4353_v52, %v4352_v62  ;;  %v3230_v29 = vpop.f32.mrb[75].mxu0 }
 0xd25   : > { %v3363_v21 = vpack.c.bf16 %v3230_v29, %v3227_v14  ;;  %v3357_v14 = vld [vmem:[#allocation2 + $0x50] sm:$0xff]  ;;  %v3355_v29 = vld [vmem:[#allocation2 + $0x40] sm:$0xff] }
 0xd27   : > { %4376 = vmatprep.mubr.msk.bf16.mxu0 %vm472_vm1, %v3363_v21 }
 0xd28   : > { %4377 = vmatmul.mubr.msk.bf16.vlgmr.msra.gmra.mrb[80].mxu0 %vm472_vm1, %v3364_v27 }
 0xd29   : > { %v4356_v34 = vpop.f32.mrb[76].mxu0 }
 0xd2a   : > { %v3243_v18 = vpop.f32.mrb[77].mxu0 }
 0xd2b   : > { %v4357_v42 = vpop.f32.mrb[78].mxu0 }
 0xd2c   : > { %v3366_v46 = vpack.c.bf16 %v4357_v42, %v4356_v34  ;;  %v3246_v53 = vpop.f32.mrb[79].mxu0 }
 0xd2d   : > { %v3365_v3 = vpack.c.bf16 %v3246_v53, %v3243_v18  ;;  %v3358_v18 = vld [vmem:[#allocation2 + $0x58] sm:$0xff]  ;;  %v3356_v53 = vld [vmem:[#allocation2 + $0x48] sm:$0xff] }
 0xd2f   : > { %4380 = vmatprep.mubr.msk.bf16.mxu0 %vm472_vm1, %v3365_v3 }
 0xd30   : > { %4381 = vmatmul.mubr.msk.bf16.gmra.mrb[84].mxu0 %vm472_vm1, %v3366_v46 }
 0xdc6   : > { %v4368_v2 = vpop.f32.mrb[104].mxu1 }
 0xdc7   : > { %v3316_v26 = vpop.f32.mrb[105].mxu1 }
 0xdc8   : > { %v4369_v28 = vpop.f32.mrb[106].mxu1 }
 0xdc9   : > { %v3368_v24 = vpack.c.bf16 %v4369_v28, %v4368_v2  ;;  %v3319_v33 = vpop.f32.mrb[107].mxu1 }
 0xdca   : > { %v3367_v50 = vpack.c.bf16 %v3319_v33, %v3316_v26  ;;  %v3361_v26 = vld [vmem:[#allocation2 + $0x70] sm:$0xff]  ;;  %v3359_v33 = vld [vmem:[#allocation2 + $0x60] sm:$0xff] }
 0xdcc   : > { %4384 = vmatprep.mubr.msk.bf16.mxu0 %vm472_vm1, %v3367_v50 }
 0xdcd   : > { %4385 = vmatmul.mubr.msk.bf16.gmra.mrb[88].mxu0 %vm472_vm1, %v3368_v24 }
 0xdce   : > { %v4372_v35 = vpop.f32.mrb[108].mxu1 }
 0xdcf   : > { %v3332_v40 = vpop.f32.mrb[109].mxu1 }
 0xdd0   : > { %v4373_v23 = vpop.f32.mrb[110].mxu1 }
 0xdd1   : > { %v3370_v45 = vpack.c.bf16 %v4373_v23, %v4372_v35  ;;  %v3335_v17 = vpop.f32.mrb[111].mxu1  ;;  %v3362_v23 = vld [vmem:[#allocation2 + $0x78] sm:$0xff] }
 0xdd2   : > { %v3369_v57 = vpack.c.bf16 %v3335_v17, %v3332_v40 }
 0xdd4   : > { %4388 = vmatprep.mubr.msk.bf16.mxu0 %vm472_vm1, %v3369_v57 }
 0xdd5   : > { %4389 = vmatmul.mubr.msk.bf16.gmra.mrb[92].mxu0 %vm472_vm1, %v3370_v45 }
 0xdfb   : > { %v4378_v31 = vpop.f32.mrb[80].mxu0 }
 0xdfc   : > { %v3499_v41 = vadd.f32 %v4378_v31, %v3349_v43  ;;  %v3434_v39 = vpop.f32.mrb[81].mxu0  ;;  %v3360_v31 = vld [vmem:[#allocation2 + $0x68] sm:$0xff] }
 0xdfd   : > { %v3497_v5 = vadd.f32 %v3434_v39, %v3347_v44  ;;  %v4379_v15 = vpop.f32.mrb[82].mxu0 }
 0xdfe   : > { %3515 = vst.msk [vmem:[#allocation2 + $0x10] sm:$0xff] %vm274_vm0, %v3499_v41  ;;  %v3500_v47 = vadd.f32 %v4379_v15, %v3350_v19  ;;  %v3437_v38 = vpop.f32.mrb[83].mxu0 }
 0xdff   : > { %3513 = vst.msk [vmem:[#allocation2] sm:$0xff] %vm274_vm0, %v3497_v5  ;;  %v3498_v55 = vadd.f32 %v3437_v38, %v3348_v56 }
 0xe00   : > { %3516 = vst.msk [vmem:[#allocation2 + $0x18] sm:$0xff] %vm274_vm0, %v3500_v47 }
 0xe01   : > { %3514 = vst.msk [vmem:[#allocation2 + $0x8] sm:$0xff] %vm274_vm0, %v3498_v55 }
 0xe03   : > { %v4382_v59 = vpop.f32.mrb[84].mxu0 }
 0xe04   : > { %v3503_v6 = vadd.f32 %v4382_v59, %v3353_v20  ;;  %v3450_v51 = vpop.f32.mrb[85].mxu0 }
 0xe05   : > { %v3531_v36 = vld [vmem:[#allocation2 + $0x10] sm:$0xff]  ;;  %v3501_v37 = vadd.f32 %v3450_v51, %v3351_v4  ;;  %v4383_v8 = vpop.f32.mrb[86].mxu0 }
 0xe06   : > { %v3554_v49 = vadd.f32 %v5963_v7, %v3531_v36  ;;  %v3529_v11 = vld [vmem:[#allocation2] sm:$0xff]  ;;  %3519 = vst.msk [vmem:[#allocation2 + $0x30] sm:$0xff] %vm274_vm0, %v3503_v6  ;;  %v3504_v48 = vadd.f32 %v4383_v8, %v3354_v22  ;;  %v3453_v58 = vpop.f32.mrb[87].mxu0 }
 0xe07   : > { %v3552_v1 = vadd.f32 %v5963_v7, %v3529_v11  ;;  %v3532_v10 = vld [vmem:[#allocation2 + $0x18] sm:$0xff]  ;;  %3517 = vst.msk [vmem:[#allocation2 + $0x20] sm:$0xff] %vm274_vm0, %v3501_v37  ;;  %v3502_v61 = vadd.f32 %v3453_v58, %v3352_v63 }
 0xe08   : > { %3570 = vst.msk [vmem:[%s5970_s15 + $0x10] sm:$0xff] %vm274_vm0, %v3554_v49  ;;  %v3555_v60 = vadd.f32 %v5963_v7, %v3532_v10  ;;  %v3530_v9 = vld [vmem:[#allocation2 + $0x8] sm:$0xff]  ;;  %3520 = vst.msk [vmem:[#allocation2 + $0x38] sm:$0xff] %vm274_vm0, %v3504_v48 }
 0xe09   : > { %3568 = vst.msk [vmem:[%s5970_s15] sm:$0xff] %vm274_vm0, %v3552_v1  ;;  %v3553_v32 = vadd.f32 %v5963_v7, %v3530_v9  ;;  %3518 = vst.msk [vmem:[#allocation2 + $0x28] sm:$0xff] %vm274_vm0, %v3502_v61 }
 0xe0a   : > { %3571 = vst.msk [vmem:[%s5970_s15 + $0x18] sm:$0xff] %vm274_vm0, %v3555_v60 }
 0xe0b   : > { %3569 = vst.msk [vmem:[%s5970_s15 + $0x8] sm:$0xff] %vm274_vm0, %v3553_v32 }
 0xe0d   : > { %v3535_v12 = vld [vmem:[#allocation2 + $0x30] sm:$0xff] }
 0xe0e   : > { %v3558_v54 = vadd.f32 %v5963_v7, %v3535_v12  ;;  %v3533_v16 = vld [vmem:[#allocation2 + $0x20] sm:$0xff] }
 0xe0f   : > { %v3556_v13 = vadd.f32 %v5963_v7, %v3533_v16  ;;  %v3536_v30 = vld [vmem:[#allocation2 + $0x38] sm:$0xff] }
 0xe10   : > { %3574 = vst.msk [vmem:[%s5970_s15 + $0x30] sm:$0xff] %vm274_vm0, %v3558_v54  ;;  %v3559_v0 = vadd.f32 %v5963_v7, %v3536_v30  ;;  %v3534_v25 = vld [vmem:[#allocation2 + $0x28] sm:$0xff] }
 0xe11   : > { %3572 = vst.msk [vmem:[%s5970_s15 + $0x20] sm:$0xff] %vm274_vm0, %v3556_v13  ;;  %v3557_v62 = vadd.f32 %v5963_v7, %v3534_v25 }
 0xe12   : > { %3575 = vst.msk [vmem:[%s5970_s15 + $0x38] sm:$0xff] %vm274_vm0, %v3559_v0 }
 0xe13   : > { %3573 = vst.msk [vmem:[%s5970_s15 + $0x28] sm:$0xff] %vm274_vm0, %v3557_v62 }
 0xea0   : > { %v4386_v52 = vpop.f32.mrb[88].mxu0 }
 0xea1   : > { %v3507_v27 = vadd.f32 %v4386_v52, %v3357_v14  ;;  %v3466_v21 = vpop.f32.mrb[89].mxu0 }
 0xea2   : > { %v3505_v34 = vadd.f32 %v3466_v21, %v3355_v29  ;;  %v4387_v42 = vpop.f32.mrb[90].mxu0 }
 0xea3   : > { %3523 = vst.msk [vmem:[#allocation2 + $0x50] sm:$0xff] %vm274_vm0, %v3507_v27  ;;  %v3508_v46 = vadd.f32 %v4387_v42, %v3358_v18  ;;  %v3469_v3 = vpop.f32.mrb[91].mxu0 }
 0xea4   : > { %3521 = vst.msk [vmem:[#allocation2 + $0x40] sm:$0xff] %vm274_vm0, %v3505_v34  ;;  %v3506_v2 = vadd.f32 %v3469_v3, %v3356_v53 }
 0xea5   : > { %3524 = vst.msk [vmem:[#allocation2 + $0x58] sm:$0xff] %vm274_vm0, %v3508_v46 }
 0xea6   : > { %3522 = vst.msk [vmem:[#allocation2 + $0x48] sm:$0xff] %vm274_vm0, %v3506_v2 }
 0xea8   : > { %v4390_v28 = vpop.f32.mrb[92].mxu0 }
 0xea9   : > { %v3511_v24 = vadd.f32 %v4390_v28, %v3361_v26  ;;  %v3482_v50 = vpop.f32.mrb[93].mxu0 }
 0xeaa   : > { %v3539_v35 = vld [vmem:[#allocation2 + $0x50] sm:$0xff]  ;;  %v3509_v40 = vadd.f32 %v3482_v50, %v3359_v33  ;;  %v4391_v45 = vpop.f32.mrb[94].mxu0 }
 0xeab   : > { %v3562_v17 = vadd.f32 %v5963_v7, %v3539_v35  ;;  %v3537_v57 = vld [vmem:[#allocation2 + $0x40] sm:$0xff]  ;;  %3527 = vst.msk [vmem:[#allocation2 + $0x70] sm:$0xff] %vm274_vm0, %v3511_v24  ;;  %v3512_v43 = vadd.f32 %v4391_v45, %v3362_v23  ;;  %v3485_v41 = vpop.f32.mrb[95].mxu0 }
 0xeac   : > { %v3560_v44 = vadd.f32 %v5963_v7, %v3537_v57  ;;  %v3540_v39 = vld [vmem:[#allocation2 + $0x58] sm:$0xff]  ;;  %3525 = vst.msk [vmem:[#allocation2 + $0x60] sm:$0xff] %vm274_vm0, %v3509_v40  ;;  %v3510_v5 = vadd.f32 %v3485_v41, %v3360_v31 }
 0xead   : > { %3578 = vst.msk [vmem:[%s5970_s15 + $0x50] sm:$0xff] %vm274_vm0, %v3562_v17  ;;  %v3563_v19 = vadd.f32 %v5963_v7, %v3540_v39  ;;  %v3538_v15 = vld [vmem:[#allocation2 + $0x48] sm:$0xff]  ;;  %3528 = vst.msk [vmem:[#allocation2 + $0x78] sm:$0xff] %vm274_vm0, %v3512_v43 }
 0xeae   : > { %3576 = vst.msk [vmem:[%s5970_s15 + $0x40] sm:$0xff] %vm274_vm0, %v3560_v44  ;;  %v3561_v47 = vadd.f32 %v5963_v7, %v3538_v15  ;;  %3526 = vst.msk [vmem:[#allocation2 + $0x68] sm:$0xff] %vm274_vm0, %v3510_v5 }
 0xeaf   : > { %3579 = vst.msk [vmem:[%s5970_s15 + $0x58] sm:$0xff] %vm274_vm0, %v3563_v19 }
 0xeb0   : > { %3577 = vst.msk [vmem:[%s5970_s15 + $0x48] sm:$0xff] %vm274_vm0, %v3561_v47 }
 0xeb2   : > { %v3543_v56 = vld [vmem:[#allocation2 + $0x70] sm:$0xff] }
 0xeb3   : > { %v3566_v38 = vadd.f32 %v5963_v7, %v3543_v56  ;;  %v3541_v55 = vld [vmem:[#allocation2 + $0x60] sm:$0xff] }
 0xeb4   : > { %v3564_v20 = vadd.f32 %v5963_v7, %v3541_v55  ;;  %v3544_v59 = vld [vmem:[#allocation2 + $0x78] sm:$0xff] }
 0xeb5   : > { %3582 = vst.msk [vmem:[%s5970_s15 + $0x70] sm:$0xff] %vm274_vm0, %v3566_v38  ;;  %v3567_v6 = vadd.f32 %v5963_v7, %v3544_v59  ;;  %v3542_v4 = vld [vmem:[#allocation2 + $0x68] sm:$0xff] }
 0xeb6   : > { %3580 = vst.msk [vmem:[%s5970_s15 + $0x60] sm:$0xff] %vm274_vm0, %v3564_v20  ;;  %v3565_v51 = vadd.f32 %v5963_v7, %v3542_v4 }
 0xeb7   : > { %3583 = vst.msk [vmem:[%s5970_s15 + $0x78] sm:$0xff] %vm274_vm0, %v3567_v6 }
 0xeb8   : > { %3581 = vst.msk [vmem:[%s5970_s15 + $0x68] sm:$0xff] %vm274_vm0, %v3565_v51 }
 0xeb9 PF: > { %s15_s18 = sadd.s32 1, %s4712_s18  }
 0xeba   : > { %p12_p4 = scmp.ge.s32.totalorder %s15_s18, 6  }
 0xebc   :  { %14 = sbr.rel (!%p12_p4) target bundleno = 1 (0x1), region = 76 }

</bundles_post_ra>
